<compile_context>
chip_gen: v5e
topology: v5e:2x2
jax: 0.10.0
libtpu: 0.0.40
codegen_flags: <defaults>
</compile_context>

<pallas_src>
import functools
import math

import jax
import jax.numpy as jnp
from jax.experimental import pallas as pl
from jax.experimental.pallas import tpu as pltpu


# ----------------------------------------------------------------------------
# Fused Linear kernel: out = act(x @ W + b)   (full-K, full-M blocks)
# ----------------------------------------------------------------------------
def _linear_kernel(x_ref, w_ref, b_ref, o_ref, *, activation):
    acc = jnp.dot(x_ref[...], w_ref[...], preferred_element_type=jnp.float32)
    y = acc + b_ref[...]
    if activation == "gelu":
        # nn.GELU (tanh approximation; exact-erf gelu differs negligibly)
        y = jax.nn.gelu(y)
    o_ref[...] = y.astype(o_ref.dtype)


def linear(x2d, w_bf16, bias, activation=None):
    """x2d: (M, K) f32/bf16;  w_bf16: (K, N) bf16;  bias: (N,) f32 -> (M, N) f32."""
    M, K = x2d.shape
    Kw, Nf = w_bf16.shape
    assert Kw == K
    if Nf % 256 == 0 and Nf > 256:
        tn = 256                      # 256-wide tiles for v6e/v7x MXU
    elif Nf % 128 == 0:
        tn = 128                      # lane-dense, v5e-friendly
    else:
        tn = Nf                       # full-dim block (bypasses 128 rule)
    grid = (Nf // tn,)

    out = pl.pallas_call(
        functools.partial(_linear_kernel, activation=activation),
        out_shape=jax.ShapeDtypeStruct((M, Nf), jnp.float32),
        grid_spec=pltpu.PrefetchScalarGridSpec(
            num_scalar_prefetch=0,
            grid=grid,
            in_specs=[
                pl.BlockSpec((M, K), lambda j: (0, 0)),     # full M, full K
                pl.BlockSpec((K, tn), lambda j: (0, j)),
                pl.BlockSpec((1, tn), lambda j: (0, j)),
            ],
            out_specs=pl.BlockSpec((M, tn), lambda j: (0, j)),
        ),
        compiler_params=pltpu.CompilerParams(
            dimension_semantics=("parallel",)),
    )(x2d.astype(jnp.bfloat16), w_bf16, bias.reshape(1, -1).astype(jnp.float32))
    return out


# ----------------------------------------------------------------------------
# LayerNorm kernel (over last dim)
# ----------------------------------------------------------------------------
def _layernorm_kernel(x_ref, g_ref, b_ref, o_ref, *, eps):
    x = x_ref[...].astype(jnp.float32)
    mean = jnp.mean(x, axis=-1, keepdims=True)
    xc = x - mean
    var = jnp.mean(xc * xc, axis=-1, keepdims=True)
    inv = jax.lax.rsqrt(var + eps)
    o_ref[...] = (xc * inv * g_ref[...] + b_ref[...]).astype(o_ref.dtype)


def layer_norm(x2d, gamma, beta, eps=1e-5):
    M, D = x2d.shape
    return pl.pallas_call(
        functools.partial(_layernorm_kernel, eps=eps),
        out_shape=jax.ShapeDtypeStruct((M, D), jnp.float32),
        grid_spec=pltpu.PrefetchScalarGridSpec(
            num_scalar_prefetch=0,
            grid=(1,),
            in_specs=[pl.BlockSpec((M, D), lambda i: (0, 0)),
                      pl.BlockSpec((1, D), lambda i: (0, 0)),
                      pl.BlockSpec((1, D), lambda i: (0, 0))],
            out_specs=pl.BlockSpec((M, D), lambda i: (0, 0)),
        ),
    )(x2d.astype(jnp.float32), gamma.reshape(1, -1), beta.reshape(1, -1))


# ----------------------------------------------------------------------------
# Depthwise 3x3 conv (stride 1, pad 1), NHWC, channels on lanes
# ----------------------------------------------------------------------------
def _dwconv3x3_kernel(x_ref, w_ref, o_ref, *, H, W):
    C = o_ref.shape[-1]
    acc = jnp.zeros((H, W, C), jnp.float32)
    for i in range(3):
        for j in range(3):
            tap = x_ref[0, i:i + H, j:j + W, :].astype(jnp.float32)
            wt = w_ref[3 * i + j]                      # (1, C)
            acc = acc + tap * wt
    o_ref[0] = acc.astype(o_ref.dtype)


def depthwise_conv3x3(x_sp, w_dw):
    """x_sp: (BH, H, W, C) f32;  w_dw: (9, 1, C) f32 -> (BH, H, W, C) f32."""
    BH, H, W, C = x_sp.shape
    x_pad = jnp.pad(x_sp, ((0, 0), (1, 1), (1, 1), (0, 0)))
    return pl.pallas_call(
        functools.partial(_dwconv3x3_kernel, H=H, W=W),
        out_shape=jax.ShapeDtypeStruct((BH, H, W, C), jnp.float32),
        grid_spec=pltpu.PrefetchScalarGridSpec(
            num_scalar_prefetch=0,
            grid=(BH,),
            in_specs=[pl.BlockSpec((1, H + 2, W + 2, C), lambda b: (b, 0, 0, 0)),
                      pl.BlockSpec((9, 1, C), lambda b: (0, 0, 0))],
            out_specs=pl.BlockSpec((1, H, W, C), lambda b: (b, 0, 0, 0)),
        ),
        compiler_params=pltpu.CompilerParams(
            dimension_semantics=("parallel",)),
    )(x_pad.astype(jnp.float32), w_dw.astype(jnp.float32))


# ----------------------------------------------------------------------------
# Fused attention kernel: softmax(q*scale @ k^T + rel_bias) @ v  (+ residual q
# on the non-cls rows, per residual_pooling with has_cls_embed=True)
# ----------------------------------------------------------------------------
def _attn_kernel(q_ref, k_ref, v_ref, b_ref, o_ref, *, scale):
    q = q_ref[0].astype(jnp.float32)           # (N, hd)
    k = k_ref[0].astype(jnp.float32)
    v = v_ref[0].astype(jnp.float32)
    s = jax.lax.dot_general(q * scale, k, (((1,), (1,)), ((), ())),
                            preferred_element_type=jnp.float32)    # (N, N)
    s = s + b_ref[0]
    s = s - jnp.max(s, axis=-1, keepdims=True)
    p = jnp.exp(s)
    inv = pl.reciprocal(jnp.sum(p, axis=-1, keepdims=True), approx=True)
    o = jnp.dot(p, v, preferred_element_type=jnp.float32) * inv
    rows = jax.lax.broadcasted_iota(jnp.int32, (q.shape[0], 1), 0)
    o = o + jnp.where(rows >= 1, q, 0.0)       # residual pooling (skip cls row)
    o_ref[0] = o.astype(o_ref.dtype)


def fused_attention(q, k, v, bias, scale):
    """q,k,v: (BH, N, hd) f32;  bias: (BH, N, N) f32 -> (BH, N, hd) f32."""
    BH, N, hd = q.shape
    return pl.pallas_call(
        functools.partial(_attn_kernel, scale=scale),
        out_shape=jax.ShapeDtypeStruct((BH, N, hd), jnp.float32),
        grid_spec=pltpu.PrefetchScalarGridSpec(
            num_scalar_prefetch=0,
            grid=(BH,),
            in_specs=[pl.BlockSpec((1, N, hd), lambda b: (b, 0, 0)),
                      pl.BlockSpec((1, N, hd), lambda b: (b, 0, 0)),
                      pl.BlockSpec((1, N, hd), lambda b: (b, 0, 0)),
                      pl.BlockSpec((1, N, N), lambda b: (b, 0, 0))],
            out_specs=pl.BlockSpec((1, N, hd), lambda b: (b, 0, 0)),
        ),
        compiler_params=pltpu.CompilerParams(
            dimension_semantics=("parallel",)),
    )(q, k, v, bias)


# ----------------------------------------------------------------------------
# Plain-JAX glue (tiny tensors only)
# ----------------------------------------------------------------------------
def attention_pool_conv(t, w_dw, ln_g, ln_b, hw_shape):
    """attention_pool with mode='conv' (depthwise 3x3, stride 1) + LayerNorm.
    t: (B, nH, 1+H*W, hd).  cls token skips the conv but is LayerNorm'd."""
    B, nH, N, hd = t.shape
    H, W = hw_shape
    cls_tok = t[:, :, :1, :]
    sp = t[:, :, 1:, :].reshape(B * nH, H, W, hd)
    pooled = depthwise_conv3x3(sp, w_dw).reshape(B, nH, H * W, hd)
    t2 = jnp.concatenate([cls_tok, pooled], axis=2)
    t2 = layer_norm(t2.reshape(-1, hd), ln_g, ln_b).reshape(B, nH, N, hd)
    return t2, (H, W)


def rel_pos_bias(q_pool, rel_pos_h, rel_pos_w, H, W):
    """cal_rel_pos_spatial as an additive (B, nH, N, N) bias (row/col 0 = 0)."""
    B, nH, N, hd = q_pool.shape
    r_q = q_pool[:, :, 1:, :].reshape(B, nH, H, W, hd)
    dh = jnp.arange(H)[:, None] - jnp.arange(H)[None, :] + (H - 1)
    dw = jnp.arange(W)[:, None] - jnp.arange(W)[None, :] + (W - 1)
    Rh = rel_pos_h[dh]                                  # (H, H, hd)
    Rw = rel_pos_w[dw]                                  # (W, W, hd)
    rel_h = jnp.einsum('bnhwc,hkc->bnhwk', r_q, Rh)
    rel_w = jnp.einsum('bnhwc,wkc->bnhwk', r_q, Rw)
    core = rel_h[..., :, None] + rel_w[..., None, :]    # (B,nH,H,W,H,W)
    core = core.reshape(B, nH, H * W, H * W)
    return jnp.pad(core, ((0, 0), (0, 0), (1, 0), (1, 0)))


# ----------------------------------------------------------------------------
# MultiScaleAttention / MultiScaleBlock forward
# ----------------------------------------------------------------------------
def msattention_forward(p, attn_query, attn_x, hw_shape, num_heads):
    """attn_query -> q (via qkv2);  attn_x -> k, v (via qkv)."""
    B, N, d = attn_x.shape
    hd = d // num_heads
    H, W = hw_shape
    scale = hd ** -0.5

    kv = linear(attn_x.reshape(B * N, d), p['w_qkv'], p['b_qkv'])
    kv = kv.reshape(B, N, 3, num_heads, hd)
    k = kv[:, :, 1].transpose(0, 2, 1, 3)               # (B, nH, N, hd)
    v = kv[:, :, 2].transpose(0, 2, 1, 3)
    q = linear(attn_query.reshape(B * N, d), p['w_qkv2'], p['b_qkv2'])
    q = q.reshape(B, N, num_heads, hd).transpose(0, 2, 1, 3)

    q, q_shape = attention_pool_conv(q, p['pool_q_w'], p['norm_q_g'], p['norm_q_b'], (H, W))
    k, _ = attention_pool_conv(k, p['pool_k_w'], p['norm_k_g'], p['norm_k_b'], (H, W))
    v, _ = attention_pool_conv(v, p['pool_v_w'], p['norm_v_g'], p['norm_v_b'], (H, W))

    bias = rel_pos_bias(q, p['rel_pos_h'], p['rel_pos_w'], H, W)

    BH = B * num_heads
    o = fused_attention(q.reshape(BH, N, hd), k.reshape(BH, N, hd),
                        v.reshape(BH, N, hd), bias.reshape(BH, N, N), scale)
    o = o.reshape(B, num_heads, N, hd).transpose(0, 2, 1, 3).reshape(B, N, d)
    o = linear(o.reshape(B * N, d), p['w_proj'], p['b_proj']).reshape(B, N, d)
    return o, q_shape


def msblock_forward(p, query, x, hw_shape, num_heads):
    """MultiScaleBlock.forward([query, x], hw_shape)."""
    B, N, d = x.shape
    x_norm = layer_norm(x.reshape(-1, d), p['norm1_g'], p['norm1_b']).reshape(B, N, d)
    if query is x:
        q_norm = x_norm
    else:
        q_norm = layer_norm(query.reshape(-1, d), p['norm1_g'], p['norm1_b']).reshape(B, N, d)
    # attn receives [x_norm, q_norm]: its `query` = x_norm (-> q path),
    # its `x` = q_norm (-> k, v path)  — exactly as in the PyTorch code.
    x_block, hw_new = msattention_forward(p['attn'], x_norm, q_norm, hw_shape, num_heads)
    x1 = x + x_block                                    # pool_skip=None, drop_path=Identity
    x1_norm = layer_norm(x1.reshape(-1, d), p['norm2_g'], p['norm2_b']).reshape(B, N, d)
    h = linear(x1_norm.reshape(-1, d), p['w_fc1'], p['b_fc1'], activation="gelu")
    mlp_out = linear(h, p['w_fc2'], p['b_fc2']).reshape(B, N, d)
    return x1 + mlp_out, hw_new


def local_scale_feature_transformer_forward(params, feat0, feat1, hw_shape,
                                            scale=False, cross=False, num_heads=4):
    hw = tuple(hw_shape)
    for i in range(3):
        if scale and i == 2:
            # TODO(synk): scale=True halves my_shape; like the original module it
            # requires the token count to already match the halved grid.
            hw = (hw[0] // 2, hw[1] // 2)
        p = params['layers'][i]
        if not cross:
            feat0, _ = msblock_forward(p, feat0, feat0, hw, num_heads)
            feat1, hw = msblock_forward(p, feat1, feat1, hw, num_heads)
        else:
            feat0, _ = msblock_forward(p, feat0, feat1, hw, num_heads)
            feat1, hw = msblock_forward(p, feat1, feat0, hw, num_heads)
    return feat0, feat1


# ----------------------------------------------------------------------------
# Deterministic parameter construction (shapes per the module __init__)
# ----------------------------------------------------------------------------
def _xavier(key, shape):
    limit = math.sqrt(6.0 / (shape[0] + shape[1]))
    return jax.random.uniform(key, shape, jnp.float32, -limit, limit)


def init_block_params(key, d, num_heads, size):
    hd = d // num_heads
    ks = jax.random.split(key, 10)
    rel_dim = 2 * size - 1
    return {
        'norm1_g': jnp.ones((d,), jnp.float32), 'norm1_b': jnp.zeros((d,), jnp.float32),
        'norm2_g': jnp.ones((d,), jnp.float32), 'norm2_b': jnp.zeros((d,), jnp.float32),
        'w_fc1': _xavier(ks[0], (d, 4 * d)).astype(jnp.bfloat16),
        'b_fc1': jnp.zeros((4 * d,), jnp.float32),
        'w_fc2': _xavier(ks[1], (4 * d, d)).astype(jnp.bfloat16),
        'b_fc2': jnp.zeros((d,), jnp.float32),
        'attn': {
            'w_qkv': _xavier(ks[2], (d, 3 * d)).astype(jnp.bfloat16),
            'b_qkv': jnp.zeros((3 * d,), jnp.float32),          # qkv_bias=False
            'w_qkv2': _xavier(ks[3], (d, d)).astype(jnp.bfloat16),
            'b_qkv2': jnp.zeros((d,), jnp.float32),             # qkv_bias=False
            'w_proj': _xavier(ks[4], (d, d)).astype(jnp.bfloat16),
            'b_proj': jnp.zeros((d,), jnp.float32),
            'pool_q_w': 0.1 * jax.random.normal(ks[5], (9, 1, hd), jnp.float32),
            'pool_k_w': 0.1 * jax.random.normal(ks[6], (9, 1, hd), jnp.float32),
            'pool_v_w': 0.1 * jax.random.normal(ks[7], (9, 1, hd), jnp.float32),
            'norm_q_g': jnp.ones((hd,), jnp.float32), 'norm_q_b': jnp.zeros((hd,), jnp.float32),
            'norm_k_g': jnp.ones((hd,), jnp.float32), 'norm_k_b': jnp.zeros((hd,), jnp.float32),
            'norm_v_g': jnp.ones((hd,), jnp.float32), 'norm_v_b': jnp.zeros((hd,), jnp.float32),
            'rel_pos_h': 0.02 * jax.random.normal(ks[8], (rel_dim, hd), jnp.float32),
            'rel_pos_w': 0.02 * jax.random.normal(ks[9], (rel_dim, hd), jnp.float32),
        },
    }


def init_params(key, d_model, num_heads, size):
    keys = jax.random.split(key, 3)
    return {'layers': [init_block_params(k, d_model, num_heads, size) for k in keys]}


# ----------------------------------------------------------------------------
if __name__ == "__main__":
    key = jax.random.PRNGKey(0)
    k0, k1, kp = jax.random.split(key, 3)

    B, H, W = 2, 4, 4
    d_model, num_heads = 128, 4          # head_dim = 32
    N = H * W + 1                        # cls token + H*W tokens

    feat0 = jax.random.normal(k0, (B, N, d_model), jnp.float32)
    feat1 = jax.random.normal(k1, (B, N, d_model), jnp.float32)
    params = init_params(kp, d_model, num_heads, size=H)

    fwd = jax.jit(functools.partial(
        local_scale_feature_transformer_forward,
        hw_shape=(H, W), scale=False, cross=False, num_heads=num_heads))

    out0, out1 = fwd(params, feat0, feat1)
    out0 = jax.block_until_ready(out0)
    out1 = jax.block_until_ready(out1)

    assert out0.shape == (B, N, d_model), out0.shape
    assert out1.shape == (B, N, d_model), out1.shape
    assert bool(jnp.all(jnp.isfinite(out0))) and bool(jnp.all(jnp.isfinite(out1)))
    print("KERNEL_OK")
</pallas_src>

<mosaic_0001>
module attributes {stable_mosaic.version = 11 : i64} {
  func.func @_layernorm_kernel(%arg0: i32, %arg1: memref<34x128xf32, #tpu.memory_space<vmem>>, %arg2: memref<1x128xf32, #tpu.memory_space<vmem>>, %arg3: memref<1x128xf32, #tpu.memory_space<vmem>>, %arg4: memref<34x128xf32, #tpu.memory_space<vmem>>) attributes {dimension_semantics = [#tpu.dimension_semantics<arbitrary>], iteration_bounds = array<i64: 1>, scalar_prefetch = 0 : i64, scratch_operands = 0 : i64, tpu.core_type = #tpu.core_type<tc>, window_params = [{pipeline_mode = #tpu.pipeline_mode<synchronous>, transform_indices = @transform_0, window_bounds = array<i64: 34, 128>}, {pipeline_mode = #tpu.pipeline_mode<synchronous>, transform_indices = @transform_1, window_bounds = array<i64: 1, 128>}, {pipeline_mode = #tpu.pipeline_mode<synchronous>, transform_indices = @transform_2, window_bounds = array<i64: 1, 128>}, {pipeline_mode = #tpu.pipeline_mode<synchronous>, transform_indices = @transform_3, window_bounds = array<i64: 34, 128>}]} {
    %c0 = arith.constant 0 : index
    %c0_0 = arith.constant 0 : index
    %0 = vector.load %arg1[%c0, %c0_0] : memref<34x128xf32, #tpu.memory_space<vmem>>, vector<34x128xf32>
    %cst = arith.constant dense<0.000000e+00> : vector<34xf32>
    %1 = vector.multi_reduction <add>, %0, %cst [1] : vector<34x128xf32> to vector<34xf32>
    %2 = vector.shape_cast %1 : vector<34xf32> to vector<34x1xf32>
    %cst_1 = arith.constant 1.280000e+02 : f32
    %3 = vector.broadcast %cst_1 : f32 to vector<34x1xf32>
    %4 = arith.divf %2, %3 : vector<34x1xf32>
    %5 = vector.broadcast %4 : vector<34x1xf32> to vector<34x128xf32>
    %6 = arith.subf %0, %5 : vector<34x128xf32>
    %7 = arith.mulf %6, %6 : vector<34x128xf32>
    %cst_2 = arith.constant dense<0.000000e+00> : vector<34xf32>
    %8 = vector.multi_reduction <add>, %7, %cst_2 [1] : vector<34x128xf32> to vector<34xf32>
    %9 = vector.shape_cast %8 : vector<34xf32> to vector<34x1xf32>
    %cst_3 = arith.constant 1.280000e+02 : f32
    %10 = vector.broadcast %cst_3 : f32 to vector<34x1xf32>
    %11 = arith.divf %9, %10 : vector<34x1xf32>
    %cst_4 = arith.constant 9.99999974E-6 : f32
    %12 = vector.broadcast %cst_4 : f32 to vector<34x1xf32>
    %13 = arith.addf %11, %12 : vector<34x1xf32>
    %14 = math.rsqrt %13 : vector<34x1xf32>
    %15 = vector.broadcast %14 : vector<34x1xf32> to vector<34x128xf32>
    %16 = arith.mulf %6, %15 : vector<34x128xf32>
    %c0_5 = arith.constant 0 : index
    %c0_6 = arith.constant 0 : index
    %17 = vector.load %arg2[%c0_5, %c0_6] : memref<1x128xf32, #tpu.memory_space<vmem>>, vector<1x128xf32>
    %18 = vector.broadcast %17 : vector<1x128xf32> to vector<34x128xf32>
    %19 = arith.mulf %16, %18 : vector<34x128xf32>
    %c0_7 = arith.constant 0 : index
    %c0_8 = arith.constant 0 : index
    %20 = vector.load %arg3[%c0_7, %c0_8] : memref<1x128xf32, #tpu.memory_space<vmem>>, vector<1x128xf32>
    %21 = vector.broadcast %20 : vector<1x128xf32> to vector<34x128xf32>
    %22 = arith.addf %19, %21 : vector<34x128xf32>
    %c0_9 = arith.constant 0 : index
    %c0_10 = arith.constant 0 : index
    %23 = vector.load %arg4[%c0_9, %c0_10] : memref<34x128xf32, #tpu.memory_space<vmem>>, vector<34x128xf32>
    tpu.vector_store %arg4[%c0_9, %c0_10], %22 {strides = array<i32>} : memref<34x128xf32, #tpu.memory_space<vmem>>, vector<34x128xf32>,
    return
  }
  func.func @transform_0(%arg0: i32) -> (i32, i32) {
    %c0_i32 = arith.constant 0 : i32
    %c0_i32_0 = arith.constant 0 : i32
    %c0_i32_1 = arith.constant 0 : i32
    return %c0_i32, %c0_i32_0 : i32, i32
  }
  func.func @transform_1(%arg0: i32) -> (i32, i32) {
    %c0_i32 = arith.constant 0 : i32
    %c0_i32_0 = arith.constant 0 : i32
    %c0_i32_1 = arith.constant 0 : i32
    return %c0_i32, %c0_i32_0 : i32, i32
  }
  func.func @transform_2(%arg0: i32) -> (i32, i32) {
    %c0_i32 = arith.constant 0 : i32
    %c0_i32_0 = arith.constant 0 : i32
    %c0_i32_1 = arith.constant 0 : i32
    return %c0_i32, %c0_i32_0 : i32, i32
  }
  func.func @transform_3(%arg0: i32) -> (i32, i32) {
    %c0_i32 = arith.constant 0 : i32
    %c0_i32_0 = arith.constant 0 : i32
    %c0_i32_1 = arith.constant 0 : i32
    return %c0_i32, %c0_i32_0 : i32, i32
  }
}

module attributes {stable_mosaic.version = 11 : i64} {
  func.func @_linear_kernel(%arg0: i32, %arg1: memref<34x128xbf16, #tpu.memory_space<vmem>>, %arg2: memref<128x128xbf16, #tpu.memory_space<vmem>>, %arg3: memref<1x128xf32, #tpu.memory_space<vmem>>, %arg4: memref<34x128xf32, #tpu.memory_space<vmem>>) attributes {dimension_semantics = [#tpu.dimension_semantics<parallel>], iteration_bounds = array<i64: 1>, scalar_prefetch = 0 : i64, scratch_operands = 0 : i64, tpu.core_type = #tpu.core_type<tc>, window_params = [{pipeline_mode = #tpu.pipeline_mode<synchronous>, transform_indices = @transform_0, window_bounds = array<i64: 34, 128>}, {transform_indices = @transform_1, window_bounds = array<i64: 128, 128>}, {transform_indices = @transform_2, window_bounds = array<i64: 1, 128>}, {transform_indices = @transform_3, window_bounds = array<i64: 34, 128>}]} {
    %c0 = arith.constant 0 : index
    %c0_0 = arith.constant 0 : index
    %0 = vector.load %arg1[%c0, %c0_0] : memref<34x128xbf16, #tpu.memory_space<vmem>>, vector<34x128xbf16>
    %c0_1 = arith.constant 0 : index
    %c0_2 = arith.constant 0 : index
    %1 = vector.load %arg2[%c0_1, %c0_2] : memref<128x128xbf16, #tpu.memory_space<vmem>>, vector<128x128xbf16>
    %cst = arith.constant dense<0.000000e+00> : vector<34x128xf32>
    %2 = tpu.matmul %0, %1, %cst {dimension_numbers = #tpu.dot_dimension_numbers<[1], [0], [0], [1], [0, 0, 1, 1], [], []>} : vector<34x128xbf16>, vector<128x128xbf16>, vector<34x128xf32> -> vector<34x128xf32>
    %c0_3 = arith.constant 0 : index
    %c0_4 = arith.constant 0 : index
    %3 = vector.load %arg3[%c0_3, %c0_4] : memref<1x128xf32, #tpu.memory_space<vmem>>, vector<1x128xf32>
    %4 = vector.broadcast %3 : vector<1x128xf32> to vector<34x128xf32>
    %5 = arith.addf %2, %4 : vector<34x128xf32>
    %c0_5 = arith.constant 0 : index
    %c0_6 = arith.constant 0 : index
    %6 = vector.load %arg4[%c0_5, %c0_6] : memref<34x128xf32, #tpu.memory_space<vmem>>, vector<34x128xf32>
    tpu.vector_store %arg4[%c0_5, %c0_6], %5 {strides = array<i32>} : memref<34x128xf32, #tpu.memory_space<vmem>>, vector<34x128xf32>,
    return
  }
  func.func @transform_0(%arg0: i32) -> (i32, i32) {
    %c0_i32 = arith.constant 0 : i32
    %c0_i32_0 = arith.constant 0 : i32
    %c0_i32_1 = arith.constant 0 : i32
    return %c0_i32, %c0_i32_0 : i32, i32
  }
  func.func @transform_1(%arg0: i32) -> (i32, i32) {
    %c0_i32 = arith.constant 0 : i32
    %c0_i32_0 = arith.constant 0 : i32
    return %c0_i32, %arg0 : i32, i32
  }
  func.func @transform_2(%arg0: i32) -> (i32, i32) {
    %c0_i32 = arith.constant 0 : i32
    %c0_i32_0 = arith.constant 0 : i32
    return %c0_i32, %arg0 : i32, i32
  }
  func.func @transform_3(%arg0: i32) -> (i32, i32) {
    %c0_i32 = arith.constant 0 : i32
    %c0_i32_0 = arith.constant 0 : i32
    return %c0_i32, %arg0 : i32, i32
  }
}

module attributes {stable_mosaic.version = 11 : i64} {
  func.func @_dwconv3x3_kernel(%arg0: i32, %arg1: memref<1x6x6x32xf32, #tpu.memory_space<vmem>>, %arg2: memref<9x1x32xf32, #tpu.memory_space<vmem>>, %arg3: memref<1x4x4x32xf32, #tpu.memory_space<vmem>>) attributes {dimension_semantics = [#tpu.dimension_semantics<parallel>], iteration_bounds = array<i64: 8>, scalar_prefetch = 0 : i64, scratch_operands = 0 : i64, tpu.core_type = #tpu.core_type<tc>, window_params = [{transform_indices = @transform_0, window_bounds = array<i64: 1, 6, 6, 32>}, {pipeline_mode = #tpu.pipeline_mode<synchronous>, transform_indices = @transform_1, window_bounds = array<i64: 9, 1, 32>}, {transform_indices = @transform_2, window_bounds = array<i64: 1, 4, 4, 32>}]} {
    %cst = arith.constant 0.000000e+00 : f32
    %0 = vector.broadcast %cst : f32 to vector<4x4x32xf32>
    %c0 = arith.constant 0 : index
    %c0_0 = arith.constant 0 : index
    %c0_1 = arith.constant 0 : index
    %c0_2 = arith.constant 0 : index
    %1 = vector.load %arg1[%c0, %c0_0, %c0_1, %c0_2] : memref<1x6x6x32xf32, #tpu.memory_space<vmem>>, vector<1x4x4x32xf32>
    %2 = vector.shape_cast %1 : vector<1x4x4x32xf32> to vector<4x4x32xf32>
    %c0_3 = arith.constant 0 : index
    %c0_4 = arith.constant 0 : index
    %c0_5 = arith.constant 0 : index
    %3 = vector.load %arg2[%c0_3, %c0_4, %c0_5] : memref<9x1x32xf32, #tpu.memory_space<vmem>>, vector<1x1x32xf32>
    %4 = vector.shape_cast %3 : vector<1x1x32xf32> to vector<1x32xf32>
    %5 = vector.shape_cast %4 : vector<1x32xf32> to vector<1x1x32xf32>
    %6 = vector.broadcast %5 : vector<1x1x32xf32> to vector<4x4x32xf32>
    %7 = arith.mulf %2, %6 : vector<4x4x32xf32>
    %8 = arith.addf %0, %7 : vector<4x4x32xf32>
    %c0_6 = arith.constant 0 : index
    %c0_7 = arith.constant 0 : index
    %c1 = arith.constant 1 : index
    %c0_8 = arith.constant 0 : index
    %9 = vector.load %arg1[%c0_6, %c0_7, %c1, %c0_8] : memref<1x6x6x32xf32, #tpu.memory_space<vmem>>, vector<1x4x4x32xf32>
    %10 = vector.shape_cast %9 : vector<1x4x4x32xf32> to vector<4x4x32xf32>
    %c1_9 = arith.constant 1 : index
    %c0_10 = arith.constant 0 : index
    %c0_11 = arith.constant 0 : index
    %11 = vector.load %arg2[%c1_9, %c0_10, %c0_11] : memref<9x1x32xf32, #tpu.memory_space<vmem>>, vector<1x1x32xf32>
    %12 = vector.shape_cast %11 : vector<1x1x32xf32> to vector<1x32xf32>
    %13 = vector.shape_cast %12 : vector<1x32xf32> to vector<1x1x32xf32>
    %14 = vector.broadcast %13 : vector<1x1x32xf32> to vector<4x4x32xf32>
    %15 = arith.mulf %10, %14 : vector<4x4x32xf32>
    %16 = arith.addf %8, %15 : vector<4x4x32xf32>
    %c0_12 = arith.constant 0 : index
    %c0_13 = arith.constant 0 : index
    %c2 = arith.constant 2 : index
    %c0_14 = arith.constant 0 : index
    %17 = vector.load %arg1[%c0_12, %c0_13, %c2, %c0_14] : memref<1x6x6x32xf32, #tpu.memory_space<vmem>>, vector<1x4x4x32xf32>
    %18 = vector.shape_cast %17 : vector<1x4x4x32xf32> to vector<4x4x32xf32>
    %c2_15 = arith.constant 2 : index
    %c0_16 = arith.constant 0 : index
    %c0_17 = arith.constant 0 : index
    %19 = vector.load %arg2[%c2_15, %c0_16, %c0_17] : memref<9x1x32xf32, #tpu.memory_space<vmem>>, vector<1x1x32xf32>
    %20 = vector.shape_cast %19 : vector<1x1x32xf32> to vector<1x32xf32>
    %21 = vector.shape_cast %20 : vector<1x32xf32> to vector<1x1x32xf32>
    %22 = vector.broadcast %21 : vector<1x1x32xf32> to vector<4x4x32xf32>
    %23 = arith.mulf %18, %22 : vector<4x4x32xf32>
    %24 = arith.addf %16, %23 : vector<4x4x32xf32>
    %c0_18 = arith.constant 0 : index
    %c1_19 = arith.constant 1 : index
    %c0_20 = arith.constant 0 : index
    %c0_21 = arith.constant 0 : index
    %25 = vector.load %arg1[%c0_18, %c1_19, %c0_20, %c0_21] : memref<1x6x6x32xf32, #tpu.memory_space<vmem>>, vector<1x4x4x32xf32>
    %26 = vector.shape_cast %25 : vector<1x4x4x32xf32> to vector<4x4x32xf32>
    %c3 = arith.constant 3 : index
    %c0_22 = arith.constant 0 : index
    %c0_23 = arith.constant 0 : index
    %27 = vector.load %arg2[%c3, %c0_22, %c0_23] : memref<9x1x32xf32, #tpu.memory_space<vmem>>, vector<1x1x32xf32>
    %28 = vector.shape_cast %27 : vector<1x1x32xf32> to vector<1x32xf32>
    %29 = vector.shape_cast %28 : vector<1x32xf32> to vector<1x1x32xf32>
    %30 = vector.broadcast %29 : vector<1x1x32xf32> to vector<4x4x32xf32>
    %31 = arith.mulf %26, %30 : vector<4x4x32xf32>
    %32 = arith.addf %24, %31 : vector<4x4x32xf32>
    %c0_24 = arith.constant 0 : index
    %c1_25 = arith.constant 1 : index
    %c1_26 = arith.constant 1 : index
    %c0_27 = arith.constant 0 : index
    %33 = vector.load %arg1[%c0_24, %c1_25, %c1_26, %c0_27] : memref<1x6x6x32xf32, #tpu.memory_space<vmem>>, vector<1x4x4x32xf32>
    %34 = vector.shape_cast %33 : vector<1x4x4x32xf32> to vector<4x4x32xf32>
    %c4 = arith.constant 4 : index
    %c0_28 = arith.constant 0 : index
    %c0_29 = arith.constant 0 : index
    %35 = vector.load %arg2[%c4, %c0_28, %c0_29] : memref<9x1x32xf32, #tpu.memory_space<vmem>>, vector<1x1x32xf32>
    %36 = vector.shape_cast %35 : vector<1x1x32xf32> to vector<1x32xf32>
    %37 = vector.shape_cast %36 : vector<1x32xf32> to vector<1x1x32xf32>
    %38 = vector.broadcast %37 : vector<1x1x32xf32> to vector<4x4x32xf32>
    %39 = arith.mulf %34, %38 : vector<4x4x32xf32>
    %40 = arith.addf %32, %39 : vector<4x4x32xf32>
    %c0_30 = arith.constant 0 : index
    %c1_31 = arith.constant 1 : index
    %c2_32 = arith.constant 2 : index
    %c0_33 = arith.constant 0 : index
    %41 = vector.load %arg1[%c0_30, %c1_31, %c2_32, %c0_33] : memref<1x6x6x32xf32, #tpu.memory_space<vmem>>, vector<1x4x4x32xf32>
    %42 = vector.shape_cast %41 : vector<1x4x4x32xf32> to vector<4x4x32xf32>
    %c5 = arith.constant 5 : index
    %c0_34 = arith.constant 0 : index
    %c0_35 = arith.constant 0 : index
    %43 = vector.load %arg2[%c5, %c0_34, %c0_35] : memref<9x1x32xf32, #tpu.memory_space<vmem>>, vector<1x1x32xf32>
    %44 = vector.shape_cast %43 : vector<1x1x32xf32> to vector<1x32xf32>
    %45 = vector.shape_cast %44 : vector<1x32xf32> to vector<1x1x32xf32>
    %46 = vector.broadcast %45 : vector<1x1x32xf32> to vector<4x4x32xf32>
    %47 = arith.mulf %42, %46 : vector<4x4x32xf32>
    %48 = arith.addf %40, %47 : vector<4x4x32xf32>
    %c0_36 = arith.constant 0 : index
    %c2_37 = arith.constant 2 : index
    %c0_38 = arith.constant 0 : index
    %c0_39 = arith.constant 0 : index
    %49 = vector.load %arg1[%c0_36, %c2_37, %c0_38, %c0_39] : memref<1x6x6x32xf32, #tpu.memory_space<vmem>>, vector<1x4x4x32xf32>
    %50 = vector.shape_cast %49 : vector<1x4x4x32xf32> to vector<4x4x32xf32>
    %c6 = arith.constant 6 : index
    %c0_40 = arith.constant 0 : index
    %c0_41 = arith.constant 0 : index
    %51 = vector.load %arg2[%c6, %c0_40, %c0_41] : memref<9x1x32xf32, #tpu.memory_space<vmem>>, vector<1x1x32xf32>
    %52 = vector.shape_cast %51 : vector<1x1x32xf32> to vector<1x32xf32>
    %53 = vector.shape_cast %52 : vector<1x32xf32> to vector<1x1x32xf32>
    %54 = vector.broadcast %53 : vector<1x1x32xf32> to vector<4x4x32xf32>
    %55 = arith.mulf %50, %54 : vector<4x4x32xf32>
    %56 = arith.addf %48, %55 : vector<4x4x32xf32>
    %c0_42 = arith.constant 0 : index
    %c2_43 = arith.constant 2 : index
    %c1_44 = arith.constant 1 : index
    %c0_45 = arith.constant 0 : index
    %57 = vector.load %arg1[%c0_42, %c2_43, %c1_44, %c0_45] : memref<1x6x6x32xf32, #tpu.memory_space<vmem>>, vector<1x4x4x32xf32>
    %58 = vector.shape_cast %57 : vector<1x4x4x32xf32> to vector<4x4x32xf32>
    %c7 = arith.constant 7 : index
    %c0_46 = arith.constant 0 : index
    %c0_47 = arith.constant 0 : index
    %59 = vector.load %arg2[%c7, %c0_46, %c0_47] : memref<9x1x32xf32, #tpu.memory_space<vmem>>, vector<1x1x32xf32>
    %60 = vector.shape_cast %59 : vector<1x1x32xf32> to vector<1x32xf32>
    %61 = vector.shape_cast %60 : vector<1x32xf32> to vector<1x1x32xf32>
    %62 = vector.broadcast %61 : vector<1x1x32xf32> to vector<4x4x32xf32>
    %63 = arith.mulf %58, %62 : vector<4x4x32xf32>
    %64 = arith.addf %56, %63 : vector<4x4x32xf32>
    %c0_48 = arith.constant 0 : index
    %c2_49 = arith.constant 2 : index
    %c2_50 = arith.constant 2 : index
    %c0_51 = arith.constant 0 : index
    %65 = vector.load %arg1[%c0_48, %c2_49, %c2_50, %c0_51] : memref<1x6x6x32xf32, #tpu.memory_space<vmem>>, vector<1x4x4x32xf32>
    %66 = vector.shape_cast %65 : vector<1x4x4x32xf32> to vector<4x4x32xf32>
    %c8 = arith.constant 8 : index
    %c0_52 = arith.constant 0 : index
    %c0_53 = arith.constant 0 : index
    %67 = vector.load %arg2[%c8, %c0_52, %c0_53] : memref<9x1x32xf32, #tpu.memory_space<vmem>>, vector<1x1x32xf32>
    %68 = vector.shape_cast %67 : vector<1x1x32xf32> to vector<1x32xf32>
    %69 = vector.shape_cast %68 : vector<1x32xf32> to vector<1x1x32xf32>
    %70 = vector.broadcast %69 : vector<1x1x32xf32> to vector<4x4x32xf32>
    %71 = arith.mulf %66, %70 : vector<4x4x32xf32>
    %72 = arith.addf %64, %71 : vector<4x4x32xf32>
    %c0_54 = arith.constant 0 : index
    %c0_55 = arith.constant 0 : index
    %c0_56 = arith.constant 0 : index
    %c0_57 = arith.constant 0 : index
    %73 = vector.load %arg3[%c0_54, %c0_55, %c0_56, %c0_57] : memref<1x4x4x32xf32, #tpu.memory_space<vmem>>, vector<1x4x4x32xf32>
    %74 = vector.shape_cast %73 : vector<1x4x4x32xf32> to vector<4x4x32xf32>
    %75 = vector.shape_cast %72 : vector<4x4x32xf32> to vector<1x4x4x32xf32>
    tpu.vector_store %arg3[%c0_54, %c0_55, %c0_56, %c0_57], %75 {strides = array<i32>} : memref<1x4x4x32xf32, #tpu.memory_space<vmem>>, vector<1x4x4x32xf32>,
    return
  }
  func.func @transform_0(%arg0: i32) -> (i32, i32, i32, i32) {
    %c0_i32 = arith.constant 0 : i32
    %c0_i32_0 = arith.constant 0 : i32
    %c0_i32_1 = arith.constant 0 : i32
    %c0_i32_2 = arith.constant 0 : i32
    return %arg0, %c0_i32, %c0_i32_0, %c0_i32_1 : i32, i32, i32, i32
  }
  func.func @transform_1(%arg0: i32) -> (i32, i32, i32) {
    %c0_i32 = arith.constant 0 : i32
    %c0_i32_0 = arith.constant 0 : i32
    %c0_i32_1 = arith.constant 0 : i32
    %c0_i32_2 = arith.constant 0 : i32
    return %c0_i32, %c0_i32_0, %c0_i32_1 : i32, i32, i32
  }
  func.func @transform_2(%arg0: i32) -> (i32, i32, i32, i32) {
    %c0_i32 = arith.constant 0 : i32
    %c0_i32_0 = arith.constant 0 : i32
    %c0_i32_1 = arith.constant 0 : i32
    %c0_i32_2 = arith.constant 0 : i32
    return %arg0, %c0_i32, %c0_i32_0, %c0_i32_1 : i32, i32, i32, i32
  }
}

module attributes {stable_mosaic.version = 11 : i64} {
  func.func @_layernorm_kernel(%arg0: i32, %arg1: memref<136x32xf32, #tpu.memory_space<vmem>>, %arg2: memref<1x32xf32, #tpu.memory_space<vmem>>, %arg3: memref<1x32xf32, #tpu.memory_space<vmem>>, %arg4: memref<136x32xf32, #tpu.memory_space<vmem>>) attributes {dimension_semantics = [#tpu.dimension_semantics<arbitrary>], iteration_bounds = array<i64: 1>, scalar_prefetch = 0 : i64, scratch_operands = 0 : i64, tpu.core_type = #tpu.core_type<tc>, window_params = [{pipeline_mode = #tpu.pipeline_mode<synchronous>, transform_indices = @transform_0, window_bounds = array<i64: 136, 32>}, {pipeline_mode = #tpu.pipeline_mode<synchronous>, transform_indices = @transform_1, window_bounds = array<i64: 1, 32>}, {pipeline_mode = #tpu.pipeline_mode<synchronous>, transform_indices = @transform_2, window_bounds = array<i64: 1, 32>}, {pipeline_mode = #tpu.pipeline_mode<synchronous>, transform_indices = @transform_3, window_bounds = array<i64: 136, 32>}]} {
    %c0 = arith.constant 0 : index
    %c0_0 = arith.constant 0 : index
    %0 = vector.load %arg1[%c0, %c0_0] : memref<136x32xf32, #tpu.memory_space<vmem>>, vector<136x32xf32>
    %cst = arith.constant dense<0.000000e+00> : vector<136xf32>
    %1 = vector.multi_reduction <add>, %0, %cst [1] : vector<136x32xf32> to vector<136xf32>
    %2 = vector.shape_cast %1 : vector<136xf32> to vector<136x1xf32>
    %cst_1 = arith.constant 3.200000e+01 : f32
    %3 = vector.broadcast %cst_1 : f32 to vector<136x1xf32>
    %4 = arith.divf %2, %3 : vector<136x1xf32>
    %5 = vector.broadcast %4 : vector<136x1xf32> to vector<136x32xf32>
    %6 = arith.subf %0, %5 : vector<136x32xf32>
    %7 = arith.mulf %6, %6 : vector<136x32xf32>
    %cst_2 = arith.constant dense<0.000000e+00> : vector<136xf32>
    %8 = vector.multi_reduction <add>, %7, %cst_2 [1] : vector<136x32xf32> to vector<136xf32>
    %9 = vector.shape_cast %8 : vector<136xf32> to vector<136x1xf32>
    %cst_3 = arith.constant 3.200000e+01 : f32
    %10 = vector.broadcast %cst_3 : f32 to vector<136x1xf32>
    %11 = arith.divf %9, %10 : vector<136x1xf32>
    %cst_4 = arith.constant 9.99999974E-6 : f32
    %12 = vector.broadcast %cst_4 : f32 to vector<136x1xf32>
    %13 = arith.addf %11, %12 : vector<136x1xf32>
    %14 = math.rsqrt %13 : vector<136x1xf32>
    %15 = vector.broadcast %14 : vector<136x1xf32> to vector<136x32xf32>
    %16 = arith.mulf %6, %15 : vector<136x32xf32>
    %c0_5 = arith.constant 0 : index
    %c0_6 = arith.constant 0 : index
    %17 = vector.load %arg2[%c0_5, %c0_6] : memref<1x32xf32, #tpu.memory_space<vmem>>, vector<1x32xf32>
    %18 = vector.broadcast %17 : vector<1x32xf32> to vector<136x32xf32>
    %19 = arith.mulf %16, %18 : vector<136x32xf32>
    %c0_7 = arith.constant 0 : index
    %c0_8 = arith.constant 0 : index
    %20 = vector.load %arg3[%c0_7, %c0_8] : memref<1x32xf32, #tpu.memory_space<vmem>>, vector<1x32xf32>
    %21 = vector.broadcast %20 : vector<1x32xf32> to vector<136x32xf32>
    %22 = arith.addf %19, %21 : vector<136x32xf32>
    %c0_9 = arith.constant 0 : index
    %c0_10 = arith.constant 0 : index
    %23 = vector.load %arg4[%c0_9, %c0_10] : memref<136x32xf32, #tpu.memory_space<vmem>>, vector<136x32xf32>
    tpu.vector_store %arg4[%c0_9, %c0_10], %22 {strides = array<i32>} : memref<136x32xf32, #tpu.memory_space<vmem>>, vector<136x32xf32>,
    return
  }
  func.func @transform_0(%arg0: i32) -> (i32, i32) {
    %c0_i32 = arith.constant 0 : i32
    %c0_i32_0 = arith.constant 0 : i32
    %c0_i32_1 = arith.constant 0 : i32
    return %c0_i32, %c0_i32_0 : i32, i32
  }
  func.func @transform_1(%arg0: i32) -> (i32, i32) {
    %c0_i32 = arith.constant 0 : i32
    %c0_i32_0 = arith.constant 0 : i32
    %c0_i32_1 = arith.constant 0 : i32
    return %c0_i32, %c0_i32_0 : i32, i32
  }
  func.func @transform_2(%arg0: i32) -> (i32, i32) {
    %c0_i32 = arith.constant 0 : i32
    %c0_i32_0 = arith.constant 0 : i32
    %c0_i32_1 = arith.constant 0 : i32
    return %c0_i32, %c0_i32_0 : i32, i32
  }
  func.func @transform_3(%arg0: i32) -> (i32, i32) {
    %c0_i32 = arith.constant 0 : i32
    %c0_i32_0 = arith.constant 0 : i32
    %c0_i32_1 = arith.constant 0 : i32
    return %c0_i32, %c0_i32_0 : i32, i32
  }
}

module attributes {stable_mosaic.version = 11 : i64} {
  func.func @_linear_kernel(%arg0: i32, %arg1: memref<34x128xbf16, #tpu.memory_space<vmem>>, %arg2: memref<128x128xbf16, #tpu.memory_space<vmem>>, %arg3: memref<1x128xf32, #tpu.memory_space<vmem>>, %arg4: memref<34x128xf32, #tpu.memory_space<vmem>>) attributes {dimension_semantics = [#tpu.dimension_semantics<parallel>], iteration_bounds = array<i64: 3>, scalar_prefetch = 0 : i64, scratch_operands = 0 : i64, tpu.core_type = #tpu.core_type<tc>, window_params = [{pipeline_mode = #tpu.pipeline_mode<synchronous>, transform_indices = @transform_0, window_bounds = array<i64: 34, 128>}, {transform_indices = @transform_1, window_bounds = array<i64: 128, 128>}, {transform_indices = @transform_2, window_bounds = array<i64: 1, 128>}, {transform_indices = @transform_3, window_bounds = array<i64: 34, 128>}]} {
    %c0 = arith.constant 0 : index
    %c0_0 = arith.constant 0 : index
    %0 = vector.load %arg1[%c0, %c0_0] : memref<34x128xbf16, #tpu.memory_space<vmem>>, vector<34x128xbf16>
    %c0_1 = arith.constant 0 : index
    %c0_2 = arith.constant 0 : index
    %1 = vector.load %arg2[%c0_1, %c0_2] : memref<128x128xbf16, #tpu.memory_space<vmem>>, vector<128x128xbf16>
    %cst = arith.constant dense<0.000000e+00> : vector<34x128xf32>
    %2 = tpu.matmul %0, %1, %cst {dimension_numbers = #tpu.dot_dimension_numbers<[1], [0], [0], [1], [0, 0, 1, 1], [], []>} : vector<34x128xbf16>, vector<128x128xbf16>, vector<34x128xf32> -> vector<34x128xf32>
    %c0_3 = arith.constant 0 : index
    %c0_4 = arith.constant 0 : index
    %3 = vector.load %arg3[%c0_3, %c0_4] : memref<1x128xf32, #tpu.memory_space<vmem>>, vector<1x128xf32>
    %4 = vector.broadcast %3 : vector<1x128xf32> to vector<34x128xf32>
    %5 = arith.addf %2, %4 : vector<34x128xf32>
    %c0_5 = arith.constant 0 : index
    %c0_6 = arith.constant 0 : index
    %6 = vector.load %arg4[%c0_5, %c0_6] : memref<34x128xf32, #tpu.memory_space<vmem>>, vector<34x128xf32>
    tpu.vector_store %arg4[%c0_5, %c0_6], %5 {strides = array<i32>} : memref<34x128xf32, #tpu.memory_space<vmem>>, vector<34x128xf32>,
    return
  }
  func.func @transform_0(%arg0: i32) -> (i32, i32) {
    %c0_i32 = arith.constant 0 : i32
    %c0_i32_0 = arith.constant 0 : i32
    %c0_i32_1 = arith.constant 0 : i32
    return %c0_i32, %c0_i32_0 : i32, i32
  }
  func.func @transform_1(%arg0: i32) -> (i32, i32) {
    %c0_i32 = arith.constant 0 : i32
    %c0_i32_0 = arith.constant 0 : i32
    return %c0_i32, %arg0 : i32, i32
  }
  func.func @transform_2(%arg0: i32) -> (i32, i32) {
    %c0_i32 = arith.constant 0 : i32
    %c0_i32_0 = arith.constant 0 : i32
    return %c0_i32, %arg0 : i32, i32
  }
  func.func @transform_3(%arg0: i32) -> (i32, i32) {
    %c0_i32 = arith.constant 0 : i32
    %c0_i32_0 = arith.constant 0 : i32
    return %c0_i32, %arg0 : i32, i32
  }
}

module attributes {stable_mosaic.version = 11 : i64} {
  func.func @_linear_kernel(%arg0: i32, %arg1: memref<34x128xbf16, #tpu.memory_space<vmem>>, %arg2: memref<128x256xbf16, #tpu.memory_space<vmem>>, %arg3: memref<1x256xf32, #tpu.memory_space<vmem>>, %arg4: memref<34x256xf32, #tpu.memory_space<vmem>>) attributes {dimension_semantics = [#tpu.dimension_semantics<parallel>], iteration_bounds = array<i64: 2>, scalar_prefetch = 0 : i64, scratch_operands = 0 : i64, tpu.core_type = #tpu.core_type<tc>, window_params = [{pipeline_mode = #tpu.pipeline_mode<synchronous>, transform_indices = @transform_0, window_bounds = array<i64: 34, 128>}, {transform_indices = @transform_1, window_bounds = array<i64: 128, 256>}, {transform_indices = @transform_2, window_bounds = array<i64: 1, 256>}, {transform_indices = @transform_3, window_bounds = array<i64: 34, 256>}]} {
    %c0 = arith.constant 0 : index
    %c0_0 = arith.constant 0 : index
    %0 = vector.load %arg1[%c0, %c0_0] : memref<34x128xbf16, #tpu.memory_space<vmem>>, vector<34x128xbf16>
    %c0_1 = arith.constant 0 : index
    %c0_2 = arith.constant 0 : index
    %1 = vector.load %arg2[%c0_1, %c0_2] : memref<128x256xbf16, #tpu.memory_space<vmem>>, vector<128x256xbf16>
    %cst = arith.constant dense<0.000000e+00> : vector<34x256xf32>
    %2 = tpu.matmul %0, %1, %cst {dimension_numbers = #tpu.dot_dimension_numbers<[1], [0], [0], [1], [0, 0, 1, 1], [], []>} : vector<34x128xbf16>, vector<128x256xbf16>, vector<34x256xf32> -> vector<34x256xf32>
    %c0_3 = arith.constant 0 : index
    %c0_4 = arith.constant 0 : index
    %3 = vector.load %arg3[%c0_3, %c0_4] : memref<1x256xf32, #tpu.memory_space<vmem>>, vector<1x256xf32>
    %4 = vector.broadcast %3 : vector<1x256xf32> to vector<34x256xf32>
    %5 = arith.addf %2, %4 : vector<34x256xf32>
    %6 = arith.mulf %5, %5 : vector<34x256xf32>
    %7 = arith.mulf %5, %6 : vector<34x256xf32>
    %cst_5 = arith.constant 4.471500e-02 : f32
    %8 = vector.broadcast %cst_5 : f32 to vector<34x256xf32>
    %9 = arith.mulf %8, %7 : vector<34x256xf32>
    %10 = arith.addf %5, %9 : vector<34x256xf32>
    %cst_6 = arith.constant 0.797884583 : f32
    %11 = vector.broadcast %cst_6 : f32 to vector<34x256xf32>
    %12 = arith.mulf %11, %10 : vector<34x256xf32>
    %13 = math.tanh %12 : vector<34x256xf32>
    %cst_7 = arith.constant 1.000000e+00 : f32
    %14 = vector.broadcast %cst_7 : f32 to vector<34x256xf32>
    %15 = arith.addf %14, %13 : vector<34x256xf32>
    %cst_8 = arith.constant 5.000000e-01 : f32
    %16 = vector.broadcast %cst_8 : f32 to vector<34x256xf32>
    %17 = arith.mulf %16, %15 : vector<34x256xf32>
    %18 = arith.mulf %5, %17 : vector<34x256xf32>
    %c0_9 = arith.constant 0 : index
    %c0_10 = arith.constant 0 : index
    %19 = vector.load %arg4[%c0_9, %c0_10] : memref<34x256xf32, #tpu.memory_space<vmem>>, vector<34x256xf32>
    tpu.vector_store %arg4[%c0_9, %c0_10], %18 {strides = array<i32>} : memref<34x256xf32, #tpu.memory_space<vmem>>, vector<34x256xf32>,
    return
  }
  func.func @transform_0(%arg0: i32) -> (i32, i32) {
    %c0_i32 = arith.constant 0 : i32
    %c0_i32_0 = arith.constant 0 : i32
    %c0_i32_1 = arith.constant 0 : i32
    return %c0_i32, %c0_i32_0 : i32, i32
  }
  func.func @transform_1(%arg0: i32) -> (i32, i32) {
    %c0_i32 = arith.constant 0 : i32
    %c0_i32_0 = arith.constant 0 : i32
    return %c0_i32, %arg0 : i32, i32
  }
  func.func @transform_2(%arg0: i32) -> (i32, i32) {
    %c0_i32 = arith.constant 0 : i32
    %c0_i32_0 = arith.constant 0 : i32
    return %c0_i32, %arg0 : i32, i32
  }
  func.func @transform_3(%arg0: i32) -> (i32, i32) {
    %c0_i32 = arith.constant 0 : i32
    %c0_i32_0 = arith.constant 0 : i32
    return %c0_i32, %arg0 : i32, i32
  }
}

module attributes {stable_mosaic.version = 11 : i64} {
  func.func @_attn_kernel(%arg0: i32, %arg1: memref<1x17x32xf32, #tpu.memory_space<vmem>>, %arg2: memref<1x17x32xf32, #tpu.memory_space<vmem>>, %arg3: memref<1x17x32xf32, #tpu.memory_space<vmem>>, %arg4: memref<1x17x17xf32, #tpu.memory_space<vmem>>, %arg5: memref<1x17x32xf32, #tpu.memory_space<vmem>>) attributes {dimension_semantics = [#tpu.dimension_semantics<parallel>], iteration_bounds = array<i64: 8>, scalar_prefetch = 0 : i64, scratch_operands = 0 : i64, tpu.core_type = #tpu.core_type<tc>, window_params = [{transform_indices = @transform_0, window_bounds = array<i64: 1, 17, 32>}, {transform_indices = @transform_1, window_bounds = array<i64: 1, 17, 32>}, {transform_indices = @transform_2, window_bounds = array<i64: 1, 17, 32>}, {transform_indices = @transform_3, window_bounds = array<i64: 1, 17, 17>}, {transform_indices = @transform_4, window_bounds = array<i64: 1, 17, 32>}]} {
    %c0 = arith.constant 0 : index
    %c0_0 = arith.constant 0 : index
    %c0_1 = arith.constant 0 : index
    %0 = vector.load %arg1[%c0, %c0_0, %c0_1] : memref<1x17x32xf32, #tpu.memory_space<vmem>>, vector<1x17x32xf32>
    %1 = vector.shape_cast %0 : vector<1x17x32xf32> to vector<17x32xf32>
    %c0_2 = arith.constant 0 : index
    %c0_3 = arith.constant 0 : index
    %c0_4 = arith.constant 0 : index
    %2 = vector.load %arg2[%c0_2, %c0_3, %c0_4] : memref<1x17x32xf32, #tpu.memory_space<vmem>>, vector<1x17x32xf32>
    %3 = vector.shape_cast %2 : vector<1x17x32xf32> to vector<17x32xf32>
    %c0_5 = arith.constant 0 : index
    %c0_6 = arith.constant 0 : index
    %c0_7 = arith.constant 0 : index
    %4 = vector.load %arg3[%c0_5, %c0_6, %c0_7] : memref<1x17x32xf32, #tpu.memory_space<vmem>>, vector<1x17x32xf32>
    %5 = vector.shape_cast %4 : vector<1x17x32xf32> to vector<17x32xf32>
    %cst = arith.constant 0.176776692 : f32
    %6 = vector.broadcast %cst : f32 to vector<17x32xf32>
    %7 = arith.mulf %1, %6 : vector<17x32xf32>
    %cst_8 = arith.constant dense<0.000000e+00> : vector<17x17xf32>
    %8 = tpu.matmul %7, %3, %cst_8 {dimension_numbers = #tpu.dot_dimension_numbers<[1], [1], [0], [0], [0, 0, 1, 0], [], []>} : vector<17x32xf32>, vector<17x32xf32>, vector<17x17xf32> -> vector<17x17xf32>
    %c0_9 = arith.constant 0 : index
    %c0_10 = arith.constant 0 : index
    %c0_11 = arith.constant 0 : index
    %9 = vector.load %arg4[%c0_9, %c0_10, %c0_11] : memref<1x17x17xf32, #tpu.memory_space<vmem>>, vector<1x17x17xf32>
    %10 = vector.shape_cast %9 : vector<1x17x17xf32> to vector<17x17xf32>
    %11 = arith.addf %8, %10 : vector<17x17xf32>
    %cst_12 = arith.constant dense<0xFF800000> : vector<17xf32>
    %12 = vector.multi_reduction <maximumf>, %11, %cst_12 [1] : vector<17x17xf32> to vector<17xf32>
    %13 = vector.shape_cast %12 : vector<17xf32> to vector<17x1xf32>
    %14 = vector.broadcast %13 : vector<17x1xf32> to vector<17x17xf32>
    %15 = arith.subf %11, %14 : vector<17x17xf32>
    %16 = math.exp %15 : vector<17x17xf32>
    %cst_13 = arith.constant dense<0.000000e+00> : vector<17xf32>
    %17 = vector.multi_reduction <add>, %16, %cst_13 [1] : vector<17x17xf32> to vector<17xf32>
    %18 = vector.shape_cast %17 : vector<17xf32> to vector<17x1xf32>
    %19 = tpu.reciprocal %18 {approx = true} : vector<17x1xf32> -> vector<17x1xf32>
    %cst_14 = arith.constant dense<0.000000e+00> : vector<17x32xf32>
    %20 = tpu.matmul %16, %5, %cst_14 {dimension_numbers = #tpu.dot_dimension_numbers<[1], [0], [0], [1], [0, 0, 1, 1], [], []>} : vector<17x17xf32>, vector<17x32xf32>, vector<17x32xf32> -> vector<17x32xf32>
    %21 = vector.broadcast %19 : vector<17x1xf32> to vector<17x32xf32>
    %22 = arith.mulf %20, %21 : vector<17x32xf32>
    %23 = tpu.iota {dimensions = array<i32: 0>} : vector<17x1xi32>
    %c1_i32 = arith.constant 1 : i32
    %24 = vector.broadcast %c1_i32 : i32 to vector<17x1xi32>
    %25 = arith.cmpi sge, %23, %24 : vector<17x1xi32>
    %cst_15 = arith.constant 0.000000e+00 : f32
    %26 = vector.shape_cast %25 : vector<17x1xi1> to vector<17x1xi1>
    %27 = vector.broadcast %26 : vector<17x1xi1> to vector<17x32xi1>
    %28 = vector.broadcast %cst_15 : f32 to vector<17x32xf32>
    %29 = arith.select %27, %1, %28 : vector<17x32xi1>, vector<17x32xf32>
    %30 = arith.addf %22, %29 : vector<17x32xf32>
    %c0_16 = arith.constant 0 : index
    %c0_17 = arith.constant 0 : index
    %c0_18 = arith.constant 0 : index
    %31 = vector.load %arg5[%c0_16, %c0_17, %c0_18] : memref<1x17x32xf32, #tpu.memory_space<vmem>>, vector<1x17x32xf32>
    %32 = vector.shape_cast %31 : vector<1x17x32xf32> to vector<17x32xf32>
    %33 = vector.shape_cast %30 : vector<17x32xf32> to vector<1x17x32xf32>
    tpu.vector_store %arg5[%c0_16, %c0_17, %c0_18], %33 {strides = array<i32>} : memref<1x17x32xf32, #tpu.memory_space<vmem>>, vector<1x17x32xf32>,
    return
  }
  func.func @transform_0(%arg0: i32) -> (i32, i32, i32) {
    %c0_i32 = arith.constant 0 : i32
    %c0_i32_0 = arith.constant 0 : i32
    %c0_i32_1 = arith.constant 0 : i32
    return %arg0, %c0_i32, %c0_i32_0 : i32, i32, i32
  }
  func.func @transform_1(%arg0: i32) -> (i32, i32, i32) {
    %c0_i32 = arith.constant 0 : i32
    %c0_i32_0 = arith.constant 0 : i32
    %c0_i32_1 = arith.constant 0 : i32
    return %arg0, %c0_i32, %c0_i32_0 : i32, i32, i32
  }
  func.func @transform_2(%arg0: i32) -> (i32, i32, i32) {
    %c0_i32 = arith.constant 0 : i32
    %c0_i32_0 = arith.constant 0 : i32
    %c0_i32_1 = arith.constant 0 : i32
    return %arg0, %c0_i32, %c0_i32_0 : i32, i32, i32
  }
  func.func @transform_3(%arg0: i32) -> (i32, i32, i32) {
    %c0_i32 = arith.constant 0 : i32
    %c0_i32_0 = arith.constant 0 : i32
    %c0_i32_1 = arith.constant 0 : i32
    return %arg0, %c0_i32, %c0_i32_0 : i32, i32, i32
  }
  func.func @transform_4(%arg0: i32) -> (i32, i32, i32) {
    %c0_i32 = arith.constant 0 : i32
    %c0_i32_0 = arith.constant 0 : i32
    %c0_i32_1 = arith.constant 0 : i32
    return %arg0, %c0_i32, %c0_i32_0 : i32, i32, i32
  }
}

module attributes {stable_mosaic.version = 11 : i64} {
  func.func @_linear_kernel(%arg0: i32, %arg1: memref<34x512xbf16, #tpu.memory_space<vmem>>, %arg2: memref<512x128xbf16, #tpu.memory_space<vmem>>, %arg3: memref<1x128xf32, #tpu.memory_space<vmem>>, %arg4: memref<34x128xf32, #tpu.memory_space<vmem>>) attributes {dimension_semantics = [#tpu.dimension_semantics<parallel>], iteration_bounds = array<i64: 1>, scalar_prefetch = 0 : i64, scratch_operands = 0 : i64, tpu.core_type = #tpu.core_type<tc>, window_params = [{pipeline_mode = #tpu.pipeline_mode<synchronous>, transform_indices = @transform_0, window_bounds = array<i64: 34, 512>}, {transform_indices = @transform_1, window_bounds = array<i64: 512, 128>}, {transform_indices = @transform_2, window_bounds = array<i64: 1, 128>}, {transform_indices = @transform_3, window_bounds = array<i64: 34, 128>}]} {
    %c0 = arith.constant 0 : index
    %c0_0 = arith.constant 0 : index
    %0 = vector.load %arg1[%c0, %c0_0] : memref<34x512xbf16, #tpu.memory_space<vmem>>, vector<34x512xbf16>
    %c0_1 = arith.constant 0 : index
    %c0_2 = arith.constant 0 : index
    %1 = vector.load %arg2[%c0_1, %c0_2] : memref<512x128xbf16, #tpu.memory_space<vmem>>, vector<512x128xbf16>
    %cst = arith.constant dense<0.000000e+00> : vector<34x128xf32>
    %2 = tpu.matmul %0, %1, %cst {dimension_numbers = #tpu.dot_dimension_numbers<[1], [0], [0], [1], [0, 0, 1, 1], [], []>} : vector<34x512xbf16>, vector<512x128xbf16>, vector<34x128xf32> -> vector<34x128xf32>
    %c0_3 = arith.constant 0 : index
    %c0_4 = arith.constant 0 : index
    %3 = vector.load %arg3[%c0_3, %c0_4] : memref<1x128xf32, #tpu.memory_space<vmem>>, vector<1x128xf32>
    %4 = vector.broadcast %3 : vector<1x128xf32> to vector<34x128xf32>
    %5 = arith.addf %2, %4 : vector<34x128xf32>
    %c0_5 = arith.constant 0 : index
    %c0_6 = arith.constant 0 : index
    %6 = vector.load %arg4[%c0_5, %c0_6] : memref<34x128xf32, #tpu.memory_space<vmem>>, vector<34x128xf32>
    tpu.vector_store %arg4[%c0_5, %c0_6], %5 {strides = array<i32>} : memref<34x128xf32, #tpu.memory_space<vmem>>, vector<34x128xf32>,
    return
  }
  func.func @transform_0(%arg0: i32) -> (i32, i32) {
    %c0_i32 = arith.constant 0 : i32
    %c0_i32_0 = arith.constant 0 : i32
    %c0_i32_1 = arith.constant 0 : i32
    return %c0_i32, %c0_i32_0 : i32, i32
  }
  func.func @transform_1(%arg0: i32) -> (i32, i32) {
    %c0_i32 = arith.constant 0 : i32
    %c0_i32_0 = arith.constant 0 : i32
    return %c0_i32, %arg0 : i32, i32
  }
  func.func @transform_2(%arg0: i32) -> (i32, i32) {
    %c0_i32 = arith.constant 0 : i32
    %c0_i32_0 = arith.constant 0 : i32
    return %c0_i32, %arg0 : i32, i32
  }
  func.func @transform_3(%arg0: i32) -> (i32, i32) {
    %c0_i32 = arith.constant 0 : i32
    %c0_i32_0 = arith.constant 0 : i32
    return %c0_i32, %arg0 : i32, i32
  }
}

</mosaic_0001>

<bundles_post_ra>
// kernel: local_scale_feature_transformer_forward.100
= control target key start
LH: loop header
LB: loop body
LE: loop exit
PB: predicated region body
PF: predicated region fallthrough
CT: control target
= control target key end

     0   :  { %s273_s1 = inlined_call_operand.vmem [shape: bf16[128,128], index: 1, kind: input, shape index: {}]   ;;  %s274_s2 = inlined_call_operand.vmem [shape: f32[1,128], index: 2, kind: input, shape index: {}]   ;;  %s275_s0 = inlined_call_operand.vmem [shape: bf16[34,128], index: 0, kind: input, shape index: {}]   ;;  %s276_s3 = inlined_call_operand.vmem [shape: f32[34,128], index: 3, kind: output, shape index: {}]  }
   0x1   :  { %v184_v0 = vld [vmem:[%s273_s1 + $0x38] sm:$0xff]  ;;  %v183_v1 = vld [vmem:[%s273_s1 + $0x30] sm:$0xff]  ;;  %v182_v2 = vld [vmem:[%s273_s1 + $0x28] sm:$0xff] }
   0x2   :  { %103 = vmatpush.bf16.msra.mxu0 %v184_v0  ;;  %185 = vmatpush.bf16.msra.mxu1 %v184_v0  ;;  %v181_v3 = vld [vmem:[%s273_s1 + $0x20] sm:$0xff]  ;;  %v180_v4 = vld [vmem:[%s273_s1 + $0x18] sm:$0xff]  ;;  %v179_v5 = vld [vmem:[%s273_s1 + $0x10] sm:$0xff] }
   0x3   :  { %186 = vmatpush.bf16.msra.mxu2 %v184_v0  ;;  %v178_v6 = vld [vmem:[%s273_s1 + $0x8] sm:$0xff]  ;;  %v18_v7 = vld [vmem:[%s275_s0 + $0x10] sm:$0x1]  ;;  %v177_v8 = vld [vmem:[%s273_s1] sm:$0xff] }
   0x4   :  { %v48_v9 = vunpack.c.l.b16 %v18_v7  ;;  %v175_v10 = vld [vmem:[%s275_s0] sm:$0xff]  ;;  %v176_v11 = vld [vmem:[%s275_s0 + $0x8] sm:$0xff] }
   0x5   :  { %v201_v13 = vld [vmem:[%s274_s2] ss:$0 sm:$0xff] }
   0x6   :  { %104 = vmatpush.bf16.msra.mxu0 %v183_v1  ;;  %187 = vmatpush.bf16.msra.mxu1 %v183_v1  ;;  %v51_v12 = vpack.c.b16 %v48_v9, %v48_v9 }
   0x7   :  { %188 = vmatpush.bf16.msra.mxu2 %v183_v1 }
   0xa   :  { %105 = vmatpush.bf16.msra.mxu0 %v182_v2  ;;  %189 = vmatpush.bf16.msra.mxu1 %v182_v2 }
   0xb   :  { %190 = vmatpush.bf16.msra.mxu2 %v182_v2 }
   0xe   :  { %106 = vmatpush.bf16.msra.mxu0 %v181_v3  ;;  %191 = vmatpush.bf16.msra.mxu1 %v181_v3 }
   0xf   :  { %192 = vmatpush.bf16.msra.mxu2 %v181_v3 }
  0x12   :  { %107 = vmatpush.bf16.msra.mxu0 %v180_v4  ;;  %193 = vmatpush.bf16.msra.mxu1 %v180_v4 }
  0x13   :  { %194 = vmatpush.bf16.msra.mxu2 %v180_v4 }
  0x16   :  { %108 = vmatpush.bf16.msra.mxu0 %v179_v5  ;;  %195 = vmatpush.bf16.msra.mxu1 %v179_v5 }
  0x17   :  { %196 = vmatpush.bf16.msra.mxu2 %v179_v5 }
  0x1a   :  { %109 = vmatpush.bf16.msra.mxu0 %v178_v6  ;;  %197 = vmatpush.bf16.msra.mxu1 %v178_v6 }
  0x1b   :  { %198 = vmatpush.bf16.msra.mxu2 %v178_v6 }
  0x1e   :  { %110 = vmatpush.bf16.msra.mxu0 %v177_v8  ;;  %199 = vmatpush.bf16.msra.mxu1 %v177_v8 }
  0x1f   :  { %200 = vmatpush.bf16.msra.mxu2 %v177_v8 }
  0x21   :  { %111 = vmatmul.bf16.vlgmr.msra.gmra.mxu0 %v175_v10  ;;  %116 = vmatmul.bf16.vlgmr.msra.gmra.mxu1 %v176_v11 }
  0x22   :  { %121 = vmatmul.bf16.vlgmr.msra.gmra.mxu2 %v51_v12 }
  0x9e   :  { %v112_v14 = vpop.f32.mrf.mxu0  ;;  %v117_v15 = vpop.f32.mrf.mxu1 }
  0x9f   :  { %v113_v16 = vadd.f32 %v201_v13, %v112_v14  ;;  %v118_v17 = vadd.f32 %v201_v13, %v117_v15 }
  0xa1   :  { %126 = vst [vmem:[%s276_s3] sm:$0xff] %v113_v16 }
  0xa2   :  { %128 = vst [vmem:[%s276_s3 + $0x10] sm:$0xff] %v118_v17 }
  0xa5   :  { %v122_v18 = vpop.f32.mrf.mxu2 }
  0xa6   :  { %v123_v19 = vadd.f32 %v201_v13, %v122_v18  ;;  %v114_v20 = vpop.f32.mrf.mxu0  ;;  %v119_v21 = vpop.f32.mrf.mxu1 }
  0xa7   :  { %v115_v22 = vadd.f32 %v201_v13, %v114_v20  ;;  %v120_v23 = vadd.f32 %v201_v13, %v119_v21 }
  0xa8   :  { %130 = vst [vmem:[%s276_s3 + $0x20] sm:$0x3] %v123_v19 }
  0xa9   :  { %127 = vst [vmem:[%s276_s3 + $0x8] sm:$0xff] %v115_v22 }
  0xaa   :  { %129 = vst [vmem:[%s276_s3 + $0x18] sm:$0xff] %v120_v23 }
  0xad   :  { %v124_v24 = vpop.f32.mrf.mxu2 }

// kernel: local_scale_feature_transformer_forward.98
= control target key start
LH: loop header
LB: loop body
LE: loop exit
PB: predicated region body
PF: predicated region fallthrough
CT: control target
= control target key end

     0   :  { %vm27_vm0 = vcmask 1041408   ;;  %v171_v6 = vmov 128.0   ;;  %s250_s0 = inlined_call_operand.vmem [shape: f32[34,128], index: 0, kind: input, shape index: {}]   ;;  %s251_s1 = inlined_call_operand.vmem [shape: f32[1,128], index: 1, kind: input, shape index: {}]   ;;  %s252_s2 = inlined_call_operand.vmem [shape: f32[1,128], index: 2, kind: input, shape index: {}]   ;;  %s253_s3 = inlined_call_operand.vmem [shape: f32[34,128], index: 3, kind: output, shape index: {}]  }
   0x1   :  { %v15_v0 = vld [vmem:[%s250_s0 + $0x8] sm:$0xff]  ;;  %v18_v1 = vld [vmem:[%s250_s0 + $0x20] sm:$0x3]  ;;  %v17_v3 = vld [vmem:[%s250_s0 + $0x18] sm:$0xff]  ;;  %159 = vrcp.f32 %v171_v6 }
   0x2   :  { %21 = vadd.xlane.f32.xlu1 %v15_v0  ;;  %v28_v2 = vsel %vm27_vm0, %v18_v1, 0.0  ;;  %25 = vadd.xlane.f32.xlu2 %v17_v3  ;;  %v16_v4 = vld [vmem:[%s250_s0 + $0x10] sm:$0xff]  ;;  %v14_v5 = vld [vmem:[%s250_s0] sm:$0xff] }
   0x3   :  { %29 = vadd.xlane.f32.xlu0 %v28_v2  ;;  %v157_v59 = vld [vmem:[%s251_s1] ss:$0 sm:$0xff] }
   0x7   :  { %v160_v7 = vpop.eup %159 }
   0x8   :  { %v32_v8 = vmul.f32 128.0, %v160_v7  ;;  %vm36_vm1 = vweird.f32 %v160_v7 }
   0xa   :  { %23 = vadd.xlane.f32.xlu1 %v16_v4  ;;  %v33_v9 = vsub.f32 1.0, %v32_v8 }
   0xb   :  { %19 = vadd.xlane.f32.xlu0 %v14_v5 }
   0xc   :  { %v34_v10 = vmul.f32 %v160_v7, %v33_v9 }
   0xe   :  { %v35_v11 = vadd.f32 %v160_v7, %v34_v10 }
  0x10   :  { %v37_v12 = vsel %vm36_vm1, %v160_v7, %v35_v11 }
  0x75   :  { %v22_v13 = vpop.xlane.xlu1 %21  ;;  %v26_v23 = vpop.xlane.xlu2 %25 }
  0x76   :  { %v39_v14 = vmul.f32 %v37_v12, %v22_v13  ;;  %v30_v15 = vpop.xlane.xlu0 %29  ;;  %v41_v28 = vmul.f32 %v37_v12, %v26_v23 }
  0x77   :  { %v42_v16 = vmul.f32 %v37_v12, %v30_v15 }
  0x78   :  { %v44_v17 = vsub.f32 %v15_v0, %v39_v14  ;;  %v221_v32 = vsub.f32 %v17_v3, %v41_v28  ;;  %v158_v0 = vld [vmem:[%s252_s2] ss:$0 sm:$0xff] }
  0x79   :  { %v208_v19 = vsub.f32 %v18_v1, %v42_v16 }
  0x7a   :  { %v49_v18 = vmul.f32 %v44_v17, %v44_v17  ;;  %v51_v33 = vmul.f32 %v221_v32, %v221_v32 }
  0x7b   :  { %v52_v25 = vmul.f32 %v208_v19, %v208_v19 }
  0x7c   :  { %55 = vadd.xlane.f32.xlu0 %v49_v18 }
  0x7d   :  { %v24_v20 = vpop.xlane.xlu1 %23  ;;  %v61_v30 = vsel %vm27_vm0, %v52_v25, 0.0 }
  0x7e   :  { %v40_v21 = vmul.f32 %v37_v12, %v24_v20  ;;  %v20_v22 = vpop.xlane.xlu0 %19 }
  0x7f   :  { %v38_v24 = vmul.f32 %v37_v12, %v20_v22 }
  0x80   :  { %v212_v26 = vsub.f32 %v16_v4, %v40_v21 }
  0x81   :  { %v214_v27 = vsub.f32 %v14_v5, %v38_v24 }
  0x82   :  { %v50_v29 = vmul.f32 %v212_v26, %v212_v26 }
  0x83   :  { %v48_v31 = vmul.f32 %v214_v27, %v214_v27 }
  0x84   :  { %57 = vadd.xlane.f32.xlu1 %v50_v29  ;;  %62 = vadd.xlane.f32.xlu0 %v61_v30 }
  0x85   :  { %53 = vadd.xlane.f32.xlu2 %v48_v31 }
  0x8d   :  { %59 = vadd.xlane.f32.xlu2 %v51_v33 }
  0xef   :  { %v56_v34 = vpop.xlane.xlu0 %55 }
  0xf0   :  { %v65_v35 = vmul.f32 %v56_v34, %v37_v12 }
  0xf2   :  { %v70_v36 = vadd.f32 1e-05, %v65_v35 }
  0xf4   :  { %161 = vrsqrt.f32 %v70_v36  ;;  %vm90_vm2 = vweird.f32 %v70_v36 }
  0xf7   :  { %v58_v37 = vpop.xlane.xlu1 %57  ;;  %v63_v38 = vpop.xlane.xlu0 %62 }
  0xf8   :  { %v66_v39 = vmul.f32 %v58_v37, %v37_v12  ;;  %v68_v40 = vmul.f32 %v63_v38, %v37_v12  ;;  %v54_v41 = vpop.xlane.xlu2 %53 }
  0xf9   :  { %v64_v42 = vmul.f32 %v54_v41, %v37_v12 }
  0xfa   :  { %v162_v43 = vpop.eup %161  ;;  %v71_v44 = vadd.f32 1e-05, %v66_v39  ;;  %v73_v45 = vadd.f32 1e-05, %v68_v40 }
  0xfb   :  { %v85_v46 = vmul.f32 %v162_v43, %v70_v36  ;;  %v69_v47 = vadd.f32 1e-05, %v64_v42  ;;  %vm91_vm3 = vweird.f32 %v162_v43 }
  0xfc   :  { %163 = vrsqrt.f32 %v71_v44  ;;  %vm92_vm4 = vmor %vm90_vm2, %vm91_vm3  ;;  %vm100_vm5 = vweird.f32 %v71_v44  ;;  %vm120_vm10 = vweird.f32 %v73_v45 }
  0xfd   :  { %v86_v48 = vmul.f32 %v162_v43, %v85_v46  ;;  %165 = vrsqrt.f32 %v73_v45  ;;  %vm80_vm12 = vweird.f32 %v69_v47 }
  0xfe   :  { %167 = vrsqrt.f32 %v69_v47 }
  0xff   :  { %v87_v49 = vmul.f32 0.5, %v86_v48 }
 0x100   :  { %v60_v50 = vpop.xlane.xlu2 %59 }
 0x101   :  { %v88_v51 = vsub.f32 1.5, %v87_v49  ;;  %v67_v52 = vmul.f32 %v60_v50, %v37_v12 }
 0x102   :  { %v164_v53 = vpop.eup %163 }
 0x103   :  { %v166_v54 = vpop.eup %165  ;;  %v89_v55 = vmul.f32 %v162_v43, %v88_v51  ;;  %v95_v56 = vmul.f32 %v164_v53, %v71_v44  ;;  %v72_v57 = vadd.f32 1e-05, %v67_v52  ;;  %vm101_vm6 = vweird.f32 %v164_v53 }
 0x104   :  { %v168_v58 = vpop.eup %167  ;;  %v115_v60 = vmul.f32 %v166_v54, %v73_v45  ;;  %vm121_vm7 = vweird.f32 %v166_v54  ;;  %vm102_vm9 = vmor %vm100_vm5, %vm101_vm6 }
 0x105   :  { %v93_v61 = vsel %vm92_vm4, %v162_v43, %v89_v55  ;;  %v96_v62 = vmul.f32 %v164_v53, %v95_v56  ;;  %v75_v63 = vmul.f32 %v168_v58, %v69_v47  ;;  %169 = vrsqrt.f32 %v72_v57  ;;  %vm122_vm11 = vmor %vm120_vm10, %vm121_vm7 }
 0x106   :  { %v125_v1 = vmul.f32 %v93_v61, %v44_v17  ;;  %v116_v2 = vmul.f32 %v166_v54, %v115_v60  ;;  %vm81_vm8 = vweird.f32 %v168_v58  ;;  %vm110_vm15 = vweird.f32 %v72_v57 }
 0x107   :  { %v97_v3 = vmul.f32 0.5, %v96_v62  ;;  %v76_v4 = vmul.f32 %v168_v58, %v75_v63  ;;  %vm82_vm13 = vmor %vm80_vm12, %vm81_vm8 }
 0x108   :  { %v134_v5 = vmul.f32 %v157_v59, %v125_v1  ;;  %v117_v6 = vmul.f32 0.5, %v116_v2 }
 0x109   :  { %v98_v7 = vsub.f32 1.5, %v97_v3  ;;  %v77_v8 = vmul.f32 0.5, %v76_v4 }
 0x10a   :  { %v143_v9 = vadd.f32 %v158_v0, %v134_v5  ;;  %v118_v10 = vsub.f32 1.5, %v117_v6 }
 0x10b   :  { %v99_v11 = vmul.f32 %v164_v53, %v98_v7  ;;  %v78_v12 = vsub.f32 1.5, %v77_v8  ;;  %v170_v13 = vpop.eup %169 }
 0x10c   :  { %148 = vst [vmem:[%s253_s3 + $0x8] sm:$0xff] %v143_v9  ;;  %v119_v14 = vmul.f32 %v166_v54, %v118_v10  ;;  %v105_v17 = vmul.f32 %v170_v13, %v72_v57  ;;  %vm111_vm14 = vweird.f32 %v170_v13 }
 0x10d   :  { %v103_v15 = vsel %vm102_vm9, %v164_v53, %v99_v11  ;;  %v79_v16 = vmul.f32 %v168_v58, %v78_v12  ;;  %vm112_vm0 = vmor %vm110_vm15, %vm111_vm14 }
 0x10e   :  { %v126_v18 = vmul.f32 %v103_v15, %v212_v26  ;;  %v123_v20 = vsel %vm122_vm11, %v166_v54, %v119_v14  ;;  %v106_v23 = vmul.f32 %v170_v13, %v105_v17 }
 0x10f   :  { %v128_v21 = vmul.f32 %v123_v20, %v208_v19  ;;  %v83_v22 = vsel %vm82_vm13, %v168_v58, %v79_v16 }
 0x110   :  { %v135_v24 = vmul.f32 %v157_v59, %v126_v18  ;;  %v124_v25 = vmul.f32 %v83_v22, %v214_v27  ;;  %v107_v29 = vmul.f32 0.5, %v106_v23 }
 0x111   :  { %v137_v28 = vmul.f32 %v157_v59, %v128_v21 }
 0x112   :  { %v144_v30 = vadd.f32 %v158_v0, %v135_v24  ;;  %v133_v31 = vmul.f32 %v157_v59, %v124_v25  ;;  %v108_v34 = vsub.f32 1.5, %v107_v29 }
 0x113   :  { %v146_v33 = vadd.f32 %v158_v0, %v137_v28 }
 0x114   :  { %149 = vst [vmem:[%s253_s3 + $0x10] sm:$0xff] %v144_v30  ;;  %v142_v26 = vadd.f32 %v158_v0, %v133_v31  ;;  %v109_v19 = vmul.f32 %v170_v13, %v108_v34 }
 0x115   :  { %151 = vst [vmem:[%s253_s3 + $0x20] sm:$0x3] %v146_v33 }
 0x116   :  { %147 = vst [vmem:[%s253_s3] sm:$0xff] %v142_v26  ;;  %v113_v27 = vsel %vm112_vm0, %v170_v13, %v109_v19 }
 0x117   :  { %v127_v35 = vmul.f32 %v113_v27, %v221_v32 }
 0x119   :  { %v136_v36 = vmul.f32 %v157_v59, %v127_v35 }
 0x11b   :  { %v145_v37 = vadd.f32 %v158_v0, %v136_v36 }
 0x11d   :  { %150 = vst [vmem:[%s253_s3 + $0x18] sm:$0xff] %v145_v37 }

// kernel: local_scale_feature_transformer_forward.101
= control target key start
LH: loop header
LB: loop body
LE: loop exit
PB: predicated region body
PF: predicated region fallthrough
CT: control target
= control target key end

     0   :  { %s442_s9 = smov 0   ;;  %s574_s0 = inlined_call_operand.vmem [shape: f32[8,6,6,32], index: 0, kind: input, shape index: {}]   ;;  %s575_s1 = inlined_call_operand.vmem [shape: f32[9,1,32], index: 1, kind: input, shape index: {}]   ;;  %s576_s2 = inlined_call_operand.vmem [shape: f32[8,4,4,32], index: 2, kind: output, shape index: {}]  }
   0x1 LB: > { %s358_s10 = sadd.s32 4294967295, %s425_s9   ;;  %p362_p0 = scmp.ge.s32.totalorder %s425_s9, 1  ;;  %s425_s9 = sphi %s442_s9, %s12_s9  }
   0x2   : > { %p112_p1 = scmp.lt.s32.totalorder %s425_s9, 9 }
   0x4   : > { %p113_p2 = pnand %p362_p0, %p112_p1 }
   0x5   : > { %p134_p3 = scmp.lt.s32.totalorder (!%p113_p2), %s358_s10, 7 }
   0x6   : > { %116 = sbr.rel (%p113_p2) target bundleno = 42 (0x2a), region = 28 }
   0xb   : > { %s578_s10 = smov (!%p134_p3, %s358_s10), 7  ;;  %v410_v0 = vld [vmem:[%s575_s1] ss:$0 sm:$0xff]  ;;  %v411_v1 = vld [vmem:[%s575_s1 + $0x1] ss:$0 sm:$0xff]  ;;  %vm298_vm0 = vcmask 257024  }
   0xc   : > { %s401_s15 = smul.u32 48, %s578_s10  ;;  %v462_v2 = vld [vmem:[%s575_s1 + $0x2] ss:$0 sm:$0xff]  ;;  %v472_v3 = vld [vmem:[%s575_s1 + $0x3] ss:$0 sm:$0xff]  ;;  %s400_s5 = sshll.u32 %s578_s10, 4 }
   0xd   : > { %v482_v11 = vld [vmem:[%s575_s1 + $0x4] ss:$0 sm:$0xff]  ;;  %v489_v14 = vld [vmem:[%s575_s1 + $0x5] ss:$0 sm:$0xff]  ;;  %v498_v20 = vld [vmem:[%s575_s1 + $0x6] ss:$0 sm:$0xff]  ;;  %s143_s8 = scalar_lea.vmem %s576_s2, %s400_s5 }
   0xe   : > { %s467_s20 = scalar_lea.vmem %s574_s0, %s401_s15  ;;  %v503_v21 = vld [vmem:[%s575_s1 + $0x7] ss:$0 sm:$0xff]  ;;  %v523_v44 = vld [vmem:[%s575_s1 + $0x8] ss:$0 sm:$0xff] }
   0xf   : > { %v144_v4 = vld [vmem:[%s467_s20] sm:$0xf]  ;;  %v368_v10 = vld [vmem:[%s467_s20 + $0x8] sm:$0xf]  ;;  %v369_v25 = vld [vmem:[%s467_s20 + $0x10] sm:$0xf] }
  0x10   : > { %v160_v5 = vld [vmem:[%s467_s20 + $0x1] sm:$0xf]  ;;  %v152_v7 = vmul.f32 %v410_v0, %v144_v4  ;;  %v373_v12 = vld [vmem:[%s467_s20 + $0x9] sm:$0xf]  ;;  %v204_v16 = vmul.f32 %v472_v3, %v368_v10  ;;  %v383_v28 = vld [vmem:[%s467_s20 + $0x10] sm:$0xf]  ;;  %v205_v33 = vmul.f32 %v472_v3, %v369_v25 }
  0x11   : > { %v177_v6 = vld [vmem:[%s467_s20 + $0x2] sm:$0xf]  ;;  %v169_v8 = vmul.f32 %v411_v1, %v160_v5  ;;  %v378_v13 = vld [vmem:[%s467_s20 + $0xa] sm:$0xf]  ;;  %v221_v27 = vmul.f32 %v482_v11, %v373_v12  ;;  %v388_v29 = vld [vmem:[%s467_s20 + $0x11] sm:$0xf]  ;;  %v256_v43 = vmul.f32 %v498_v20, %v383_v28 }
  0x12   : > { %v186_v9 = vmul.f32 %v462_v2, %v177_v6  ;;  %v145_v17 = vld [vmem:[%s467_s20 + $0x8] sm:$0xf]  ;;  %v374_v30 = vld [vmem:[%s467_s20 + $0x11] sm:$0xf]  ;;  %v238_v31 = vmul.f32 %v489_v14, %v378_v13  ;;  %v370_v42 = vld [vmem:[%s467_s20 + $0x18] sm:$0xf]  ;;  %v273_v50 = vmul.f32 %v503_v21, %v388_v29 }
  0x13   : > { %v173_v15 = vadd.f32 %v169_v8, %v152_v7  ;;  %v161_v18 = vld [vmem:[%s467_s20 + $0x9] sm:$0xf]  ;;  %v153_v22 = vmul.f32 %v410_v0, %v145_v17  ;;  %v146_v34 = vld [vmem:[%s467_s20 + $0x10] sm:$0xf]  ;;  %v222_v46 = vmul.f32 %v482_v11, %v374_v30  ;;  %v384_v47 = vld [vmem:[%s467_s20 + $0x18] sm:$0xf]  ;;  %v206_v52 = vmul.f32 %v472_v3, %v370_v42 }
  0x14   : > { %v178_v19 = vld [vmem:[%s467_s20 + $0xa] sm:$0xf]  ;;  %v170_v23 = vmul.f32 %v411_v1, %v161_v18  ;;  %v162_v35 = vld [vmem:[%s467_s20 + $0x11] sm:$0xf]  ;;  %v154_v39 = vmul.f32 %v410_v0, %v146_v34  ;;  %v375_v48 = vld [vmem:[%s467_s20 + $0x19] sm:$0xf]  ;;  %v257_v10 = vmul.f32 %v498_v20, %v384_v47 }
  0x15   : > { %v187_v24 = vmul.f32 %v462_v2, %v178_v19  ;;  %v190_v26 = vadd.f32 %v186_v9, %v173_v15  ;;  %v179_v36 = vld [vmem:[%s467_s20 + $0x12] sm:$0xf]  ;;  %v171_v40 = vmul.f32 %v411_v1, %v162_v35  ;;  %v147_v53 = vld [vmem:[%s467_s20 + $0x18] sm:$0xf]  ;;  %v371_v62 = vld [vmem:[%s467_s20 + $0x20] sm:$0xf]  ;;  %v223_v6 = vmul.f32 %v482_v11, %v375_v48 }
  0x16   : > { %v174_v32 = vadd.f32 %v170_v23, %v153_v22  ;;  %v379_v38 = vld [vmem:[%s467_s20 + $0x12] sm:$0xf]  ;;  %v188_v41 = vmul.f32 %v462_v2, %v179_v36  ;;  %v163_v54 = vld [vmem:[%s467_s20 + $0x19] sm:$0xf]  ;;  %v155_v60 = vmul.f32 %v410_v0, %v147_v53  ;;  %v376_v8 = vld [vmem:[%s467_s20 + $0x21] sm:$0xf]  ;;  %v207_v0 = vmul.f32 %v472_v3, %v371_v62 }
  0x17   : > { %v208_v37 = vadd.f32 %v204_v16, %v190_v26  ;;  %v175_v51 = vadd.f32 %v171_v40, %v154_v39  ;;  %v180_v55 = vld [vmem:[%s467_s20 + $0x1a] sm:$0xf]  ;;  %v393_v56 = vld [vmem:[%s467_s20 + $0x12] sm:$0xf]  ;;  %v239_v58 = vmul.f32 %v489_v14, %v379_v38  ;;  %v172_v61 = vmul.f32 %v411_v1, %v163_v54  ;;  %v385_v12 = vld [vmem:[%s467_s20 + $0x20] sm:$0xf] }
  0x18   : > { %v191_v45 = vadd.f32 %v187_v24, %v174_v32  ;;  %v380_v59 = vld [vmem:[%s467_s20 + $0x1a] sm:$0xf]  ;;  %v189_v7 = vmul.f32 %v462_v2, %v180_v55  ;;  %v290_v15 = vmul.f32 %v523_v44, %v393_v56  ;;  %v381_v2 = vld [vmem:[%s467_s20 + $0x22] sm:$0xf]  ;;  %v224_v25 = vmul.f32 %v482_v11, %v376_v8  ;;  %v386_v28 = vld [vmem:[%s467_s20 + $0x28] sm:$0xf] }
  0x19   : > { %v225_v49 = vadd.f32 %v221_v27, %v208_v37  ;;  %v389_v4 = vld [vmem:[%s467_s20 + $0x19] sm:$0xf]  ;;  %v192_v5 = vadd.f32 %v188_v41, %v175_v51  ;;  %v176_v13 = vadd.f32 %v172_v61, %v155_v60  ;;  %v240_v18 = vmul.f32 %v489_v14, %v380_v59  ;;  %v390_v23 = vld [vmem:[%s467_s20 + $0x21] sm:$0xf]  ;;  %v391_v36 = vld [vmem:[%s467_s20 + $0x29] sm:$0xf] }
  0x1a   : > { %v209_v57 = vadd.f32 %v205_v33, %v191_v45  ;;  %v394_v16 = vld [vmem:[%s467_s20 + $0x1a] sm:$0xf]  ;;  %v274_v22 = vmul.f32 %v503_v21, %v389_v4  ;;  %v258_v27 = vmul.f32 %v498_v20, %v385_v12  ;;  %v241_v33 = vmul.f32 %v489_v14, %v381_v2  ;;  %v396_v42 = vld [vmem:[%s467_s20 + $0x2a] sm:$0xf] }
  0x1b   : > { %v242_v63 = vadd.f32 %v238_v31, %v225_v49  ;;  %v210_v17 = vadd.f32 %v206_v52, %v192_v5  ;;  %v193_v24 = vadd.f32 %v189_v7, %v176_v13  ;;  %v291_v30 = vmul.f32 %v523_v44, %v394_v16  ;;  %v395_v31 = vld [vmem:[%s467_s20 + $0x22] sm:$0xf] }
  0x1c   : > { %v226_v9 = vadd.f32 %v222_v46, %v209_v57  ;;  %v275_v35 = vmul.f32 %v503_v21, %v390_v23  ;;  %v259_v39 = vmul.f32 %v498_v20, %v386_v28  ;;  %v292_v41 = vmul.f32 %v523_v44, %v395_v31 }
  0x1d   : > { %v260_v1 = vadd.f32 %v256_v43, %v242_v63  ;;  %v227_v26 = vadd.f32 %v223_v6, %v210_v17  ;;  %v211_v32 = vadd.f32 %v207_v0, %v193_v24  ;;  %v276_v46 = vmul.f32 %v503_v21, %v391_v36 }
  0x1e   : > { %v243_v19 = vadd.f32 %v239_v58, %v226_v9  ;;  %v293_v48 = vmul.f32 %v523_v44, %v396_v42 }
  0x1f   : > { %v277_v3 = vadd.f32 %v273_v50, %v260_v1  ;;  %v244_v11 = vadd.f32 %v240_v18, %v227_v26  ;;  %v228_v38 = vadd.f32 %v224_v25, %v211_v32 }
  0x20   : > { %v261_v29 = vadd.f32 %v257_v10, %v243_v19 }
  0x21   : > { %v294_v34 = vadd.f32 %v290_v15, %v277_v3  ;;  %v262_v40 = vadd.f32 %v258_v27, %v244_v11  ;;  %v245_v45 = vadd.f32 %v241_v33, %v228_v38 }
  0x22   : > { %v278_v37 = vadd.f32 %v274_v22, %v261_v29 }
  0x23   : > { %299 = vst.msk [vmem:[%s143_s8] sm:$0xf] %vm298_vm0, %v294_v34  ;;  %v279_v14 = vadd.f32 %v275_v35, %v262_v40  ;;  %v263_v47 = vadd.f32 %v259_v39, %v245_v45 }
  0x24   : > { %v295_v43 = vadd.f32 %v291_v30, %v278_v37 }
  0x25   : > { %v296_v49 = vadd.f32 %v292_v41, %v279_v14  ;;  %v280_v50 = vadd.f32 %v276_v46, %v263_v47 }
  0x26   : > { %300 = vst.msk [vmem:[%s143_s8 + $0x4] sm:$0xf] %vm298_vm0, %v295_v43 }
  0x27   : > { %301 = vst.msk [vmem:[%s143_s8 + $0x8] sm:$0xf] %vm298_vm0, %v296_v49  ;;  %v297_v20 = vadd.f32 %v293_v48, %v280_v50 }
  0x29   : > { %302 = vst.msk [vmem:[%s143_s8 + $0xc] sm:$0xf] %vm298_vm0, %v297_v20 }
  0x2a PF: > { %s12_s9 = sadd.s32 1, %s425_s9  }
  0x2b   : > { %p9_p4 = scmp.ge.s32.totalorder %s12_s9, 10  }
  0x2d   :  { %11 = sbr.rel (!%p9_p4) target bundleno = 1 (0x1), region = 68 }

// kernel: local_scale_feature_transformer_forward.102
= control target key start
LH: loop header
LB: loop body
LE: loop exit
PB: predicated region body
PF: predicated region fallthrough
CT: control target
= control target key end

     0   :  { %vm31_vm0 = vcmask 261120   ;;  %v515_v34 = vmov 32.0   ;;  %s1091_s0 = inlined_call_operand.vmem [shape: f32[136,32], index: 0, kind: input, shape index: {}]   ;;  %s1092_s1 = inlined_call_operand.vmem [shape: f32[1,32], index: 1, kind: input, shape index: {}]   ;;  %s1093_s2 = inlined_call_operand.vmem [shape: f32[1,32], index: 2, kind: input, shape index: {}]   ;;  %s1094_s3 = inlined_call_operand.vmem [shape: f32[136,32], index: 3, kind: output, shape index: {}]  }
   0x1   :  { %v539_v0 = vld [vmem:[%s1091_s0 + $0x20] sm:$0xff]  ;;  %v544_v1 = vld [vmem:[%s1091_s0 + $0x10] sm:$0xff]  ;;  %v560_v6 = vld [vmem:[%s1091_s0 + $0x28] sm:$0xff]  ;;  %479 = vrcp.f32 %v515_v34 }
   0x2   :  { %v549_v2 = vld [vmem:[%s1091_s0] sm:$0xff]  ;;  %v44_v3 = vsel %vm31_vm0, %v539_v0, 0.0  ;;  %v38_v4 = vsel %vm31_vm0, %v544_v1, 0.0  ;;  %v565_v7 = vld [vmem:[%s1091_s0 + $0x18] sm:$0xff]  ;;  %v570_v8 = vld [vmem:[%s1091_s0 + $0x8] sm:$0xff]  ;;  %v47_v9 = vsel %vm31_vm0, %v560_v6, 0.0 }
   0x3   :  { %v32_v5 = vsel %vm31_vm0, %v549_v2, 0.0  ;;  %45 = vadd.xlane.f32.xlu2 %v44_v3  ;;  %39 = vadd.xlane.f32.xlu1 %v38_v4  ;;  %v41_v10 = vsel %vm31_vm0, %v565_v7, 0.0  ;;  %v35_v11 = vsel %vm31_vm0, %v570_v8, 0.0  ;;  %v581_v12 = vld [vmem:[%s1091_s0 + $0x40] sm:$0xff]  ;;  %v586_v13 = vld [vmem:[%s1091_s0 + $0x38] sm:$0xff]  ;;  %v591_v14 = vld [vmem:[%s1091_s0 + $0x30] sm:$0xff] }
   0x4   :  { %33 = vadd.xlane.f32.xlu0 %v32_v5  ;;  %v56_v15 = vsel %vm31_vm0, %v581_v12, 0.0  ;;  %v53_v16 = vsel %vm31_vm0, %v586_v13, 0.0  ;;  %v50_v17 = vsel %vm31_vm0, %v591_v14, 0.0  ;;  %v602_v18 = vld [vmem:[%s1091_s0 + $0x58] sm:$0xff]  ;;  %v607_v19 = vld [vmem:[%s1091_s0 + $0x50] sm:$0xff]  ;;  %v612_v20 = vld [vmem:[%s1091_s0 + $0x48] sm:$0xff] }
   0x5   :  { %v65_v21 = vsel %vm31_vm0, %v602_v18, 0.0  ;;  %v62_v22 = vsel %vm31_vm0, %v607_v19, 0.0  ;;  %v59_v23 = vsel %vm31_vm0, %v612_v20, 0.0  ;;  %v623_v24 = vld [vmem:[%s1091_s0 + $0x70] sm:$0xff]  ;;  %v628_v25 = vld [vmem:[%s1091_s0 + $0x68] sm:$0xff]  ;;  %v633_v26 = vld [vmem:[%s1091_s0 + $0x60] sm:$0xff] }
   0x6   :  { %v74_v27 = vsel %vm31_vm0, %v623_v24, 0.0  ;;  %v71_v28 = vsel %vm31_vm0, %v628_v25, 0.0  ;;  %v68_v29 = vsel %vm31_vm0, %v633_v26, 0.0  ;;  %v644_v30 = vld [vmem:[%s1091_s0 + $0x80] sm:$0xff]  ;;  %v649_v31 = vld [vmem:[%s1091_s0 + $0x78] sm:$0xff] }
   0x7   :  { %v80_v32 = vsel %vm31_vm0, %v644_v30, 0.0  ;;  %v77_v33 = vsel %vm31_vm0, %v649_v31, 0.0  ;;  %v480_v35 = vpop.eup %479 }
   0x8   :  { %v84_v36 = vmul.f32 32.0, %v480_v35  ;;  %vm88_vm1 = vweird.f32 %v480_v35 }
   0xa   :  { %v85_v37 = vsub.f32 1.0, %v84_v36 }
   0xb   :  { %48 = vadd.xlane.f32.xlu2 %v47_v9  ;;  %42 = vadd.xlane.f32.xlu1 %v41_v10 }
   0xc   :  { %36 = vadd.xlane.f32.xlu0 %v35_v11  ;;  %v86_v38 = vmul.f32 %v480_v35, %v85_v37 }
   0xe   :  { %v87_v39 = vadd.f32 %v480_v35, %v86_v38 }
  0x10   :  { %v655_v40 = vsel %vm88_vm1, %v480_v35, %v87_v39 }
  0x13   :  { %57 = vadd.xlane.f32.xlu2 %v56_v15  ;;  %54 = vadd.xlane.f32.xlu1 %v53_v16 }
  0x14   :  { %51 = vadd.xlane.f32.xlu0 %v50_v17 }
  0x1b   :  { %66 = vadd.xlane.f32.xlu2 %v65_v21  ;;  %63 = vadd.xlane.f32.xlu1 %v62_v22 }
  0x1c   :  { %60 = vadd.xlane.f32.xlu0 %v59_v23 }
  0x23   :  { %75 = vadd.xlane.f32.xlu2 %v74_v27  ;;  %72 = vadd.xlane.f32.xlu1 %v71_v28 }
  0x24   :  { %69 = vadd.xlane.f32.xlu0 %v68_v29 }
  0x2b   :  { %81 = vadd.xlane.f32.xlu1 %v80_v32 }
  0x2c   :  { %78 = vadd.xlane.f32.xlu0 %v77_v33 }
  0x76   :  { %v46_v41 = vpop.xlane.xlu2 %45  ;;  %v40_v42 = vpop.xlane.xlu1 %39 }
  0x77   :  { %v92_v43 = vmul.f32 %v655_v40, %v40_v42  ;;  %v34_v44 = vpop.xlane.xlu0 %33  ;;  %v94_v57 = vmul.f32 %v655_v40, %v46_v41 }
  0x78   :  { %v90_v45 = vmul.f32 %v655_v40, %v34_v44 }
  0x79   :  { %v660_v46 = vsub.f32 %v544_v1, %v92_v43  ;;  %v689_v1 = vsub.f32 %v539_v0, %v94_v57 }
  0x7a   :  { %v663_v47 = vsub.f32 %v549_v2, %v90_v45 }
  0x7b   :  { %v126_v48 = vmul.f32 %v660_v46, %v660_v46  ;;  %v128_v11 = vmul.f32 %v689_v1, %v689_v1 }
  0x7c   :  { %v124_v49 = vmul.f32 %v663_v47, %v663_v47 }
  0x7d   :  { %v147_v50 = vsel %vm31_vm0, %v126_v48, 0.0  ;;  %v153_v22 = vsel %vm31_vm0, %v128_v11, 0.0 }
  0x7e   :  { %v49_v51 = vpop.xlane.xlu2 %48  ;;  %148 = vadd.xlane.f32.xlu1 %v147_v50  ;;  %v43_v52 = vpop.xlane.xlu1 %42  ;;  %v141_v53 = vsel %vm31_vm0, %v124_v49, 0.0 }
  0x7f   :  { %v95_v54 = vmul.f32 %v655_v40, %v49_v51  ;;  %v93_v55 = vmul.f32 %v655_v40, %v43_v52  ;;  %142 = vadd.xlane.f32.xlu2 %v141_v53  ;;  %v37_v56 = vpop.xlane.xlu0 %36 }
  0x80   :  { %v91_v58 = vmul.f32 %v655_v40, %v37_v56 }
  0x81   :  { %v676_v59 = vsub.f32 %v560_v6, %v95_v54  ;;  %v679_v60 = vsub.f32 %v565_v7, %v93_v55 }
  0x82   :  { %v682_v61 = vsub.f32 %v570_v8, %v91_v58 }
  0x83   :  { %v129_v62 = vmul.f32 %v676_v59, %v676_v59  ;;  %v127_v63 = vmul.f32 %v679_v60, %v679_v60 }
  0x84   :  { %v125_v2 = vmul.f32 %v682_v61, %v682_v61 }
  0x85   :  { %v156_v3 = vsel %vm31_vm0, %v129_v62, 0.0  ;;  %v150_v4 = vsel %vm31_vm0, %v127_v63, 0.0 }
  0x86   :  { %v58_v5 = vpop.xlane.xlu2 %57  ;;  %157 = vadd.xlane.f32.xlu1 %v156_v3  ;;  %v144_v6 = vsel %vm31_vm0, %v125_v2, 0.0  ;;  %v55_v7 = vpop.xlane.xlu1 %54 }
  0x87   :  { %v98_v8 = vmul.f32 %v655_v40, %v58_v5  ;;  %151 = vadd.xlane.f32.xlu2 %v150_v4  ;;  %145 = vadd.xlane.f32.xlu0 %v144_v6  ;;  %v52_v9 = vpop.xlane.xlu0 %51  ;;  %v97_v10 = vmul.f32 %v655_v40, %v55_v7 }
  0x88   :  { %v96_v0 = vmul.f32 %v655_v40, %v52_v9 }
  0x89   :  { %v702_v15 = vsub.f32 %v581_v12, %v98_v8  ;;  %v710_v21 = vsub.f32 %v586_v13, %v97_v10 }
  0x8a   :  { %v705_v16 = vsub.f32 %v591_v14, %v96_v0 }
  0x8b   :  { %v132_v17 = vmul.f32 %v702_v15, %v702_v15  ;;  %v131_v34 = vmul.f32 %v710_v21, %v710_v21 }
  0x8c   :  { %v130_v23 = vmul.f32 %v705_v16, %v705_v16 }
  0x8d   :  { %v165_v27 = vsel %vm31_vm0, %v132_v17, 0.0  ;;  %v162_v39 = vsel %vm31_vm0, %v131_v34, 0.0 }
  0x8e   :  { %v67_v28 = vpop.xlane.xlu2 %66  ;;  %166 = vadd.xlane.f32.xlu1 %v165_v27  ;;  %v159_v12 = vsel %vm31_vm0, %v130_v23, 0.0  ;;  %v64_v29 = vpop.xlane.xlu1 %63 }
  0x8f   :  { %v101_v14 = vmul.f32 %v655_v40, %v67_v28  ;;  %154 = vadd.xlane.f32.xlu0 %v153_v22  ;;  %160 = vadd.xlane.f32.xlu2 %v159_v12  ;;  %v61_v32 = vpop.xlane.xlu0 %60  ;;  %v100_v33 = vmul.f32 %v655_v40, %v64_v29 }
  0x90   :  { %v99_v13 = vmul.f32 %v655_v40, %v61_v32 }
  0x91   :  { %v723_v35 = vsub.f32 %v602_v18, %v101_v14  ;;  %v731_v38 = vsub.f32 %v607_v19, %v100_v33 }
  0x92   :  { %v726_v36 = vsub.f32 %v612_v20, %v99_v13 }
  0x93   :  { %v135_v37 = vmul.f32 %v723_v35, %v723_v35  ;;  %v134_v49 = vmul.f32 %v731_v38, %v731_v38 }
  0x94   :  { %v133_v41 = vmul.f32 %v726_v36, %v726_v36 }
  0x95   :  { %v174_v42 = vsel %vm31_vm0, %v135_v37, 0.0  ;;  %v171_v54 = vsel %vm31_vm0, %v134_v49, 0.0 }
  0x96   :  { %v76_v43 = vpop.xlane.xlu2 %75  ;;  %175 = vadd.xlane.f32.xlu1 %v174_v42  ;;  %v168_v18 = vsel %vm31_vm0, %v133_v41, 0.0  ;;  %v73_v44 = vpop.xlane.xlu1 %72 }
  0x97   :  { %v104_v20 = vmul.f32 %v655_v40, %v76_v43  ;;  %163 = vadd.xlane.f32.xlu0 %v162_v39  ;;  %169 = vadd.xlane.f32.xlu2 %v168_v18  ;;  %v70_v45 = vpop.xlane.xlu0 %69  ;;  %v103_v48 = vmul.f32 %v655_v40, %v73_v44 }
  0x98   :  { %v102_v19 = vmul.f32 %v655_v40, %v70_v45 }
  0x99   :  { %v744_v50 = vsub.f32 %v623_v24, %v104_v20  ;;  %v752_v53 = vsub.f32 %v628_v25, %v103_v48 }
  0x9a   :  { %v747_v51 = vsub.f32 %v633_v26, %v102_v19 }
  0x9b   :  { %v138_v52 = vmul.f32 %v744_v50, %v744_v50  ;;  %v137_v25 = vmul.f32 %v752_v53, %v752_v53 }
  0x9c   :  { %v136_v55 = vmul.f32 %v747_v51, %v747_v51 }
  0x9d   :  { %v183_v56 = vsel %vm31_vm0, %v138_v52, 0.0  ;;  %v180_v3 = vsel %vm31_vm0, %v137_v25, 0.0 }
  0x9e   :  { %184 = vadd.xlane.f32.xlu1 %v183_v56  ;;  %v177_v24 = vsel %vm31_vm0, %v136_v55, 0.0  ;;  %v82_v57 = vpop.xlane.xlu1 %81 }
  0x9f   :  { %172 = vadd.xlane.f32.xlu0 %v171_v54  ;;  %178 = vadd.xlane.f32.xlu2 %v177_v24  ;;  %v79_v26 = vpop.xlane.xlu0 %78  ;;  %v106_v62 = vmul.f32 %v655_v40, %v82_v57 }
  0xa0   :  { %v105_v58 = vmul.f32 %v655_v40, %v79_v26  ;;  %v809_v26 = vld [vmem:[%s1092_s1] ss:$0 sm:$0xff] }
  0xa1   :  { %v767_v2 = vsub.f32 %v644_v30, %v106_v62 }
  0xa2   :  { %v764_v63 = vsub.f32 %v649_v31, %v105_v58 }
  0xa3   :  { %v140_v6 = vmul.f32 %v767_v2, %v767_v2 }
  0xa4   :  { %v139_v4 = vmul.f32 %v764_v63, %v764_v63 }
  0xa5   :  { %v189_v7 = vsel %vm31_vm0, %v140_v6, 0.0  ;;  %v826_v6 = vld [vmem:[%s1093_s2] ss:$0 sm:$0xff] }
  0xa6   :  { %v186_v5 = vsel %vm31_vm0, %v139_v4, 0.0 }
  0xa7   :  { %181 = vadd.xlane.f32.xlu0 %v180_v3  ;;  %187 = vadd.xlane.f32.xlu2 %v186_v5 }
  0xaf   :  { %190 = vadd.xlane.f32.xlu0 %v189_v7 }
  0xf1   :  { %v149_v31 = vpop.xlane.xlu1 %148 }
  0xf2   :  { %v194_v8 = vmul.f32 %v149_v31, %v655_v40  ;;  %v143_v30 = vpop.xlane.xlu2 %142 }
  0xf3   :  { %v192_v9 = vmul.f32 %v143_v30, %v655_v40 }
  0xf4   :  { %v211_v0 = vadd.f32 1e-05, %v194_v8 }
  0xf5   :  { %v209_v10 = vadd.f32 1e-05, %v192_v9 }
  0xf6   :  { %481 = vrsqrt.f32 %v211_v0  ;;  %vm252_vm2 = vweird.f32 %v211_v0 }
  0xf7   :  { %483 = vrsqrt.f32 %v209_v10  ;;  %vm232_vm4 = vweird.f32 %v209_v10 }
  0xf9   :  { %v158_v11 = vpop.xlane.xlu1 %157 }
  0xfa   :  { %v197_v17 = vmul.f32 %v158_v11, %v655_v40  ;;  %v152_v22 = vpop.xlane.xlu2 %151  ;;  %v146_v23 = vpop.xlane.xlu0 %145 }
  0xfb   :  { %v195_v27 = vmul.f32 %v152_v22, %v655_v40  ;;  %v193_v28 = vmul.f32 %v146_v23, %v655_v40 }
  0xfc   :  { %v482_v12 = vpop.eup %481  ;;  %v781_v29 = vadd.f32 1e-05, %v197_v17 }
  0xfd   :  { %v484_v14 = vpop.eup %483  ;;  %v247_v32 = vmul.f32 %v482_v12, %v211_v0  ;;  %v783_v13 = vadd.f32 1e-05, %v195_v27  ;;  %v785_v33 = vadd.f32 1e-05, %v193_v28  ;;  %vm253_vm3 = vweird.f32 %v482_v12 }
  0xfe   :  { %v227_v34 = vmul.f32 %v484_v14, %v209_v10  ;;  %485 = vrsqrt.f32 %v781_v29  ;;  %vm233_vm5 = vweird.f32 %v484_v14  ;;  %vm282_vm6 = vweird.f32 %v781_v29  ;;  %vm254_vm8 = vmor %vm252_vm2, %vm253_vm3 }
  0xff   :  { %v248_v37 = vmul.f32 %v482_v12, %v247_v32  ;;  %487 = vrsqrt.f32 %v783_v13  ;;  %vm262_vm7 = vweird.f32 %v783_v13  ;;  %vm234_vm9 = vmor %vm232_vm4, %vm233_vm5  ;;  %vm242_vm10 = vweird.f32 %v785_v33 }
 0x100   :  { %v228_v39 = vmul.f32 %v484_v14, %v227_v34  ;;  %489 = vrsqrt.f32 %v785_v33 }
 0x101   :  { %v249_v41 = vmul.f32 0.5, %v248_v37  ;;  %v167_v42 = vpop.xlane.xlu1 %166 }
 0x102   :  { %v229_v43 = vmul.f32 0.5, %v228_v39  ;;  %v200_v18 = vmul.f32 %v167_v42, %v655_v40  ;;  %v161_v44 = vpop.xlane.xlu2 %160  ;;  %v155_v20 = vpop.xlane.xlu0 %154 }
 0x103   :  { %v250_v45 = vsub.f32 1.5, %v249_v41  ;;  %v198_v19 = vmul.f32 %v161_v44, %v655_v40  ;;  %v196_v25 = vmul.f32 %v155_v20, %v655_v40 }
 0x104   :  { %v792_v48 = vpop.eup %485  ;;  %v230_v49 = vsub.f32 1.5, %v229_v43  ;;  %v795_v52 = vadd.f32 1e-05, %v200_v18 }
 0x105   :  { %v797_v54 = vpop.eup %487  ;;  %v251_v55 = vmul.f32 %v482_v12, %v250_v45  ;;  %v277_v56 = vmul.f32 %v792_v48, %v781_v29  ;;  %v802_v24 = vadd.f32 1e-05, %v198_v19  ;;  %vm283_vm11 = vweird.f32 %v792_v48 }
 0x106   :  { %v804_v57 = vpop.eup %489  ;;  %v231_v58 = vmul.f32 %v484_v14, %v230_v49  ;;  %v257_v62 = vmul.f32 %v797_v54, %v783_v13  ;;  %491 = vrsqrt.f32 %v795_v52  ;;  %vm263_vm12 = vweird.f32 %v797_v54  ;;  %vm847_vm13 = vmor %vm282_vm6, %vm283_vm11 }
 0x107   :  { %v255_v3 = vsel %vm254_vm8, %v482_v12, %v251_v55  ;;  %v278_v4 = vmul.f32 %v792_v48, %v277_v56  ;;  %v237_v5 = vmul.f32 %v804_v57, %v785_v33  ;;  %493 = vrsqrt.f32 %v802_v24  ;;  %vm264_vm2 = vmor %vm262_vm7, %vm263_vm12 }
 0x108   :  { %v398_v7 = vmul.f32 %v255_v3, %v660_v46  ;;  %v235_v31 = vsel %vm234_vm9, %v484_v14, %v231_v58  ;;  %v258_v8 = vmul.f32 %v797_v54, %v257_v62  ;;  %v836_v22 = vadd.f32 1e-05, %v196_v25 }
 0x109   :  { %v396_v30 = vmul.f32 %v235_v31, %v663_v47  ;;  %v279_v9 = vmul.f32 0.5, %v278_v4  ;;  %v238_v0 = vmul.f32 %v804_v57, %v237_v5  ;;  %v176_v10 = vpop.xlane.xlu1 %175  ;;  %vm243_vm14 = vweird.f32 %v804_v57 }
 0x10a   :  { %v419_v11 = vmul.f32 %v809_v26, %v398_v7  ;;  %v259_v17 = vmul.f32 0.5, %v258_v8  ;;  %v170_v46 = vpop.xlane.xlu2 %169  ;;  %v164_v23 = vpop.xlane.xlu0 %163  ;;  %v203_v47 = vmul.f32 %v176_v10, %v655_v40  ;;  %495 = vrsqrt.f32 %v836_v22  ;;  %vm244_vm3 = vmor %vm242_vm10, %vm243_vm14 }
 0x10b   :  { %v417_v27 = vmul.f32 %v809_v26, %v396_v30  ;;  %v280_v28 = vsub.f32 1.5, %v279_v9  ;;  %v239_v12 = vmul.f32 0.5, %v238_v0  ;;  %vm312_vm15 = vweird.f32 %v795_v52 }
 0x10c   :  { %v840_v14 = vpop.eup %491  ;;  %v440_v32 = vadd.f32 %v826_v6, %v419_v11  ;;  %v260_v37 = vsub.f32 1.5, %v259_v17  ;;  %v864_v18 = vadd.f32 1e-05, %v203_v47  ;;  %v201_v49 = vmul.f32 %v170_v46, %v655_v40 }
 0x10d   :  { %v438_v39 = vadd.f32 %v826_v6, %v417_v27  ;;  %v281_v41 = vmul.f32 %v792_v48, %v280_v28  ;;  %v240_v42 = vsub.f32 1.5, %v239_v12  ;;  %v307_v43 = vmul.f32 %v840_v14, %v795_v52  ;;  %v494_v44 = vpop.eup %493 }
 0x10e   :  { %457 = vst.msk [vmem:[%s1094_s3 + $0x10] sm:$0xff] %vm31_vm0, %v440_v32  ;;  %v261_v29 = vmul.f32 %v797_v54, %v260_v37  ;;  %vm313_vm1 = vweird.f32 %v840_v14  ;;  %v199_v13 = vmul.f32 %v164_v23, %v655_v40  ;;  %497 = vrsqrt.f32 %v864_v18 }
 0x10f   :  { %455 = vst.msk [vmem:[%s1094_s3] sm:$0xff] %vm31_vm0, %v438_v39  ;;  %v285_v20 = vsel %vm847_vm13, %v792_v48, %v281_v41  ;;  %v241_v45 = vmul.f32 %v804_v57, %v240_v42  ;;  %v308_v19 = vmul.f32 %v840_v14, %v307_v43  ;;  %v287_v48 = vmul.f32 %v494_v44, %v802_v24  ;;  %vm905_vm5 = vmor %vm312_vm15, %vm313_vm1 }
 0x110   :  { %v401_v55 = vmul.f32 %v285_v20, %v676_v59  ;;  %v265_v56 = vsel %vm264_vm2, %v797_v54, %v261_v29  ;;  %v891_v3 = vpop.eup %495  ;;  %vm292_vm4 = vweird.f32 %v802_v24  ;;  %v909_v9 = vadd.f32 1e-05, %v201_v49 }
 0x111   :  { %v399_v58 = vmul.f32 %v265_v56, %v679_v60  ;;  %v245_v62 = vsel %vm244_vm3, %v804_v57, %v241_v45  ;;  %v309_v25 = vmul.f32 0.5, %v308_v19  ;;  %v288_v4 = vmul.f32 %v494_v44, %v287_v48  ;;  %v185_v23 = vpop.xlane.xlu1 %184 }
 0x112   :  { %v422_v59 = vmul.f32 %v809_v26, %v401_v55  ;;  %v397_v54 = vmul.f32 %v245_v62, %v682_v61  ;;  %v179_v33 = vpop.xlane.xlu2 %178  ;;  %v173_v5 = vpop.xlane.xlu0 %172  ;;  %v267_v60 = vmul.f32 %v891_v3, %v836_v22  ;;  %v914_v17 = vadd.f32 1e-05, %v199_v13 }
 0x113   :  { %v420_v7 = vmul.f32 %v809_v26, %v399_v58  ;;  %v310_v31 = vsub.f32 1.5, %v309_v25  ;;  %v289_v30 = vmul.f32 0.5, %v288_v4  ;;  %vm293_vm6 = vweird.f32 %v494_v44 }
 0x114   :  { %v443_v57 = vadd.f32 %v826_v6, %v422_v59  ;;  %v418_v8 = vmul.f32 %v809_v26, %v397_v54  ;;  %v268_v11 = vmul.f32 %v891_v3, %v267_v60  ;;  %499 = vrsqrt.f32 %v909_v9  ;;  %v498_v27 = vpop.eup %497  ;;  %vm294_vm8 = vmor %vm292_vm4, %vm293_vm6 }
 0x115   :  { %v441_v0 = vadd.f32 %v826_v6, %v420_v7  ;;  %v311_v10 = vmul.f32 %v840_v14, %v310_v31  ;;  %v290_v46 = vsub.f32 1.5, %v289_v30  ;;  %501 = vrsqrt.f32 %v914_v17 }
 0x116   :  { %460 = vst.msk [vmem:[%s1094_s3 + $0x28] sm:$0xff] %vm31_vm0, %v443_v57  ;;  %v439_v52 = vadd.f32 %v826_v6, %v418_v8  ;;  %v269_v12 = vmul.f32 0.5, %v268_v11  ;;  %vm273_vm7 = vweird.f32 %v891_v3  ;;  %v337_v34 = vmul.f32 %v498_v27, %v864_v18 }
 0x117   :  { %458 = vst.msk [vmem:[%s1094_s3 + $0x18] sm:$0xff] %vm31_vm0, %v441_v0  ;;  %v315_v28 = vsel %vm905_vm5, %v840_v14, %v311_v10  ;;  %v291_v32 = vmul.f32 %v494_v44, %v290_v46  ;;  %v206_v14 = vmul.f32 %v185_v23, %v655_v40  ;;  %v204_v39 = vmul.f32 %v179_v33, %v655_v40 }
 0x118   :  { %456 = vst.msk [vmem:[%s1094_s3 + $0x8] sm:$0xff] %vm31_vm0, %v439_v52  ;;  %v404_v47 = vmul.f32 %v315_v28, %v702_v15  ;;  %v270_v37 = vsub.f32 1.5, %v269_v12  ;;  %v202_v41 = vmul.f32 %v173_v5, %v655_v40  ;;  %vm272_vm9 = vweird.f32 %v836_v22 }
 0x119   :  { %v295_v43 = vsel %vm294_vm8, %v494_v44, %v291_v32  ;;  %v338_v15 = vmul.f32 %v498_v27, %v337_v34  ;;  %vm342_vm10 = vweird.f32 %v864_v18  ;;  %v947_v24 = vadd.f32 1e-05, %v206_v14  ;;  %vm274_vm11 = vmor %vm272_vm9, %vm273_vm7 }
 0x11a   :  { %v425_v42 = vmul.f32 %v809_v26, %v404_v47  ;;  %v182_v29 = vpop.xlane.xlu0 %181  ;;  %v402_v20 = vmul.f32 %v295_v43, %v705_v16  ;;  %v271_v45 = vmul.f32 %v891_v3, %v270_v37  ;;  %v188_v19 = vpop.xlane.xlu2 %187  ;;  %vm343_vm12 = vweird.f32 %v498_v27 }
 0x11b   :  { %v500_v49 = vpop.eup %499  ;;  %v339_v44 = vmul.f32 0.5, %v338_v15  ;;  %v952_v22 = vadd.f32 1e-05, %v204_v39  ;;  %v957_v58 = vadd.f32 1e-05, %v202_v41  ;;  %v207_v54 = vmul.f32 %v188_v19, %v655_v40  ;;  %vm969_vm13 = vmor %vm342_vm10, %vm343_vm12 }
 0x11c   :  { %v446_v55 = vadd.f32 %v826_v6, %v425_v42  ;;  %v502_v56 = vpop.eup %501  ;;  %v423_v16 = vmul.f32 %v809_v26, %v402_v20  ;;  %v275_v48 = vsel %vm274_vm11, %v891_v3, %v271_v45  ;;  %v317_v13 = vmul.f32 %v500_v49, %v909_v9 }
 0x11d   :  { %v400_v62 = vmul.f32 %v275_v48, %v689_v1  ;;  %v340_v25 = vsub.f32 1.5, %v339_v44  ;;  %v297_v59 = vmul.f32 %v502_v56, %v914_v17  ;;  %503 = vrsqrt.f32 %v947_v24 }
 0x11e   :  { %463 = vst.msk [vmem:[%s1094_s3 + $0x40] sm:$0xff] %vm31_vm0, %v446_v55  ;;  %v444_v4 = vadd.f32 %v826_v6, %v423_v16  ;;  %v318_v33 = vmul.f32 %v500_v49, %v317_v13  ;;  %505 = vrsqrt.f32 %v952_v22  ;;  %vm322_vm14 = vweird.f32 %v909_v9 }
 0x11f   :  { %v421_v5 = vmul.f32 %v809_v26, %v400_v62  ;;  %v341_v7 = vmul.f32 %v498_v27, %v340_v25  ;;  %v298_v1 = vmul.f32 %v502_v56, %v297_v59  ;;  %vm323_vm15 = vweird.f32 %v500_v49 }
 0x120   :  { %461 = vst.msk [vmem:[%s1094_s3 + $0x30] sm:$0xff] %vm31_vm0, %v444_v4  ;;  %v319_v31 = vmul.f32 0.5, %v318_v33  ;;  %507 = vrsqrt.f32 %v957_v58  ;;  %v985_v8 = vadd.f32 1e-05, %v207_v54  ;;  %v205_v10 = vmul.f32 %v182_v29, %v655_v40  ;;  %vm324_vm2 = vmor %vm322_vm14, %vm323_vm15 }
 0x121   :  { %v442_v18 = vadd.f32 %v826_v6, %v421_v5  ;;  %v345_v60 = vsel %vm969_vm13, %v498_v27, %v341_v7  ;;  %v299_v57 = vmul.f32 0.5, %v298_v1  ;;  %vm303_vm1 = vweird.f32 %v502_v56 }
 0x122   :  { %v191_v61 = vpop.xlane.xlu0 %190  ;;  %v407_v30 = vmul.f32 %v345_v60, %v723_v35  ;;  %v320_v0 = vsub.f32 1.5, %v319_v31  ;;  %509 = vrsqrt.f32 %v985_v8  ;;  %v996_v28 = vadd.f32 1e-05, %v205_v10 }
 0x123   :  { %v208_v11 = vmul.f32 %v191_v61, %v655_v40  ;;  %459 = vst.msk [vmem:[%s1094_s3 + $0x20] sm:$0xff] %vm31_vm0, %v442_v18  ;;  %v300_v52 = vsub.f32 1.5, %v299_v57  ;;  %v504_v46 = vpop.eup %503  ;;  %vm302_vm3 = vweird.f32 %v914_v17  ;;  %vm372_vm5 = vweird.f32 %v947_v24 }
 0x124   :  { %v428_v23 = vmul.f32 %v809_v26, %v407_v30  ;;  %v321_v27 = vmul.f32 %v500_v49, %v320_v0  ;;  %v506_v35 = vpop.eup %505  ;;  %v367_v12 = vmul.f32 %v504_v46, %v947_v24  ;;  %vm304_vm4 = vmor %vm302_vm3, %vm303_vm1  ;;  %511 = vrsqrt.f32 %v996_v28 }
 0x125   :  { %v301_v40 = vmul.f32 %v502_v56, %v300_v52  ;;  %v347_v37 = vmul.f32 %v506_v35, %v952_v22  ;;  %v1005_v14 = vadd.f32 1e-05, %v208_v11  ;;  %vm373_vm6 = vweird.f32 %v504_v46 }
 0x126   :  { %v508_v47 = vpop.eup %507  ;;  %v449_v32 = vadd.f32 %v826_v6, %v428_v23  ;;  %v325_v34 = vsel %vm324_vm2, %v500_v49, %v321_v27  ;;  %v368_v42 = vmul.f32 %v504_v46, %v367_v12  ;;  %vm352_vm7 = vweird.f32 %v952_v22  ;;  %vm1025_vm8 = vmor %vm372_vm5, %vm373_vm6 }
 0x127   :  { %v405_v39 = vmul.f32 %v325_v34, %v726_v36  ;;  %v305_v41 = vsel %vm304_vm4, %v502_v56, %v301_v40  ;;  %v327_v9 = vmul.f32 %v508_v47, %v957_v58  ;;  %v348_v43 = vmul.f32 %v506_v35, %v347_v37 }
 0x128   :  { %466 = vst.msk [vmem:[%s1094_s3 + $0x58] sm:$0xff] %vm31_vm0, %v449_v32  ;;  %v403_v17 = vmul.f32 %v305_v41, %v710_v21  ;;  %v510_v15 = vpop.eup %509  ;;  %v369_v36 = vmul.f32 0.5, %v368_v42  ;;  %513 = vrsqrt.f32 %v1005_v14  ;;  %vm353_vm9 = vweird.f32 %v506_v35 }
 0x129   :  { %v426_v29 = vmul.f32 %v809_v26, %v405_v39  ;;  %v328_v20 = vmul.f32 %v508_v47, %v327_v9  ;;  %v349_v19 = vmul.f32 0.5, %v348_v43  ;;  %v377_v49 = vmul.f32 %v510_v15, %v985_v8  ;;  %vm354_vm12 = vmor %vm352_vm7, %vm353_vm9 }
 0x12a   :  { %v424_v45 = vmul.f32 %v809_v26, %v403_v17  ;;  %v370_v55 = vsub.f32 1.5, %v369_v36  ;;  %vm333_vm10 = vweird.f32 %v508_v47  ;;  %v512_v59 = vpop.eup %511  ;;  %vm332_vm11 = vweird.f32 %v957_v58 }
 0x12b   :  { %v447_v21 = vadd.f32 %v826_v6, %v426_v29  ;;  %v329_v44 = vmul.f32 0.5, %v328_v20  ;;  %v350_v48 = vsub.f32 1.5, %v349_v19  ;;  %v378_v13 = vmul.f32 %v510_v15, %v377_v49  ;;  %vm334_vm14 = vmor %vm332_vm11, %vm333_vm10 }
 0x12c   :  { %v445_v56 = vadd.f32 %v826_v6, %v424_v45  ;;  %v371_v62 = vmul.f32 %v504_v46, %v370_v55  ;;  %vm382_vm13 = vweird.f32 %v985_v8  ;;  %v357_v33 = vmul.f32 %v512_v59, %v996_v28 }
 0x12d   :  { %464 = vst.msk [vmem:[%s1094_s3 + $0x48] sm:$0xff] %vm31_vm0, %v447_v21  ;;  %v330_v25 = vsub.f32 1.5, %v329_v44  ;;  %v351_v24 = vmul.f32 %v506_v35, %v350_v48  ;;  %v379_v54 = vmul.f32 0.5, %v378_v13  ;;  %vm383_vm15 = vweird.f32 %v510_v15 }
 0x12e   :  { %462 = vst.msk [vmem:[%s1094_s3 + $0x38] sm:$0xff] %vm31_vm0, %v445_v56  ;;  %v375_v4 = vsel %vm1025_vm8, %v504_v46, %v371_v62  ;;  %v514_v31 = vpop.eup %513  ;;  %v358_v60 = vmul.f32 %v512_v59, %v357_v33  ;;  %vm384_vm1 = vmor %vm382_vm13, %vm383_vm15  ;;  %vm363_vm2 = vweird.f32 %v512_v59  ;;  %vm362_vm3 = vweird.f32 %v996_v28 }
 0x12f   :  { %v331_v3 = vmul.f32 %v508_v47, %v330_v25  ;;  %v410_v5 = vmul.f32 %v375_v4, %v744_v50  ;;  %v355_v7 = vsel %vm354_vm12, %v506_v35, %v351_v24  ;;  %v380_v1 = vsub.f32 1.5, %v379_v54  ;;  %vm364_vm4 = vmor %vm362_vm3, %vm363_vm2 }
 0x130   :  { %v408_v58 = vmul.f32 %v355_v7, %v747_v51  ;;  %v387_v30 = vmul.f32 %v514_v31, %v1005_v14  ;;  %v359_v50 = vmul.f32 0.5, %v358_v60  ;;  %vm393_vm5 = vweird.f32 %v514_v31 }
 0x131   :  { %v335_v18 = vsel %vm334_vm14, %v508_v47, %v331_v3  ;;  %v431_v57 = vmul.f32 %v809_v26, %v410_v5  ;;  %v381_v61 = vmul.f32 %v510_v15, %v380_v1  ;;  %vm392_vm6 = vweird.f32 %v1005_v14 }
 0x132   :  { %v406_v22 = vmul.f32 %v335_v18, %v731_v38  ;;  %v429_v0 = vmul.f32 %v809_v26, %v408_v58  ;;  %v388_v52 = vmul.f32 %v514_v31, %v387_v30  ;;  %v360_v38 = vsub.f32 1.5, %v359_v50  ;;  %vm394_vm7 = vmor %vm392_vm6, %vm393_vm5 }
 0x133   :  { %v452_v10 = vadd.f32 %v826_v6, %v431_v57  ;;  %v385_v51 = vsel %vm384_vm1, %v510_v15, %v381_v61 }
 0x134   :  { %v427_v11 = vmul.f32 %v809_v26, %v406_v22  ;;  %v450_v46 = vadd.f32 %v826_v6, %v429_v0  ;;  %v411_v23 = vmul.f32 %v385_v51, %v764_v63  ;;  %v389_v27 = vmul.f32 0.5, %v388_v52 }
 0x135   :  { %469 = vst.msk [vmem:[%s1094_s3 + $0x70] sm:$0xff] %vm31_vm0, %v452_v10  ;;  %v361_v40 = vmul.f32 %v512_v59, %v360_v38 }
 0x136   :  { %v448_v8 = vadd.f32 %v826_v6, %v427_v11  ;;  %467 = vst.msk [vmem:[%s1094_s3 + $0x60] sm:$0xff] %vm31_vm0, %v450_v46  ;;  %v432_v35 = vmul.f32 %v809_v26, %v411_v23  ;;  %v390_v63 = vsub.f32 1.5, %v389_v27 }
 0x137   :  { %v365_v47 = vsel %vm364_vm4, %v512_v59, %v361_v40 }
 0x138   :  { %465 = vst.msk [vmem:[%s1094_s3 + $0x50] sm:$0xff] %vm31_vm0, %v448_v8  ;;  %v453_v12 = vadd.f32 %v826_v6, %v432_v35  ;;  %v409_v32 = vmul.f32 %v365_v47, %v752_v53  ;;  %v391_v34 = vmul.f32 %v514_v31, %v390_v63 }
 0x13a   :  { %470 = vst.msk [vmem:[%s1094_s3 + $0x78] sm:$0xff] %vm31_vm0, %v453_v12  ;;  %v430_v28 = vmul.f32 %v809_v26, %v409_v32  ;;  %v395_v37 = vsel %vm394_vm7, %v514_v31, %v391_v34 }
 0x13b   :  { %v412_v39 = vmul.f32 %v395_v37, %v767_v2 }
 0x13c   :  { %v451_v41 = vadd.f32 %v826_v6, %v430_v28 }
 0x13d   :  { %v433_v42 = vmul.f32 %v809_v26, %v412_v39 }
 0x13e   :  { %468 = vst.msk [vmem:[%s1094_s3 + $0x68] sm:$0xff] %vm31_vm0, %v451_v41 }
 0x13f   :  { %v454_v53 = vadd.f32 %v826_v6, %v433_v42 }
 0x141   :  { %471 = vst.msk [vmem:[%s1094_s3 + $0x80] sm:$0xff] %vm31_vm0, %v454_v53 }

// kernel: local_scale_feature_transformer_forward.99
= control target key start
LH: loop header
LB: loop body
LE: loop exit
PB: predicated region body
PF: predicated region fallthrough
CT: control target
= control target key end

     0   :  { %s669_s12 = smov 0   ;;  %s671_s13 = smov 0   ;;  %s783_s0 = inlined_call_operand.vmem [shape: bf16[34,128], index: 0, kind: input, shape index: {}]   ;;  %s784_s1 = inlined_call_operand.vmem [shape: bf16[128,384], index: 1, kind: input, shape index: {}]   ;;  %s785_s2 = inlined_call_operand.vmem [shape: f32[1,384], index: 2, kind: input, shape index: {}]   ;;  %s786_s3 = inlined_call_operand.vmem [shape: f32[34,384], index: 3, kind: output, shape index: {}]  }
   0x1   :  { %s673_s14 = smov 0  }
   0x2 LB: > { %s685_s15 = sadd.s32 4294967295, %s647_s14   ;;  %s688_s16 = sadd.s32 1, %s647_s14   ;;  %s647_s14 = sphi %s673_s14, %s790_s14   ;;  %s643_s13 = sphi %s671_s13, %s789_s13   ;;  %s639_s12 = sphi %s669_s12, %s788_s12  }
   0x3   : > { %s38_s17 = ssub.s32 %s647_s14, %s688_s16  ;;  %s41_s18 = sadd.s32 1, %s643_s13 }
   0x4   : > { %p39_p0 = scmp.eq.s32.totalorder %s38_s17, 0  ;;  %p48_p1 = scmp.ne.s32.totalorder %s643_s13, %s639_s12 }
   0x5   : > { %p49_p2 = scmp.eq.s32.totalorder %s647_s14, 0  ;;  %p104_p3 = scmp.eq.s32.totalorder %s685_s15, 2 }
   0x6   : > { %s698_s19 = scalar_select %p39_p0, %s643_s13, %s41_s18  }
   0x7   : > { %p50_p4 = por %p49_p2, %p48_p1  ;;  %p700_p5 = por %p104_p3, %p48_p1 }
   0x8   : > { %p525_p6 = scmp.ge.s32.totalorder %s647_s14, 3 }
   0xa   : > { %129 = sbr.rel (%p525_p6) target bundleno = 35 (0x23), region = 20 }
   0xf   : > { %132 = sbr.rel (!%p50_p4) target bundleno = 35 (0x23), region = 24  ;;  %s134_s21 = sand.u32 (%p50_p4), 1, %s643_s13  }
  0x10   : > { %s527_s22 = sshll.u32 (%p50_p4), %s647_s14, 2  ;;  %s526_s23 = sshll.u32 (%p50_p4), %s134_s21, 6 }
  0x11   : > { %s710_s26 = scalar_lea.vmem (%p50_p4), %s784_s1, %s527_s22  ;;  %s136_s27 = scalar_lea.vmem (%p50_p4), [#allocation2], %s526_s23 }
  0x12   : > { %v155_v0 = vld [vmem:[%s710_s26] sm:$0xf] (%p50_p4)  ;;  %v157_v1 = vld [vmem:[%s710_s26 + $0xc] sm:$0xf] (%p50_p4)  ;;  %v159_v2 = vld [vmem:[%s710_s26 + $0x18] sm:$0xf] (%p50_p4) }
  0x13   : > { %156 = vst [vmem:[%s136_s27] sm:$0xf] (%p50_p4), %v155_v0  ;;  %v161_v3 = vld [vmem:[%s710_s26 + $0x24] sm:$0xf] (%p50_p4)  ;;  %v163_v4 = vld [vmem:[%s710_s26 + $0x30] sm:$0xf] (%p50_p4) }
  0x14   : > { %158 = vst [vmem:[%s136_s27 + $0x4] sm:$0xf] %v157_v1  ;;  %v165_v5 = vld [vmem:[%s710_s26 + $0x3c] sm:$0xf]  ;;  %v167_v6 = vld [vmem:[%s710_s26 + $0x48] sm:$0xf] }
  0x15   : > { %160 = vst [vmem:[%s136_s27 + $0x8] sm:$0xf] %v159_v2  ;;  %v169_v7 = vld [vmem:[%s710_s26 + $0x54] sm:$0xf]  ;;  %v171_v8 = vld [vmem:[%s710_s26 + $0x60] sm:$0xf] }
  0x16   : > { %162 = vst [vmem:[%s136_s27 + $0xc] sm:$0xf] %v161_v3  ;;  %v173_v9 = vld [vmem:[%s710_s26 + $0x6c] sm:$0xf]  ;;  %v175_v10 = vld [vmem:[%s710_s26 + $0x78] sm:$0xf] }
  0x17   : > { %164 = vst [vmem:[%s136_s27 + $0x10] sm:$0xf] %v163_v4  ;;  %v177_v11 = vld [vmem:[%s710_s26 + $0x84] sm:$0xf]  ;;  %v179_v12 = vld [vmem:[%s710_s26 + $0x90] sm:$0xf] }
  0x18   : > { %166 = vst [vmem:[%s136_s27 + $0x14] sm:$0xf] %v165_v5  ;;  %v181_v13 = vld [vmem:[%s710_s26 + $0x9c] sm:$0xf]  ;;  %v183_v14 = vld [vmem:[%s710_s26 + $0xa8] sm:$0xf] }
  0x19   : > { %168 = vst [vmem:[%s136_s27 + $0x18] sm:$0xf] %v167_v6  ;;  %v185_v15 = vld [vmem:[%s710_s26 + $0xb4] sm:$0xf] }
  0x1a   : > { %170 = vst [vmem:[%s136_s27 + $0x1c] sm:$0xf] %v169_v7 }
  0x1b   : > { %172 = vst [vmem:[%s136_s27 + $0x20] sm:$0xf] %v171_v8 }
  0x1c   : > { %174 = vst [vmem:[%s136_s27 + $0x24] sm:$0xf] %v173_v9 }
  0x1d   : > { %176 = vst [vmem:[%s136_s27 + $0x28] sm:$0xf] %v175_v10 }
  0x1e   : > { %178 = vst [vmem:[%s136_s27 + $0x2c] sm:$0xf] %v177_v11 }
  0x1f   : > { %180 = vst [vmem:[%s136_s27 + $0x30] sm:$0xf] %v179_v12 }
  0x20   : > { %182 = vst [vmem:[%s136_s27 + $0x34] sm:$0xf] %v181_v13 }
  0x21   : > { %184 = vst [vmem:[%s136_s27 + $0x38] sm:$0xf] %v183_v14 }
  0x22   : > { %186 = vst [vmem:[%s136_s27 + $0x3c] sm:$0xf] %v185_v15 }
  0x23 PF: > { %p528_p7 = scmp.ge.s32.totalorder %s647_s14, 1  ;;  %p247_p8 = scmp.lt.s32.totalorder %s647_s14, 4 }
  0x25   : > { %p248_p9 = pnand %p528_p7, %p247_p8 }
  0x26   : > { %s254_s28 = sand.u32 (!%p248_p9), 1, %s639_s12   ;;  %p279_p10 = scmp.lt.s32.totalorder (!%p248_p9), %s685_s15, 2 }
  0x27   : > { %251 = sbr.rel (%p248_p9) target bundleno = 222 (0xde), region = 69  ;;  %s529_s29 = sshll.u32 (!%p248_p9), %s254_s28, 6 }
  0x28   : > { %s734_s30 = scalar_lea.vmem (!%p248_p9), [#allocation2], %s529_s29  ;;  %s599_s18 = smul.u32 (!%p248_p9), 40, %s254_s28 }
  0x2a   : > { %s278_s23 = scalar_lea.vmem (!%p248_p9), [#allocation3], %s599_s18 }
  0x2c   : > { %v582_v16 = vld [vmem:[%s734_s30 + $0x38] sm:$0xff]  ;;  %s738_s4 = scalar_select %p279_p10, %s685_s15, 2  ;;  %v581_v17 = vld [vmem:[%s734_s30 + $0x30] sm:$0xff]  ;;  %v580_v18 = vld [vmem:[%s734_s30 + $0x28] sm:$0xff] }
  0x2d   : > { %371 = vmatpush.bf16.msra.mxu0 %v582_v16  ;;  %583 = vmatpush.bf16.msra.mxu1 %v582_v16  ;;  %v579_v19 = vld [vmem:[%s734_s30 + $0x20] sm:$0xff]  ;;  %v578_v20 = vld [vmem:[%s734_s30 + $0x18] sm:$0xff]  ;;  %v577_v21 = vld [vmem:[%s734_s30 + $0x10] sm:$0xff]  ;;  %s570_s12 = sshll.u32 (%p700_p5), %s685_s15, 3 }
  0x2e   : > { %584 = vmatpush.bf16.msra.mxu2 %v582_v16  ;;  %s281_s7 = scalar_lea.vmem %s785_s2, %s738_s4  ;;  %v576_v22 = vld [vmem:[%s734_s30 + $0x8] sm:$0xff]  ;;  %v286_v23 = vld [vmem:[%s783_s0 + $0x10] sm:$0x1]  ;;  %v575_v24 = vld [vmem:[%s734_s30] sm:$0xff]  ;;  %s407_s26 = scalar_lea.vmem (%p700_p5), %s786_s3, %s570_s12 }
  0x2f   : > { %v316_v25 = vunpack.c.l.b16 %v286_v23  ;;  %v573_v26 = vld [vmem:[%s783_s0] sm:$0xff]  ;;  %v574_v27 = vld [vmem:[%s783_s0 + $0x8] sm:$0xff] }
  0x30   : > { %v624_v29 = vld [vmem:[%s281_s7] ss:$0 sm:$0xff] }
  0x31   : > { %372 = vmatpush.bf16.msra.mxu0 %v581_v17  ;;  %585 = vmatpush.bf16.msra.mxu1 %v581_v17  ;;  %v319_v28 = vpack.c.b16 %v316_v25, %v316_v25 }
  0x32   : > { %586 = vmatpush.bf16.msra.mxu2 %v581_v17 }
  0x35   : > { %373 = vmatpush.bf16.msra.mxu0 %v580_v18  ;;  %587 = vmatpush.bf16.msra.mxu1 %v580_v18 }
  0x36   : > { %588 = vmatpush.bf16.msra.mxu2 %v580_v18 }
  0x39   : > { %374 = vmatpush.bf16.msra.mxu0 %v579_v19  ;;  %589 = vmatpush.bf16.msra.mxu1 %v579_v19 }
  0x3a   : > { %590 = vmatpush.bf16.msra.mxu2 %v579_v19 }
  0x3d   : > { %375 = vmatpush.bf16.msra.mxu0 %v578_v20  ;;  %591 = vmatpush.bf16.msra.mxu1 %v578_v20 }
  0x3e   : > { %592 = vmatpush.bf16.msra.mxu2 %v578_v20 }
  0x41   : > { %376 = vmatpush.bf16.msra.mxu0 %v577_v21  ;;  %593 = vmatpush.bf16.msra.mxu1 %v577_v21 }
  0x42   : > { %594 = vmatpush.bf16.msra.mxu2 %v577_v21 }
  0x45   : > { %377 = vmatpush.bf16.msra.mxu0 %v576_v22  ;;  %595 = vmatpush.bf16.msra.mxu1 %v576_v22 }
  0x46   : > { %596 = vmatpush.bf16.msra.mxu2 %v576_v22 }
  0x49   : > { %378 = vmatpush.bf16.msra.mxu0 %v575_v24  ;;  %597 = vmatpush.bf16.msra.mxu1 %v575_v24 }
  0x4a   : > { %598 = vmatpush.bf16.msra.mxu2 %v575_v24 }
  0x4c   : > { %379 = vmatmul.bf16.vlgmr.msra.gmra.mxu0 %v573_v26  ;;  %384 = vmatmul.bf16.vlgmr.msra.gmra.mxu1 %v574_v27 }
  0x4d   : > { %389 = vmatmul.bf16.vlgmr.msra.gmra.mxu2 %v319_v28 }
  0xc9   : > { %v380_v30 = vpop.f32.mrf.mxu0  ;;  %v385_v31 = vpop.f32.mrf.mxu1 }
  0xca   : > { %v381_v32 = vadd.f32 %v624_v29, %v380_v30  ;;  %v386_v33 = vadd.f32 %v624_v29, %v385_v31 }
  0xcc   : > { %394 = vst [vmem:[%s278_s23] sm:$0xff] %v381_v32 }
  0xcd   : > { %396 = vst [vmem:[%s278_s23 + $0x10] sm:$0xff] %v386_v33 }
  0xd0   : > { %v390_v34 = vpop.f32.mrf.mxu2 }
  0xd1   : > { %v391_v35 = vadd.f32 %v624_v29, %v390_v34  ;;  %v382_v36 = vpop.f32.mrf.mxu0  ;;  %v387_v37 = vpop.f32.mrf.mxu1 }
  0xd2   : > { %v383_v38 = vadd.f32 %v624_v29, %v382_v36  ;;  %v388_v39 = vadd.f32 %v624_v29, %v387_v37 }
  0xd3   : > { %398 = vst [vmem:[%s278_s23 + $0x20] sm:$0x3] %v391_v35  ;;  %v444_v41 = vld [vmem:[%s278_s23] sm:$0xff] (%p700_p5) }
  0xd4   : > { %395 = vst [vmem:[%s278_s23 + $0x8] sm:$0xff] %v383_v38  ;;  %405 = sbr.rel (!%p700_p5) target bundleno = 222 (0xde), region = 77  ;;  %v448_v43 = vld [vmem:[%s278_s23 + $0x10] sm:$0xff] (%p700_p5) }
  0xd5   : > { %397 = vst [vmem:[%s278_s23 + $0x18] sm:$0xff] %v388_v39 }
  0xd6   : > { %445 = vst [vmem:[%s407_s26] sm:$0xff] (%p700_p5), %v444_v41 }
  0xd7   : > { %449 = vst [vmem:[%s407_s26 + $0x30] sm:$0xff] (%p700_p5), %v448_v43 }
  0xd8   : > { %v392_v40 = vpop.f32.mrf.mxu2 }
  0xda   : > { %v452_v45 = vld [vmem:[%s278_s23 + $0x20] sm:$0xff] }
  0xdb   : > { %v446_v42 = vld [vmem:[%s278_s23 + $0x8] sm:$0xff]  ;;  %453 = vst [vmem:[%s407_s26 + $0x60] sm:$0xff] %v452_v45 }
  0xdc   : > { %v450_v44 = vld [vmem:[%s278_s23 + $0x18] sm:$0xff]  ;;  %447 = vst [vmem:[%s407_s26 + $0x18] sm:$0xff] %v446_v42 }
  0xdd   : > { %451 = vst [vmem:[%s407_s26 + $0x48] sm:$0xff] %v450_v44 }
  0xde PF: > { %p10_p11 = scmp.ge.s32.totalorder %s688_s16, 5   ;;  %s788_s12 = smov %s643_s13 }
  0xdf   : > { %s789_s13 = smov %s698_s19  ;;  %s790_s14 = smov %s688_s16 }
  0xe0   :  { %12 = sbr.rel (!%p10_p11) target bundleno = 2 (0x2), region = 149 }

// kernel: local_scale_feature_transformer_forward.110
= control target key start
LH: loop header
LB: loop body
LE: loop exit
PB: predicated region body
PF: predicated region fallthrough
CT: control target
= control target key end

     0   :  { %s872_s12 = smov 0   ;;  %s874_s13 = smov 0   ;;  %s1100_s0 = inlined_call_operand.vmem [shape: bf16[34,128], index: 0, kind: input, shape index: {}]   ;;  %s1101_s1 = inlined_call_operand.vmem [shape: bf16[128,512], index: 1, kind: input, shape index: {}]   ;;  %s1102_s2 = inlined_call_operand.vmem [shape: f32[1,512], index: 2, kind: input, shape index: {}]   ;;  %s1103_s3 = inlined_call_operand.vmem [shape: f32[34,512], index: 3, kind: output, shape index: {}]  }
   0x1   :  { %s876_s14 = smov 0  }
   0x2 LB: > { %s888_s15 = sadd.s32 4294967295, %s850_s14   ;;  %s891_s16 = sadd.s32 1, %s850_s14   ;;  %s850_s14 = sphi %s876_s14, %s1107_s14   ;;  %s846_s13 = sphi %s874_s13, %s1106_s13   ;;  %s842_s12 = sphi %s872_s12, %s1105_s12  }
   0x3   : > { %s38_s17 = ssub.s32 %s850_s14, %s891_s16  ;;  %s41_s18 = sadd.s32 1, %s846_s13 }
   0x4   : > { %p39_p0 = scmp.eq.s32.totalorder %s38_s17, 0  ;;  %p48_p1 = scmp.ne.s32.totalorder %s846_s13, %s842_s12 }
   0x5   : > { %p49_p2 = scmp.eq.s32.totalorder %s850_s14, 0  ;;  %p104_p3 = scmp.eq.s32.totalorder %s888_s15, 1 }
   0x6   : > { %s901_s19 = scalar_select %p39_p0, %s846_s13, %s41_s18  }
   0x7   : > { %p50_p4 = por %p49_p2, %p48_p1  ;;  %p903_p5 = por %p104_p3, %p48_p1 }
   0x8   : > { %p664_p6 = scmp.ge.s32.totalorder %s850_s14, 2 }
   0xa   : > { %129 = sbr.rel (%p664_p6) target bundleno = 35 (0x23), region = 20 }
   0xf   : > { %132 = sbr.rel (!%p50_p4) target bundleno = 35 (0x23), region = 24  ;;  %s134_s21 = sand.u32 (%p50_p4), 1, %s846_s13  }
  0x10   : > { %s747_s22 = sshll.u32 (%p50_p4), %s850_s14, 3  ;;  %s665_s23 = sshll.u32 (%p50_p4), %s134_s21, 7 }
  0x11   : > { %s913_s26 = scalar_lea.vmem (%p50_p4), %s1101_s1, %s747_s22  ;;  %s136_s27 = scalar_lea.vmem (%p50_p4), [#allocation2], %s665_s23 }
  0x12   : > { %v198_v0 = vld [vmem:[%s913_s26] sm:$0xff] (%p50_p4)  ;;  %v200_v1 = vld [vmem:[%s913_s26 + $0x10] sm:$0xff] (%p50_p4) }
  0x13   : > { %v202_v2 = vld [vmem:[%s913_s26 + $0x20] sm:$0xff] (%p50_p4)  ;;  %199 = vst [vmem:[%s136_s27] sm:$0xff] (%p50_p4), %v198_v0  ;;  %v204_v3 = vld [vmem:[%s913_s26 + $0x30] sm:$0xff] (%p50_p4) }
  0x14   : > { %201 = vst [vmem:[%s136_s27 + $0x8] sm:$0xff] %v200_v1  ;;  %v206_v4 = vld [vmem:[%s913_s26 + $0x40] sm:$0xff]  ;;  %v208_v5 = vld [vmem:[%s913_s26 + $0x50] sm:$0xff] }
  0x15   : > { %203 = vst [vmem:[%s136_s27 + $0x10] sm:$0xff] %v202_v2  ;;  %v210_v6 = vld [vmem:[%s913_s26 + $0x60] sm:$0xff]  ;;  %v212_v7 = vld [vmem:[%s913_s26 + $0x70] sm:$0xff] }
  0x16   : > { %205 = vst [vmem:[%s136_s27 + $0x18] sm:$0xff] %v204_v3  ;;  %v214_v8 = vld [vmem:[%s913_s26 + $0x80] sm:$0xff]  ;;  %v216_v9 = vld [vmem:[%s913_s26 + $0x90] sm:$0xff] }
  0x17   : > { %207 = vst [vmem:[%s136_s27 + $0x20] sm:$0xff] %v206_v4  ;;  %v218_v10 = vld [vmem:[%s913_s26 + $0xa0] sm:$0xff]  ;;  %v220_v11 = vld [vmem:[%s913_s26 + $0xb0] sm:$0xff] }
  0x18   : > { %209 = vst [vmem:[%s136_s27 + $0x28] sm:$0xff] %v208_v5  ;;  %v222_v12 = vld [vmem:[%s913_s26 + $0xc0] sm:$0xff]  ;;  %v224_v13 = vld [vmem:[%s913_s26 + $0xd0] sm:$0xff] }
  0x19   : > { %211 = vst [vmem:[%s136_s27 + $0x30] sm:$0xff] %v210_v6  ;;  %v226_v14 = vld [vmem:[%s913_s26 + $0xe0] sm:$0xff]  ;;  %v228_v15 = vld [vmem:[%s913_s26 + $0xf0] sm:$0xff] }
  0x1a   : > { %213 = vst [vmem:[%s136_s27 + $0x38] sm:$0xff] %v212_v7 }
  0x1b   : > { %215 = vst [vmem:[%s136_s27 + $0x40] sm:$0xff] %v214_v8 }
  0x1c   : > { %217 = vst [vmem:[%s136_s27 + $0x48] sm:$0xff] %v216_v9 }
  0x1d   : > { %219 = vst [vmem:[%s136_s27 + $0x50] sm:$0xff] %v218_v10 }
  0x1e   : > { %221 = vst [vmem:[%s136_s27 + $0x58] sm:$0xff] %v220_v11 }
  0x1f   : > { %223 = vst [vmem:[%s136_s27 + $0x60] sm:$0xff] %v222_v12 }
  0x20   : > { %225 = vst [vmem:[%s136_s27 + $0x68] sm:$0xff] %v224_v13 }
  0x21   : > { %227 = vst [vmem:[%s136_s27 + $0x70] sm:$0xff] %v226_v14 }
  0x22   : > { %229 = vst [vmem:[%s136_s27 + $0x78] sm:$0xff] %v228_v15 }
  0x23 PF: > { %p668_p7 = scmp.ge.s32.totalorder %s850_s14, 1  ;;  %p242_p8 = scmp.lt.s32.totalorder %s850_s14, 3 }
  0x25   : > { %p243_p9 = pnand %p668_p7, %p242_p8 }
  0x26   : > { %s249_s28 = sand.u32 (!%p243_p9), 1, %s842_s12   ;;  %s670_s10 = sshll.u32 (!%p243_p9), %s888_s15, 1 }
  0x27   : > { %246 = sbr.rel (%p243_p9) target bundleno = 261 (0x105), region = 66  ;;  %s669_s29 = sshll.u32 (!%p243_p9), %s249_s28, 7 }
  0x28   : > { %s936_s30 = scalar_lea.vmem (!%p243_p9), [#allocation2], %s669_s29  ;;  %p277_p10 = scmp.lt.s32.totalorder (!%p243_p9), %s670_s10, 3 }
  0x29   : > { %s783_s18 = smul.u32 (!%p243_p9), 80, %s249_s28 }
  0x2b   : > { %s1053_s12 = scalar_lea.vmem (!%p243_p9), [#allocation3], %s783_s18 }
  0x2c   : > { %v737_v16 = vld [vmem:[%s936_s30 + $0x70] sm:$0xf]  ;;  %v765_v17 = vld [vmem:[%s936_s30 + $0x74] sm:$0xf0]  ;;  %v764_v18 = vld [vmem:[%s936_s30 + $0x74] sm:$0xf] }
  0x2d   : > { %v738_v19 = vor.u32 %v765_v17, %v737_v16  ;;  %v739_v20 = vld [vmem:[%s936_s30 + $0x78] sm:$0xf0]  ;;  %v729_v21 = vld [vmem:[%s936_s30 + $0x60] sm:$0xf]  ;;  %v763_v22 = vld [vmem:[%s936_s30 + $0x64] sm:$0xf0] }
  0x2e   : > { %v742_v23 = vor.u32 %v764_v18, %v739_v20  ;;  %v762_v24 = vld [vmem:[%s936_s30 + $0x64] sm:$0xf]  ;;  %v731_v25 = vld [vmem:[%s936_s30 + $0x68] sm:$0xf0]  ;;  %v730_v26 = vor.u32 %v763_v22, %v729_v21  ;;  %v721_v28 = vld [vmem:[%s936_s30 + $0x50] sm:$0xf] }
  0x2f   : > { %405 = vmatpush.bf16.msra.mxu0 %v738_v19  ;;  %767 = vmatpush.bf16.msra.mxu2 %v738_v19  ;;  %v734_v27 = vor.u32 %v762_v24, %v731_v25  ;;  %v761_v29 = vld [vmem:[%s936_s30 + $0x54] sm:$0xf0]  ;;  %v760_v30 = vld [vmem:[%s936_s30 + $0x54] sm:$0xf]  ;;  %v723_v31 = vld [vmem:[%s936_s30 + $0x58] sm:$0xf0] }
  0x30   : > { %428 = vmatpush.bf16.msra.mxu1 %v742_v23  ;;  %775 = vmatpush.bf16.msra.mxu3 %v742_v23  ;;  %v722_v32 = vor.u32 %v761_v29, %v721_v28  ;;  %v726_v33 = vor.u32 %v760_v30, %v723_v31  ;;  %v713_v34 = vld [vmem:[%s936_s30 + $0x40] sm:$0xf]  ;;  %v759_v35 = vld [vmem:[%s936_s30 + $0x44] sm:$0xf0]  ;;  %v758_v36 = vld [vmem:[%s936_s30 + $0x44] sm:$0xf] }
  0x31   : > { %v715_v37 = vld [vmem:[%s936_s30 + $0x48] sm:$0xf0]  ;;  %v714_v38 = vor.u32 %v759_v35, %v713_v34  ;;  %v705_v40 = vld [vmem:[%s936_s30 + $0x30] sm:$0xf]  ;;  %v757_v41 = vld [vmem:[%s936_s30 + $0x34] sm:$0xf0] }
  0x32   : > { %v718_v39 = vor.u32 %v758_v36, %v715_v37  ;;  %v756_v42 = vld [vmem:[%s936_s30 + $0x34] sm:$0xf]  ;;  %v707_v43 = vld [vmem:[%s936_s30 + $0x38] sm:$0xf0]  ;;  %v706_v44 = vor.u32 %v757_v41, %v705_v40  ;;  %v697_v46 = vld [vmem:[%s936_s30 + $0x20] sm:$0xf] }
  0x33   : > { %406 = vmatpush.bf16.msra.mxu0 %v730_v26  ;;  %768 = vmatpush.bf16.msra.mxu2 %v730_v26  ;;  %v710_v45 = vor.u32 %v756_v42, %v707_v43  ;;  %v755_v47 = vld [vmem:[%s936_s30 + $0x24] sm:$0xf0]  ;;  %v754_v48 = vld [vmem:[%s936_s30 + $0x24] sm:$0xf]  ;;  %v699_v49 = vld [vmem:[%s936_s30 + $0x28] sm:$0xf0] }
  0x34   : > { %429 = vmatpush.bf16.msra.mxu1 %v734_v27  ;;  %776 = vmatpush.bf16.msra.mxu3 %v734_v27  ;;  %v698_v50 = vor.u32 %v755_v47, %v697_v46  ;;  %v702_v51 = vor.u32 %v754_v48, %v699_v49  ;;  %v689_v52 = vld [vmem:[%s936_s30 + $0x10] sm:$0xf]  ;;  %v753_v53 = vld [vmem:[%s936_s30 + $0x14] sm:$0xf0]  ;;  %v752_v54 = vld [vmem:[%s936_s30 + $0x14] sm:$0xf] }
  0x35   : > { %v691_v55 = vld [vmem:[%s936_s30 + $0x18] sm:$0xf0]  ;;  %v690_v56 = vor.u32 %v753_v53, %v689_v52  ;;  %v681_v58 = vld [vmem:[%s936_s30] sm:$0xf]  ;;  %v751_v59 = vld [vmem:[%s936_s30 + $0x4] sm:$0xf0] }
  0x36   : > { %v694_v57 = vor.u32 %v752_v54, %v691_v55  ;;  %v750_v60 = vld [vmem:[%s936_s30 + $0x4] sm:$0xf]  ;;  %v683_v61 = vld [vmem:[%s936_s30 + $0x8] sm:$0xf0]  ;;  %v682_v62 = vor.u32 %v751_v59, %v681_v58  ;;  %v286_v2 = vld [vmem:[%s1100_s0 + $0x10] sm:$0x1] }
  0x37   : > { %407 = vmatpush.bf16.msra.mxu0 %v722_v32  ;;  %769 = vmatpush.bf16.msra.mxu2 %v722_v32  ;;  %v686_v63 = vor.u32 %v750_v60, %v683_v61  ;;  %v748_v0 = vld [vmem:[%s1100_s0] sm:$0xff]  ;;  %v749_v1 = vld [vmem:[%s1100_s0 + $0x8] sm:$0xff]  ;;  %v318_v3 = vunpack.c.l.b16 %v286_v2  ;;  %s1109_s10 = smov (!%p277_p10, %s670_s10), 3  ;;  %s766_s21 = sshll.u32 (%p903_p5), %s888_s15, 4 }
  0x38   : > { %430 = vmatpush.bf16.msra.mxu1 %v726_v33  ;;  %777 = vmatpush.bf16.msra.mxu3 %v726_v33  ;;  %s279_s17 = scalar_lea.vmem %s1102_s2, %s1109_s10  ;;  %s560_s24 = scalar_lea.vmem (%p903_p5), %s1103_s3, %s766_s21 }
  0x39   : > { %v321_v4 = vpack.c.b16 %v318_v3, %v318_v3  ;;  %v303_v5 = vld [vmem:[%s279_s17] sm:$0x3] }
  0x3a   : > { %v983_v6 = vperm.slane %v303_v5, 0  ;;  %v985_v7 = vperm.slane %v303_v5, 1 }
  0x3b   : > { %408 = vmatpush.bf16.msra.mxu0 %v714_v38  ;;  %770 = vmatpush.bf16.msra.mxu2 %v714_v38 }
  0x3c   : > { %431 = vmatpush.bf16.msra.mxu1 %v718_v39  ;;  %778 = vmatpush.bf16.msra.mxu3 %v718_v39 }
  0x3f   : > { %409 = vmatpush.bf16.msra.mxu0 %v706_v44  ;;  %771 = vmatpush.bf16.msra.mxu2 %v706_v44 }
  0x40   : > { %432 = vmatpush.bf16.msra.mxu1 %v710_v45  ;;  %779 = vmatpush.bf16.msra.mxu3 %v710_v45 }
  0x43   : > { %410 = vmatpush.bf16.msra.mxu0 %v698_v50  ;;  %772 = vmatpush.bf16.msra.mxu2 %v698_v50 }
  0x44   : > { %433 = vmatpush.bf16.msra.mxu1 %v702_v51  ;;  %780 = vmatpush.bf16.msra.mxu3 %v702_v51 }
  0x47   : > { %411 = vmatpush.bf16.msra.mxu0 %v690_v56  ;;  %773 = vmatpush.bf16.msra.mxu2 %v690_v56 }
  0x48   : > { %434 = vmatpush.bf16.msra.mxu1 %v694_v57  ;;  %781 = vmatpush.bf16.msra.mxu3 %v694_v57 }
  0x4b   : > { %412 = vmatpush.bf16.msra.mxu0 %v682_v62  ;;  %774 = vmatpush.bf16.msra.mxu2 %v682_v62 }
  0x4c   : > { %435 = vmatpush.bf16.msra.mxu1 %v686_v63  ;;  %782 = vmatpush.bf16.msra.mxu3 %v686_v63 }
  0x4e   : > { %413 = vmatmul.bf16.vlgmr.msra.gmra.mxu0 %v748_v0  ;;  %418 = vmatmul.bf16.vlgmr.msra.gmra.mxu2 %v749_v1 }
  0x4f   : > { %436 = vmatmul.bf16.vlgmr.msra.gmra.mxu1 %v748_v0  ;;  %441 = vmatmul.bf16.vlgmr.msra.gmra.mxu3 %v749_v1 }
  0x5e   : > { %423 = vmatmul.bf16.gmra.mxu2 %v321_v4 }
  0x5f   : > { %446 = vmatmul.bf16.gmra.mxu3 %v321_v4 }
  0xcb   : > { %v414_v8 = vpop.f32.mrf.mxu0 }
  0xcc   : > { %v988_v9 = vadd.f32 %v414_v8, %v983_v6  ;;  %v437_v10 = vpop.f32.mrf.mxu1 }
  0xcd   : > { %v991_v11 = vadd.f32 %v437_v10, %v985_v7 }
  0xce   : > { %v451_v12 = vmul.f32 %v988_v9, %v988_v9 }
  0xcf   : > { %v452_v13 = vmul.f32 %v991_v11, %v991_v11 }
  0xd0   : > { %v461_v14 = vmul.f32 %v451_v12, %v988_v9 }
  0xd1   : > { %v462_v15 = vmul.f32 %v452_v13, %v991_v11  ;;  %v419_v16 = vpop.f32.mrf.mxu2 }
  0xd2   : > { %v471_v17 = vmul.f32 0.044715, %v461_v14  ;;  %v1000_v18 = vadd.f32 %v419_v16, %v983_v6  ;;  %v442_v19 = vpop.f32.mrf.mxu3 }
  0xd3   : > { %v472_v20 = vmul.f32 0.044715, %v462_v15  ;;  %v1003_v21 = vadd.f32 %v442_v19, %v985_v7  ;;  %v416_v22 = vpop.f32.mrf.mxu0 }
  0xd4   : > { %v481_v23 = vadd.f32 %v471_v17, %v988_v9  ;;  %v455_v24 = vmul.f32 %v1000_v18, %v1000_v18  ;;  %v1009_v25 = vadd.f32 %v416_v22, %v983_v6  ;;  %v439_v26 = vpop.f32.mrf.mxu1 }
  0xd5   : > { %v482_v27 = vadd.f32 %v472_v20, %v991_v11  ;;  %v456_v28 = vmul.f32 %v1003_v21, %v1003_v21  ;;  %v1015_v29 = vadd.f32 %v439_v26, %v985_v7 }
  0xd6   : > { %v491_v30 = vmul.f32 0.7978846, %v481_v23  ;;  %v465_v31 = vmul.f32 %v455_v24, %v1000_v18  ;;  %v453_v32 = vmul.f32 %v1009_v25, %v1009_v25 }
  0xd7   : > { %v492_v33 = vmul.f32 0.7978846, %v482_v27  ;;  %v466_v34 = vmul.f32 %v456_v28, %v1003_v21  ;;  %v454_v35 = vmul.f32 %v1015_v29, %v1015_v29 }
  0xd8   : > { %808 = vtanh.f32 %v491_v30  ;;  %v475_v36 = vmul.f32 0.044715, %v465_v31  ;;  %v463_v37 = vmul.f32 %v453_v32, %v1009_v25 }
  0xd9   : > { %810 = vtanh.f32 %v492_v33  ;;  %v476_v38 = vmul.f32 0.044715, %v466_v34  ;;  %v464_v39 = vmul.f32 %v454_v35, %v1015_v29  ;;  %v421_v40 = vpop.f32.mrf.mxu2 }
  0xda   : > { %v485_v41 = vadd.f32 %v475_v36, %v1000_v18  ;;  %v473_v42 = vmul.f32 0.044715, %v463_v37  ;;  %v1027_v43 = vadd.f32 %v421_v40, %v983_v6  ;;  %v444_v44 = vpop.f32.mrf.mxu3 }
  0xdb   : > { %v486_v45 = vadd.f32 %v476_v38, %v1003_v21  ;;  %v474_v46 = vmul.f32 0.044715, %v464_v39  ;;  %v1031_v47 = vadd.f32 %v444_v44, %v985_v7 }
  0xdc   : > { %v495_v48 = vmul.f32 0.7978846, %v485_v41  ;;  %v483_v49 = vadd.f32 %v473_v42, %v1009_v25  ;;  %v457_v50 = vmul.f32 %v1027_v43, %v1027_v43 }
  0xdd   : > { %v496_v51 = vmul.f32 0.7978846, %v486_v45  ;;  %v484_v52 = vadd.f32 %v474_v46, %v1015_v29  ;;  %v458_v53 = vmul.f32 %v1031_v47, %v1031_v47 }
  0xde   : > { %v809_v54 = vpop.eup %808  ;;  %812 = vtanh.f32 %v495_v48  ;;  %v493_v55 = vmul.f32 0.7978846, %v483_v49  ;;  %v467_v56 = vmul.f32 %v457_v50, %v1027_v43 }
  0xdf   : > { %v811_v57 = vpop.eup %810  ;;  %v511_v58 = vadd.f32 1.0, %v809_v54  ;;  %814 = vtanh.f32 %v496_v51  ;;  %v494_v59 = vmul.f32 0.7978846, %v484_v52  ;;  %v468_v60 = vmul.f32 %v458_v53, %v1031_v47 }
  0xe0   : > { %v512_v61 = vadd.f32 1.0, %v811_v57  ;;  %816 = vtanh.f32 %v493_v55  ;;  %v477_v62 = vmul.f32 0.044715, %v467_v56 }
  0xe1   : > { %v521_v63 = vmul.f32 0.5, %v511_v58  ;;  %818 = vtanh.f32 %v494_v59  ;;  %v478_v0 = vmul.f32 0.044715, %v468_v60  ;;  %v424_v1 = vpop.f32.mrf.mxu2 }
  0xe2   : > { %v522_v2 = vmul.f32 0.5, %v512_v61  ;;  %v487_v3 = vadd.f32 %v477_v62, %v1027_v43  ;;  %v1045_v4 = vadd.f32 %v424_v1, %v983_v6  ;;  %v447_v5 = vpop.f32.mrf.mxu3 }
  0xe3   : > { %v531_v8 = vmul.f32 %v521_v63, %v988_v9  ;;  %v488_v10 = vadd.f32 %v478_v0, %v1031_v47  ;;  %v448_v12 = vadd.f32 %v447_v5, %v985_v7 }
  0xe4   : > { %v813_v13 = vpop.eup %812  ;;  %v532_v14 = vmul.f32 %v522_v2, %v991_v11  ;;  %v497_v15 = vmul.f32 0.7978846, %v487_v3  ;;  %v459_v16 = vmul.f32 %v1045_v4, %v1045_v4 }
  0xe5   : > { %v815_v17 = vpop.eup %814  ;;  %541 = vst [vmem:[%s1053_s12] sm:$0xff] %v531_v8  ;;  %v515_v6 = vadd.f32 1.0, %v813_v13  ;;  %v498_v19 = vmul.f32 0.7978846, %v488_v10  ;;  %v460_v9 = vmul.f32 %v448_v12, %v448_v12 }
  0xe6   : > { %v817_v20 = vpop.eup %816  ;;  %542 = vst [vmem:[%s1053_s12 + $0x8] sm:$0xff] %v532_v14  ;;  %v516_v22 = vadd.f32 1.0, %v815_v17  ;;  %820 = vtanh.f32 %v497_v15  ;;  %v469_v7 = vmul.f32 %v459_v16, %v1045_v4 }
  0xe7   : > { %v819_v11 = vpop.eup %818  ;;  %v525_v23 = vmul.f32 0.5, %v515_v6  ;;  %v513_v24 = vadd.f32 1.0, %v817_v20  ;;  %822 = vtanh.f32 %v498_v19  ;;  %v470_v26 = vmul.f32 %v460_v9, %v448_v12 }
  0xe8   : > { %v526_v27 = vmul.f32 0.5, %v516_v22  ;;  %v514_v28 = vadd.f32 1.0, %v819_v11  ;;  %v479_v30 = vmul.f32 0.044715, %v469_v7 }
  0xe9   : > { %v535_v31 = vmul.f32 %v525_v23, %v1000_v18  ;;  %v523_v32 = vmul.f32 0.5, %v513_v24  ;;  %v480_v33 = vmul.f32 0.044715, %v470_v26  ;;  %v426_v34 = vpop.f32.mrf.mxu2 }
  0xea   : > { %v536_v35 = vmul.f32 %v526_v27, %v1003_v21  ;;  %v524_v36 = vmul.f32 0.5, %v514_v28  ;;  %v489_v37 = vadd.f32 %v479_v30, %v1045_v4  ;;  %v449_v38 = vpop.f32.mrf.mxu3 }
  0xeb   : > { %545 = vst [vmem:[%s1053_s12 + $0x20] sm:$0xff] %v535_v31  ;;  %v533_v39 = vmul.f32 %v523_v32, %v1009_v25  ;;  %v490_v40 = vadd.f32 %v480_v33, %v448_v12 }
  0xec   : > { %v821_v41 = vpop.eup %820  ;;  %546 = vst [vmem:[%s1053_s12 + $0x28] sm:$0xff] %v536_v35  ;;  %v534_v18 = vmul.f32 %v524_v36, %v1015_v29  ;;  %v499_v42 = vmul.f32 0.7978846, %v489_v37 }
  0xed   : > { %v823_v44 = vpop.eup %822  ;;  %543 = vst [vmem:[%s1053_s12 + $0x10] sm:$0xff] %v533_v39  ;;  %v517_v45 = vadd.f32 1.0, %v821_v41  ;;  %v500_v46 = vmul.f32 0.7978846, %v490_v40 }
  0xee   : > { %544 = vst [vmem:[%s1053_s12 + $0x18] sm:$0xff] %v534_v18  ;;  %v518_v21 = vadd.f32 1.0, %v823_v44  ;;  %824 = vtanh.f32 %v499_v42 }
  0xef   : > { %v527_v48 = vmul.f32 0.5, %v517_v45  ;;  %826 = vtanh.f32 %v500_v46 }
  0xf0   : > { %v528_v25 = vmul.f32 0.5, %v518_v21 }
  0xf1   : > { %v537_v49 = vmul.f32 %v527_v48, %v1027_v43  ;;  %v573_v43 = vld [vmem:[%s1053_s12] sm:$0xff] (%p903_p5) }
  0xf2   : > { %v538_v50 = vmul.f32 %v528_v25, %v1031_v47  ;;  %v575_v47 = vld [vmem:[%s1053_s12 + $0x8] sm:$0xff] (%p903_p5)  ;;  %574 = vst [vmem:[%s560_s24] sm:$0xff] (%p903_p5), %v573_v43  ;;  %v581_v60 = vld [vmem:[%s1053_s12 + $0x20] sm:$0xff] (%p903_p5) }
  0xf3   : > { %547 = vst [vmem:[%s1053_s12 + $0x30] sm:$0xff] %v537_v49  ;;  %v583_v61 = vld [vmem:[%s1053_s12 + $0x28] sm:$0xff] (%p903_p5) }
  0xf4   : > { %v825_v29 = vpop.eup %824  ;;  %548 = vst [vmem:[%s1053_s12 + $0x38] sm:$0xff] %v538_v50  ;;  %v577_v58 = vld [vmem:[%s1053_s12 + $0x10] sm:$0xff] (%p903_p5) }
  0xf5   : > { %v827_v51 = vpop.eup %826  ;;  %v519_v52 = vadd.f32 1.0, %v825_v29  ;;  %v579_v59 = vld [vmem:[%s1053_s12 + $0x18] sm:$0xff] (%p903_p5)  ;;  %576 = vst [vmem:[%s560_s24 + $0x8] sm:$0xff] (%p903_p5), %v575_v47 }
  0xf6   : > { %v520_v53 = vadd.f32 1.0, %v827_v51  ;;  %578 = vst [vmem:[%s560_s24 + $0x20] sm:$0xff] (%p903_p5), %v577_v58 }
  0xf7   : > { %v529_v54 = vmul.f32 0.5, %v519_v52  ;;  %580 = vst [vmem:[%s560_s24 + $0x28] sm:$0xff] (%p903_p5), %v579_v59 }
  0xf8   : > { %v530_v55 = vmul.f32 0.5, %v520_v53  ;;  %557 = sbr.rel (!%p903_p5) target bundleno = 261 (0x105), region = 74  ;;  %582 = vst [vmem:[%s560_s24 + $0x40] sm:$0xff] (%p903_p5), %v581_v60 }
  0xf9   : > { %v539_v56 = vmul.f32 %v529_v54, %v1045_v4  ;;  %584 = vst [vmem:[%s560_s24 + $0x48] sm:$0xff] (%p903_p5), %v583_v61 }
  0xfa   : > { %v540_v57 = vmul.f32 %v530_v55, %v448_v12  ;;  %v585_v62 = vld [vmem:[%s1053_s12 + $0x30] sm:$0xff] (%p903_p5) }
  0xfb   : > { %549 = vst [vmem:[%s1053_s12 + $0x40] sm:$0x3] %v539_v56  ;;  %v587_v63 = vld [vmem:[%s1053_s12 + $0x38] sm:$0xff] (%p903_p5) }
  0xfc   : > { %550 = vst [vmem:[%s1053_s12 + $0x48] sm:$0x3] %v540_v57 }
  0xfd   : > { %586 = vst [vmem:[%s560_s24 + $0x60] sm:$0xff] %v585_v62 }
  0xfe   : > { %588 = vst [vmem:[%s560_s24 + $0x68] sm:$0xff] %v587_v63 }
 0x102   : > { %v589_v0 = vld [vmem:[%s1053_s12 + $0x40] sm:$0xff] }
 0x103   : > { %v591_v1 = vld [vmem:[%s1053_s12 + $0x48] sm:$0xff]  ;;  %590 = vst [vmem:[%s560_s24 + $0x80] sm:$0xff] %v589_v0 }
 0x104   : > { %592 = vst [vmem:[%s560_s24 + $0x88] sm:$0xff] %v591_v1 }
 0x105 PF: > { %p10_p11 = scmp.ge.s32.totalorder %s891_s16, 4   ;;  %s1105_s12 = smov %s846_s13 }
 0x106   : > { %s1106_s13 = smov %s901_s19  ;;  %s1107_s14 = smov %s891_s16 }
 0x107   :  { %12 = sbr.rel (!%p10_p11) target bundleno = 2 (0x2), region = 131 }

// kernel: local_scale_feature_transformer_forward.107
= control target key start
LH: loop header
LB: loop body
LE: loop exit
PB: predicated region body
PF: predicated region fallthrough
CT: control target
= control target key end

     0   :  { %s588_s15 = smov 0   ;;  %s653_s0 = inlined_call_operand.vmem [shape: f32[8,17,32], index: 0, kind: input, shape index: {}]   ;;  %s654_s1 = inlined_call_operand.vmem [shape: f32[8,17,32], index: 1, kind: input, shape index: {}]   ;;  %s655_s2 = inlined_call_operand.vmem [shape: f32[8,17,32], index: 2, kind: input, shape index: {}]   ;;  %s656_s3 = inlined_call_operand.vmem [shape: f32[8,17,17], index: 3, kind: input, shape index: {}]   ;;  %s657_s4 = inlined_call_operand.vmem [shape: f32[8,17,32], index: 4, kind: output, shape index: {}]  }
   0x1 LB: > { %s506_s16 = sadd.s32 4294967295, %s561_s15   ;;  %p510_p0 = scmp.ge.s32.totalorder %s561_s15, 1  ;;  %s561_s15 = sphi %s588_s15, %s14_s15  }
   0x2   : > { %p192_p1 = scmp.lt.s32.totalorder %s561_s15, 9 }
   0x4   : > { %p193_p2 = pnand %p510_p0, %p192_p1 }
   0x5   : > { %p233_p3 = scmp.lt.s32.totalorder (!%p193_p2), %s506_s16, 7 }
   0x6   : > { %196 = sbr.rel (%p193_p2) target bundleno = 434 (0x1b2), region = 36 }
   0xb   : > { %s659_s16 = smov (!%p233_p3, %s506_s16), 7  ;;  %vm273_vm0 = vcmask 261120   ;;  %vm318_vm1 = vcmask 138240   ;;  %vm325_vm2 = vcmask 131072   ;;  %vm359_vm3 = vcmask 1040384  }
   0xc   : > { %s596_s17 = smul.u32 24, %s659_s16  ;;  %v392_v39 = vlaneseq  ;;  %vm413_vm5 = vcmask 253952  }
   0xe   : > { %s242_s20 = scalar_lea.vmem %s654_s1, %s596_s17  ;;  %s237_s23 = scalar_lea.vmem %s653_s0, %s596_s17  ;;  %v393_v41 = vshrl.u32 %v392_v39, 7 }
   0xf   : > { %v263_v0 = vld [vmem:[%s242_s20 + $0x10] sm:$0x1]  ;;  %v262_v1 = vld [vmem:[%s242_s20 + $0x8] sm:$0xff]  ;;  %v610_v2 = vld [vmem:[%s237_s23] sm:$0xff]  ;;  %s252_s26 = scalar_lea.vmem %s656_s3, %s596_s17  ;;  %s247_s29 = scalar_lea.vmem %s655_s2, %s596_s17 }
  0x10   : > { %516 = vmatpush.xpose.msk.msra.mxu0 %vm273_vm0, %v263_v0  ;;  %528 = vmatpush.xpose.msk.msra.mxu2 %vm273_vm0, %v263_v0  ;;  %v612_v3 = vld [vmem:[%s237_s23 + $0x8] sm:$0xff]  ;;  %v261_v4 = vld [vmem:[%s242_s20] sm:$0xff]  ;;  %v267_v5 = vmul.f32 0.17677669, %v610_v2  ;;  %v620_v7 = vld [vmem:[%s237_s23 + $0x10] sm:$0x1]  ;;  %s257_s6 = scalar_lea.vmem %s657_s4, %s596_s17 }
  0x11   : > { %v268_v6 = vmul.f32 0.17677669, %v612_v3  ;;  %v269_v8 = vmul.f32 0.17677669, %v620_v7  ;;  %v270_v9 = vld [vmem:[%s252_s26] sm:$0xff]  ;;  %v271_v13 = vld [vmem:[%s252_s26 + $0x8] sm:$0xff] }
  0x12   : > { %v272_v17 = vld [vmem:[%s252_s26 + $0x10] sm:$0x1]  ;;  %v265_v22 = vld [vmem:[%s247_s29 + $0x8] sm:$0xff]  ;;  %v264_v23 = vld [vmem:[%s247_s29] sm:$0xff]  ;;  %vm396_vm4 = vcmp.ge.s32.totalorder %v393_v41, 1 }
  0x13   : > { %v266_v21 = vld [vmem:[%s247_s29 + $0x10] sm:$0x1]  ;;  %v405_v44 = vsel %vm396_vm4, %v610_v2, 0.0 }
  0x14   : > { %517 = vmatpush.xpose.msk.msra.mxu0 %vm273_vm0, %v262_v1  ;;  %529 = vmatpush.xpose.msk.msra.mxu2 %vm273_vm0, %v262_v1 }
  0x15   : > { %522 = vmatpush.msk.msra.mxu1 %vm359_vm3, %v266_v21  ;;  %531 = vmatpush.msk.msra.mxu3 %vm359_vm3, %v266_v21 }
  0x17   : > { %377 = vmatpush.msra.mxu1 %v265_v22  ;;  %532 = vmatpush.msra.mxu3 %v265_v22 }
  0x18   : > { %518 = vmatpush.xpose.msk.msra.mxu0 %vm273_vm0, %v261_v4  ;;  %530 = vmatpush.xpose.msk.msra.mxu2 %vm273_vm0, %v261_v4 }
  0x19   : > { %378 = vmatpush.msra.mxu1 %v264_v23  ;;  %533 = vmatpush.msra.mxu3 %v264_v23 }
  0x1b   : > { %519 = vmatmul.msk.f32.vlgmr.msra.gmra.mxu0 %vm273_vm0, %v267_v5  ;;  %520 = vmatmul.msk.f32.vlgmr.msra.gmra.mxu2 %vm273_vm0, %v268_v6 }
  0x23   : > { %521 = vmatmul.msk.f32.gmra.mxu2 %vm273_vm0, %v269_v8 }
  0x98   : > { %v309_v10 = vpop.f32.mrf.mxu0 }
  0x99   : > { %v310_v11 = vadd.f32 %v309_v10, %v270_v9 }
  0x9b   : > { %v319_v12 = vsel %vm318_vm1, %v310_v11, -inf }
  0x9c   : > { %320 = vmax.xlane.f32.xlu1 %v319_v12 }
  0x9e   : > { %v312_v14 = vpop.f32.mrf.mxu2 }
  0x9f   : > { %v313_v15 = vadd.f32 %v312_v14, %v271_v13 }
  0xa1   : > { %v322_v16 = vsel %vm318_vm1, %v313_v15, -inf }
  0xa2   : > { %323 = vmax.xlane.f32.xlu0 %v322_v16 }
  0xa6   : > { %v315_v18 = vpop.f32.mrf.mxu2 }
  0xa7   : > { %v316_v19 = vadd.f32 %v315_v18, %v272_v17 }
  0xa9   : > { %v326_v20 = vsel %vm325_vm2, %v316_v19, -inf }
  0xaa   : > { %327 = vmax.xlane.f32.xlu0 %v326_v20 }
 0x10f   : > { %v321_v24 = vpop.xlane.xlu1 %320 }
 0x110   : > { %v329_v25 = vsub.f32 %v310_v11, %v321_v24 }
 0x112   : > { %v332_v26 = vmul.f32 1.442695, %v329_v25 }
 0x114   : > { %543 = vpow2.f32 %v332_v26 }
 0x115   : > { %v324_v27 = vpop.xlane.xlu0 %323 }
 0x116   : > { %v330_v28 = vsub.f32 %v313_v15, %v324_v27 }
 0x118   : > { %v334_v29 = vmul.f32 1.442695, %v330_v28 }
 0x11a   : > { %v544_v30 = vpop.eup %543  ;;  %545 = vpow2.f32 %v334_v29 }
 0x11b   : > { %523 = vmatmul.msk.f32.vlgmr.msra.gmra.mxu1 %vm318_vm1, %v544_v30  ;;  %v338_v31 = vsel %vm318_vm1, %v544_v30, 0.0 }
 0x11c   : > { %339 = vadd.xlane.f32.xlu1 %v338_v31 }
 0x11d   : > { %v328_v32 = vpop.xlane.xlu0 %327 }
 0x11e   : > { %v331_v33 = vsub.f32 %v316_v19, %v328_v32 }
 0x120   : > { %v546_v34 = vpop.eup %545  ;;  %v336_v35 = vmul.f32 1.442695, %v331_v33 }
 0x121   : > { %524 = vmatmul.msk.f32.vlgmr.msra.gmra.mxu3 %vm318_vm1, %v546_v34  ;;  %v341_v36 = vsel %vm318_vm1, %v546_v34, 0.0 }
 0x122   : > { %547 = vpow2.f32 %v336_v35  ;;  %342 = vadd.xlane.f32.xlu2 %v341_v36 }
 0x128   : > { %v548_v37 = vpop.eup %547 }
 0x129   : > { %525 = vmatmul.msk.f32.gmra.mxu3 %vm318_vm1, %v548_v37  ;;  %v344_v38 = vsel %vm325_vm2, %v548_v37, 0.0 }
 0x12a   : > { %345 = vadd.xlane.f32.xlu2 %v344_v38 }
 0x18f   : > { %v340_v40 = vpop.xlane.xlu1 %339 }
 0x190   : > { %549 = vrcp.f32 %v340_v40 }
 0x195   : > { %v343_v45 = vpop.xlane.xlu2 %342 }
 0x196   : > { %v550_v42 = vpop.eup %549  ;;  %551 = vrcp.f32 %v343_v45 }
 0x198   : > { %v380_v43 = vpop.f32.mrf.mxu1 }
 0x199   : > { %v389_v46 = vmul.f32 %v550_v42, %v380_v43 }
 0x19b   : > { %v408_v47 = vadd.f32 %v405_v44, %v389_v46 }
 0x19c   : > { %v552_v49 = vpop.eup %551 }
 0x19d   : > { %411 = vst.msk [vmem:[%s257_s6] sm:$0xff] %vm273_vm0, %v408_v47  ;;  %v346_v48 = vpop.xlane.xlu2 %345 }
 0x19e   : > { %553 = vrcp.f32 %v346_v48 }
 0x1a4   : > { %v383_v50 = vpop.f32.mrf.mxu3  ;;  %v554_v53 = vpop.eup %553 }
 0x1a5   : > { %v390_v51 = vmul.f32 %v552_v49, %v383_v50 }
 0x1a7   : > { %v409_v52 = vadd.f32 %v390_v51, %v612_v3 }
 0x1a9   : > { %412 = vst.msk [vmem:[%s257_s6 + $0x8] sm:$0xff] %vm273_vm0, %v409_v52 }
 0x1ac   : > { %v386_v54 = vpop.f32.mrf.mxu3 }
 0x1ad   : > { %v391_v55 = vmul.f32 %v554_v53, %v386_v54 }
 0x1af   : > { %v410_v56 = vadd.f32 %v391_v55, %v620_v7 }
 0x1b1   : > { %414 = vst.msk [vmem:[%s257_s6 + $0x10] sm:$0x1] %vm413_vm5, %v410_v56 }
 0x1b2 PF: > { %s14_s15 = sadd.s32 1, %s561_s15  }
 0x1b3   : > { %p11_p4 = scmp.ge.s32.totalorder %s14_s15, 10  }
 0x1b5   :  { %13 = sbr.rel (!%p11_p4) target bundleno = 1 (0x1), region = 75 }

// kernel: local_scale_feature_transformer_forward.111
= control target key start
LH: loop header
LB: loop body
LE: loop exit
PB: predicated region body
PF: predicated region fallthrough
CT: control target
= control target key end

     0   :  { %s828_s1 = inlined_call_operand.vmem [shape: bf16[512,128], index: 1, kind: input, shape index: {}]   ;;  %s829_s2 = inlined_call_operand.vmem [shape: f32[1,128], index: 2, kind: input, shape index: {}]   ;;  %s830_s0 = inlined_call_operand.vmem [shape: bf16[34,512], index: 0, kind: input, shape index: {}]   ;;  %s831_s3 = inlined_call_operand.vmem [shape: f32[34,128], index: 3, kind: output, shape index: {}]  }
   0x1   :  { %v614_v0 = vld [vmem:[%s828_s1 + $0x38] sm:$0xff]  ;;  %v613_v4 = vld [vmem:[%s828_s1 + $0x30] sm:$0xff]  ;;  %v612_v8 = vld [vmem:[%s828_s1 + $0x28] sm:$0xff] }
   0x2   :  { %v622_v1 = vld [vmem:[%s828_s1 + $0x78] sm:$0xff]  ;;  %338 = vmatpush.bf16.msra.mxu0 %v614_v0  ;;  %v621_v5 = vld [vmem:[%s828_s1 + $0x70] sm:$0xff]  ;;  %v620_v9 = vld [vmem:[%s828_s1 + $0x68] sm:$0xff] }
   0x3   :  { %v630_v2 = vld [vmem:[%s828_s1 + $0xb8] sm:$0xff]  ;;  %361 = vmatpush.bf16.msra.mxu1 %v622_v1  ;;  %v629_v6 = vld [vmem:[%s828_s1 + $0xb0] sm:$0xff]  ;;  %v628_v10 = vld [vmem:[%s828_s1 + $0xa8] sm:$0xff] }
   0x4   :  { %v638_v3 = vld [vmem:[%s828_s1 + $0xf8] sm:$0xff]  ;;  %384 = vmatpush.bf16.msra.mxu2 %v630_v2  ;;  %v637_v7 = vld [vmem:[%s828_s1 + $0xf0] sm:$0xff]  ;;  %v636_v11 = vld [vmem:[%s828_s1 + $0xe8] sm:$0xff] }
   0x5   :  { %407 = vmatpush.bf16.msra.mxu3 %v638_v3  ;;  %v611_v12 = vld [vmem:[%s828_s1 + $0x20] sm:$0xff]  ;;  %v610_v16 = vld [vmem:[%s828_s1 + $0x18] sm:$0xff]  ;;  %v609_v20 = vld [vmem:[%s828_s1 + $0x10] sm:$0xff] }
   0x6   :  { %339 = vmatpush.bf16.msra.mxu0 %v613_v4  ;;  %v619_v13 = vld [vmem:[%s828_s1 + $0x60] sm:$0xff]  ;;  %v618_v17 = vld [vmem:[%s828_s1 + $0x58] sm:$0xff]  ;;  %v617_v21 = vld [vmem:[%s828_s1 + $0x50] sm:$0xff] }
   0x7   :  { %362 = vmatpush.bf16.msra.mxu1 %v621_v5  ;;  %v627_v14 = vld [vmem:[%s828_s1 + $0xa0] sm:$0xff]  ;;  %v626_v18 = vld [vmem:[%s828_s1 + $0x98] sm:$0xff]  ;;  %v625_v22 = vld [vmem:[%s828_s1 + $0x90] sm:$0xff] }
   0x8   :  { %385 = vmatpush.bf16.msra.mxu2 %v629_v6  ;;  %v635_v15 = vld [vmem:[%s828_s1 + $0xe0] sm:$0xff]  ;;  %v634_v19 = vld [vmem:[%s828_s1 + $0xd8] sm:$0xff]  ;;  %v633_v23 = vld [vmem:[%s828_s1 + $0xd0] sm:$0xff] }
   0x9   :  { %408 = vmatpush.bf16.msra.mxu3 %v637_v7  ;;  %v608_v24 = vld [vmem:[%s828_s1 + $0x8] sm:$0xff]  ;;  %v607_v28 = vld [vmem:[%s828_s1] sm:$0xff]  ;;  %v601_v33 = vld [vmem:[%s830_s0 + $0xc] sm:$0xf0] }
   0xa   :  { %340 = vmatpush.bf16.msra.mxu0 %v612_v8  ;;  %v616_v25 = vld [vmem:[%s828_s1 + $0x48] sm:$0xff]  ;;  %v615_v29 = vld [vmem:[%s828_s1 + $0x40] sm:$0xff]  ;;  %v443_v35 = vld [vmem:[%s830_s0 + $0x10] sm:$0xf0] }
   0xb   :  { %363 = vmatpush.bf16.msra.mxu1 %v620_v9  ;;  %v624_v26 = vld [vmem:[%s828_s1 + $0x88] sm:$0xff]  ;;  %v623_v30 = vld [vmem:[%s828_s1 + $0x80] sm:$0xff]  ;;  %v602_v37 = vld [vmem:[%s830_s0 + $0x14] sm:$0xf0] }
   0xc   :  { %386 = vmatpush.bf16.msra.mxu2 %v628_v10  ;;  %v632_v27 = vld [vmem:[%s828_s1 + $0xc8] sm:$0xff]  ;;  %v631_v31 = vld [vmem:[%s828_s1 + $0xc0] sm:$0xff]  ;;  %v451_v39 = vld [vmem:[%s830_s0 + $0x18] sm:$0xf0] }
   0xd   :  { %409 = vmatpush.bf16.msra.mxu3 %v636_v11  ;;  %v441_v32 = vld [vmem:[%s830_s0] sm:$0xf]  ;;  %v599_v34 = vld [vmem:[%s830_s0 + $0x4] sm:$0xf]  ;;  %v449_v36 = vld [vmem:[%s830_s0 + $0x8] sm:$0xf] }
   0xe   :  { %341 = vmatpush.bf16.msra.mxu0 %v611_v12  ;;  %v600_v38 = vld [vmem:[%s830_s0 + $0xc] sm:$0xf]  ;;  %v442_v40 = vor.u32 %v601_v33, %v441_v32  ;;  %v446_v41 = vor.u32 %v599_v34, %v443_v35  ;;  %v450_v42 = vor.u32 %v602_v37, %v449_v36  ;;  %v457_v44 = vld [vmem:[%s830_s0 + $0x20] sm:$0xf]  ;;  %v605_v45 = vld [vmem:[%s830_s0 + $0x2c] sm:$0xf0] }
   0xf   :  { %364 = vmatpush.bf16.msra.mxu1 %v619_v13  ;;  %v454_v43 = vor.u32 %v600_v38, %v451_v39  ;;  %v603_v46 = vld [vmem:[%s830_s0 + $0x24] sm:$0xf]  ;;  %v459_v47 = vld [vmem:[%s830_s0 + $0x30] sm:$0xf0]  ;;  %v465_v48 = vld [vmem:[%s830_s0 + $0x28] sm:$0xf]  ;;  %v458_v52 = vor.u32 %v605_v45, %v457_v44 }
  0x10   :  { %387 = vmatpush.bf16.msra.mxu2 %v627_v14  ;;  %v606_v49 = vld [vmem:[%s830_s0 + $0x34] sm:$0xf0]  ;;  %v604_v50 = vld [vmem:[%s830_s0 + $0x2c] sm:$0xf]  ;;  %v467_v51 = vld [vmem:[%s830_s0 + $0x38] sm:$0xf0]  ;;  %v462_v53 = vor.u32 %v603_v46, %v459_v47 }
  0x11   :  { %410 = vmatpush.bf16.msra.mxu3 %v635_v15  ;;  %v466_v54 = vor.u32 %v606_v49, %v465_v48  ;;  %v470_v55 = vor.u32 %v604_v50, %v467_v51  ;;  %v22_v56 = vld [vmem:[%s830_s0 + $0x40] sm:$0x11]  ;;  %v23_v57 = vld [vmem:[%s830_s0 + $0x48] sm:$0x11] }
  0x12   :  { %342 = vmatpush.bf16.msra.mxu0 %v610_v16  ;;  %v118_v58 = vunpack.c.l.b16 %v22_v56  ;;  %v119_v59 = vunpack.c.h.b16 %v22_v56  ;;  %v120_v60 = vunpack.c.l.b16 %v23_v57  ;;  %v121_v61 = vunpack.c.h.b16 %v23_v57  ;;  %v639_v2 = vld [vmem:[%s829_s2] ss:$0 sm:$0xff] }
  0x13   :  { %365 = vmatpush.bf16.msra.mxu1 %v618_v17 }
  0x14   :  { %388 = vmatpush.bf16.msra.mxu2 %v626_v18  ;;  %v130_v62 = vpack.c.b16 %v118_v58, %v118_v58  ;;  %v131_v63 = vpack.c.b16 %v119_v59, %v119_v59  ;;  %v132_v0 = vpack.c.b16 %v120_v60, %v120_v60  ;;  %v133_v1 = vpack.c.b16 %v121_v61, %v121_v61 }
  0x15   :  { %411 = vmatpush.bf16.msra.mxu3 %v634_v19 }
  0x16   :  { %343 = vmatpush.bf16.msra.mxu0 %v609_v20 }
  0x17   :  { %366 = vmatpush.bf16.msra.mxu1 %v617_v21 }
  0x18   :  { %389 = vmatpush.bf16.msra.mxu2 %v625_v22 }
  0x19   :  { %412 = vmatpush.bf16.msra.mxu3 %v633_v23 }
  0x1a   :  { %344 = vmatpush.bf16.msra.mxu0 %v608_v24 }
  0x1b   :  { %367 = vmatpush.bf16.msra.mxu1 %v616_v25 }
  0x1c   :  { %390 = vmatpush.bf16.msra.mxu2 %v624_v26 }
  0x1d   :  { %413 = vmatpush.bf16.msra.mxu3 %v632_v27 }
  0x1e   :  { %345 = vmatpush.bf16.msra.mxu0 %v607_v28 }
  0x1f   :  { %368 = vmatpush.bf16.msra.mxu1 %v615_v29 }
  0x20   :  { %391 = vmatpush.bf16.msra.mxu2 %v623_v30 }
  0x21   :  { %414 = vmatpush.bf16.msra.mxu3 %v631_v31  ;;  %346 = vmatmul.bf16.vlgmr.msra.gmra.mxu0 %v442_v40 }
  0x22   :  { %369 = vmatmul.bf16.vlgmr.msra.gmra.mxu1 %v446_v41 }
  0x23   :  { %392 = vmatmul.bf16.vlgmr.msra.gmra.mxu2 %v450_v42 }
  0x24   :  { %415 = vmatmul.bf16.vlgmr.msra.gmra.mxu3 %v454_v43 }
  0x31   :  { %351 = vmatmul.bf16.gmra.mxu0 %v458_v52 }
  0x32   :  { %374 = vmatmul.bf16.gmra.mxu1 %v462_v53 }
  0x33   :  { %397 = vmatmul.bf16.gmra.mxu2 %v466_v54 }
  0x34   :  { %420 = vmatmul.bf16.gmra.mxu3 %v470_v55 }
  0x41   :  { %356 = vmatmul.bf16.gmra.mxu0 %v130_v62 }
  0x42   :  { %379 = vmatmul.bf16.gmra.mxu1 %v131_v63 }
  0x43   :  { %402 = vmatmul.bf16.gmra.mxu2 %v132_v0 }
  0x44   :  { %425 = vmatmul.bf16.gmra.mxu3 %v133_v1 }
  0x9e   :  { %v347_v3 = vpop.f32.mrf.mxu0 }
  0x9f   :  { %v370_v4 = vpop.f32.mrf.mxu1  ;;  %v348_v5 = vadd.f32 %v639_v2, %v347_v3 }
  0xa1   :  { %v371_v6 = vadd.f32 %v370_v4, %v348_v5 }
  0xa6   :  { %v393_v7 = vpop.f32.mrf.mxu2  ;;  %v349_v10 = vpop.f32.mrf.mxu0 }
  0xa7   :  { %v416_v8 = vpop.f32.mrf.mxu3  ;;  %v394_v9 = vadd.f32 %v393_v7, %v371_v6  ;;  %v372_v11 = vpop.f32.mrf.mxu1  ;;  %v350_v13 = vadd.f32 %v639_v2, %v349_v10 }
  0xa9   :  { %v417_v12 = vadd.f32 %v416_v8, %v394_v9  ;;  %v373_v14 = vadd.f32 %v372_v11, %v350_v13 }
  0xab   :  { %430 = vst [vmem:[%s831_s3] sm:$0xff] %v417_v12 }
  0xae   :  { %v395_v15 = vpop.f32.mrf.mxu2  ;;  %v352_v18 = vpop.f32.mrf.mxu0 }
  0xaf   :  { %v418_v16 = vpop.f32.mrf.mxu3  ;;  %v396_v17 = vadd.f32 %v395_v15, %v373_v14  ;;  %v375_v19 = vpop.f32.mrf.mxu1  ;;  %v353_v20 = vadd.f32 %v639_v2, %v352_v18 }
  0xb1   :  { %v419_v21 = vadd.f32 %v418_v16, %v396_v17  ;;  %v376_v22 = vadd.f32 %v375_v19, %v353_v20 }
  0xb3   :  { %431 = vst [vmem:[%s831_s3 + $0x8] sm:$0xff] %v419_v21 }
  0xb6   :  { %v398_v23 = vpop.f32.mrf.mxu2  ;;  %v354_v26 = vpop.f32.mrf.mxu0 }
  0xb7   :  { %v421_v24 = vpop.f32.mrf.mxu3  ;;  %v399_v25 = vadd.f32 %v398_v23, %v376_v22  ;;  %v377_v27 = vpop.f32.mrf.mxu1  ;;  %v355_v29 = vadd.f32 %v639_v2, %v354_v26 }
  0xb9   :  { %v422_v28 = vadd.f32 %v421_v24, %v399_v25  ;;  %v378_v30 = vadd.f32 %v377_v27, %v355_v29 }
  0xbb   :  { %432 = vst [vmem:[%s831_s3 + $0x10] sm:$0xff] %v422_v28 }
  0xbe   :  { %v400_v31 = vpop.f32.mrf.mxu2  ;;  %v357_v34 = vpop.f32.mrf.mxu0 }
  0xbf   :  { %v423_v32 = vpop.f32.mrf.mxu3  ;;  %v401_v33 = vadd.f32 %v400_v31, %v378_v30  ;;  %v380_v35 = vpop.f32.mrf.mxu1  ;;  %v358_v36 = vadd.f32 %v639_v2, %v357_v34 }
  0xc1   :  { %v424_v37 = vadd.f32 %v423_v32, %v401_v33  ;;  %v381_v38 = vadd.f32 %v380_v35, %v358_v36 }
  0xc3   :  { %433 = vst [vmem:[%s831_s3 + $0x18] sm:$0xff] %v424_v37 }
  0xc6   :  { %v403_v39 = vpop.f32.mrf.mxu2  ;;  %v359_v42 = vpop.f32.mrf.mxu0 }
  0xc7   :  { %v426_v40 = vpop.f32.mrf.mxu3  ;;  %v404_v41 = vadd.f32 %v403_v39, %v381_v38  ;;  %v382_v43 = vpop.f32.mrf.mxu1 }
  0xc9   :  { %v427_v44 = vadd.f32 %v426_v40, %v404_v41 }
  0xcb   :  { %434 = vst [vmem:[%s831_s3 + $0x20] sm:$0x3] %v427_v44 }
  0xce   :  { %v405_v45 = vpop.f32.mrf.mxu2 }
  0xcf   :  { %v428_v46 = vpop.f32.mrf.mxu3 }

</bundles_post_ra>
